<compile_context>
chip_gen: v7x
topology: tpu7x:2x2x1
jax: 0.10.0
libtpu: 0.0.40
codegen_flags: <defaults>
</compile_context>

<pallas_src>
import jax
import jax.numpy as jnp
from jax.experimental import pallas as pl
from jax.experimental.pallas import tpu as pltpu

LRELU_SLOPE = 0.2

_BLOCK_NAMES = ("conv3_1", "convd_1", "conv3_2", "convd_2", "conv3_3", "convd_3")


# ---------------------------------------------------------------------------
# Parameter construction (mirrors the PyTorch module; weight_norm folded).
# ---------------------------------------------------------------------------
def _fold_weight_norm(v, g):
    """weight_norm(dim=0): w[o] = g[o] * v[o] / ||v[o]||."""
    norm = jnp.sqrt(jnp.sum(v * v, axis=(1, 2, 3), keepdims=True))
    return (g.reshape(-1, 1, 1, 1) / norm) * v


def _make_convblock_params(key, cin, cout, groups):
    ks = jax.random.split(key, 9)
    vg = 0.3 * jax.random.normal(ks[0], (cin, cin // groups, 1, 1), jnp.float32)
    gg = jax.random.uniform(ks[1], (cin,), jnp.float32, minval=0.5, maxval=1.5)
    bg = 0.1 * jax.random.normal(ks[2], (cin,), jnp.float32)
    vd = 0.3 * jax.random.normal(ks[3], (cin, 1, 3, 3), jnp.float32)
    gd = jax.random.uniform(ks[4], (cin,), jnp.float32, minval=0.5, maxval=1.5)
    bd = 0.1 * jax.random.normal(ks[5], (cin,), jnp.float32)
    vp = 0.3 * jax.random.normal(ks[6], (cout, cin, 1, 1), jnp.float32)
    gp = jax.random.uniform(ks[7], (cout,), jnp.float32, minval=0.5, maxval=1.5)
    bp = 0.1 * jax.random.normal(ks[8], (cout,), jnp.float32)
    return {
        "wg": _fold_weight_norm(vg, gg), "bg": bg,
        "wd": _fold_weight_norm(vd, gd), "bd": bd,
        "wp": _fold_weight_norm(vp, gp), "bp": bp,
        "groups": groups,
    }


def make_mirb2_params(key, n_feats, groups=3):
    c_out = n_feats // 2
    ks = jax.random.split(key, 7)
    params = {name: _make_convblock_params(k, n_feats, c_out, groups)
              for name, k in zip(_BLOCK_NAMES, ks[:6])}
    kl = jax.random.split(ks[6], 3)
    vl = 0.3 * jax.random.normal(kl[0], (n_feats, n_feats, 1, 1), jnp.float32)
    gl = jax.random.uniform(kl[1], (n_feats,), jnp.float32, minval=0.5, maxval=1.5)
    bl = 0.1 * jax.random.normal(kl[2], (n_feats,), jnp.float32)
    params["conv_last"] = {"w": _fold_weight_norm(vl, gl), "b": bl}
    return params


# ---------------------------------------------------------------------------
# Conversion into the packed, stage-stacked kernel weight format.
# ---------------------------------------------------------------------------
def _group_conv_dense(wg, groups):
    """(C, C//groups, 1, 1) grouped 1x1 conv -> dense (C_out, C_in) matrix."""
    c = wg.shape[0]
    ipg = c // groups
    dense = jnp.zeros((c, c), wg.dtype)
    for g in range(groups):
        sl = slice(g * ipg, (g + 1) * ipg)
        dense = dense.at[sl, sl].set(wg[sl, :, 0, 0])
    return dense


def prepare_kernel_params(params, n_feats):
    """Pack the 6 conv blocks (3 stages x 2 branches) into stacked arrays."""
    c_half = n_feats // 2
    gas, gbs, bgs, kds, wps, bps = [], [], [], [], [], []
    for name in _BLOCK_NAMES:
        p = params[name]
        dense = _group_conv_dense(p["wg"], p["groups"])          # (C, C)
        gas.append(dense[:, :c_half])                            # (C, c_half)
        gbs.append(dense[:, c_half:])                            # (C, c_half)
        bgs.append(p["bg"].reshape(n_feats, 1))
        kds.append(p["wd"][:, 0, :, :].reshape(n_feats, 9))      # (C, 9)
        wp = p["wp"][:, :, 0, 0]                                 # (c_half, C)
        wps.append(wp)
        # Exact fold of the depthwise bias into the pointwise bias.
        bps.append((p["bp"] + wp @ p["bd"]).reshape(c_half, 1))
    wl = params["conv_last"]["w"][:, :, 0, 0]                    # (C, C)
    return {
        "gas": jnp.stack(gas), "gbs": jnp.stack(gbs),
        "bgs": jnp.stack(bgs), "kds": jnp.stack(kds),
        "wps": jnp.stack(wps), "bps": jnp.stack(bps),
        "wla": wl[:, :c_half], "wlb": wl[:, c_half:],
        "bl": params["conv_last"]["b"].reshape(n_feats, 1),
    }


# ---------------------------------------------------------------------------
# Fused Pallas kernel: 3 x [ConvBlock || ConvBlockD] + conv_last + residual.
# ---------------------------------------------------------------------------
def _make_fused_kernel(height, width, c_half):
    s = height * width
    c_full = 2 * c_half
    pad_need = 2 * width + 2                     # covers +-2 row / +-2 col taps
    pad_l = ((pad_need + 127) // 128) * 128      # lane-aligned interior store
    pad_r = pad_need
    sp = pad_l + s + pad_r

    def kernel(x_ref, cm_ref, gas, gbs, bgs, kds, wps, bps, wla, wlb, bl_ref,
               o_ref, t_scr):
        x = x_ref[0]                             # (C, s) f32
        cm = cm_ref[...]                         # (4, s) column-validity masks

        # Zero the scratch pad columns once; interiors are overwritten per use.
        for slot in range(2):
            t_scr[slot, :, :pad_l] = jnp.zeros((c_full, pad_l), jnp.float32)
            t_scr[slot, :, pad_l + s:] = jnp.zeros((c_full, pad_r), jnp.float32)

        def branch(idx, dil, c1, c2, slot):
            # 1) grouped 1x1 conv on the (folded) concatenation: two K=c_half dots.
            mm = (jnp.dot(gas[idx], c1, preferred_element_type=jnp.float32)
                  + jnp.dot(gbs[idx], c2, preferred_element_type=jnp.float32)
                  + bgs[idx])                    # (C, s)
            kd = kds[idx]                        # (C, 9)

            # 2) depthwise 3x3 (dilation = padding = dil).
            #    Center tap straight from registers (no scratch read, no mask).
            acc = mm * kd[:, 4:5]
            # Lane-aligned interior store; pad columns stay zero.
            t_scr[slot, :, pad_l:pad_l + s] = mm
            m_lo = cm[2 * (dil - 1):2 * (dil - 1) + 1]   # valid when col-dil >= 0
            m_hi = cm[2 * dil - 1:2 * dil]               # valid when col+dil < W
            for i in range(3):
                for j in range(3):
                    if i == 1 and j == 1:
                        continue
                    dj = (j - 1) * dil
                    start = pad_l + (i - 1) * dil * width + dj
                    tap = (t_scr[slot, :, start:start + s]
                           * kd[:, i * 3 + j:i * 3 + j + 1])
                    if dj < 0:
                        tap = tap * m_lo
                    elif dj > 0:
                        tap = tap * m_hi
                    acc = acc + tap

            # 3) pointwise 1x1 conv (+ folded depthwise bias) + LeakyReLU(0.2).
            y = jnp.dot(wps[idx], acc, preferred_element_type=jnp.float32) + bps[idx]
            return jnp.maximum(y, LRELU_SLOPE * y)

        c1, c2 = x[:c_half, :], x[c_half:, :]
        for stage in range(3):
            y1 = branch(2 * stage, 1, c1, c2, 0)
            y2 = branch(2 * stage + 1, 2, c1, c2, 1)
            c1, c2 = y1, y2

        # conv_last (1x1 over the concatenated halves) + residual.
        out = (jnp.dot(wla[...], c1, preferred_element_type=jnp.float32)
               + jnp.dot(wlb[...], c2, preferred_element_type=jnp.float32)
               + bl_ref[...] + x)
        o_ref[0] = out.astype(o_ref.dtype)

    return kernel, sp


def mirb2_forward(x, kp):
    """x: (B, n_feats, H, W) NCHW; kp from prepare_kernel_params."""
    batch, c_full, height, width = x.shape
    c_half = c_full // 2
    s = height * width
    x_flat = x.reshape(batch, c_full, s)

    # Hoisted per-dj column-validity multipliers (rows: col>=1, col<W-1, col>=2, col<W-2).
    col = jnp.arange(s, dtype=jnp.int32) % width
    colmask = jnp.stack([col >= 1, col < width - 1,
                         col >= 2, col < width - 2]).astype(jnp.float32)

    kernel, sp = _make_fused_kernel(height, width, c_half)
    weights = (kp["gas"], kp["gbs"], kp["bgs"], kp["kds"], kp["wps"], kp["bps"],
               kp["wla"], kp["wlb"], kp["bl"])

    def _const_spec(arr):
        nd = arr.ndim
        return pl.BlockSpec(arr.shape, lambda b, _nd=nd: (0,) * _nd)

    data_spec = pl.BlockSpec((1, c_full, s), lambda b: (b, 0, 0))
    out = pl.pallas_call(
        kernel,
        out_shape=jax.ShapeDtypeStruct((batch, c_full, s), x.dtype),
        grid=(batch,),
        in_specs=[data_spec, _const_spec(colmask)]
                 + [_const_spec(w) for w in weights],
        out_specs=data_spec,
        scratch_shapes=[pltpu.VMEM((2, c_full, sp), jnp.float32)],
        compiler_params=pltpu.CompilerParams(
            dimension_semantics=("parallel",)),
    )(x_flat, colmask, *weights)
    return out.reshape(batch, c_full, height, width)


# ---------------------------------------------------------------------------
# Pure-JAX reference (mirrors the PyTorch forward, NCHW, lax.conv).
# ---------------------------------------------------------------------------
def _conv2d(x, w, b, *, padding=0, dilation=1, groups=1):
    y = jax.lax.conv_general_dilated(
        x, w,
        window_strides=(1, 1),
        padding=((padding, padding), (padding, padding)),
        rhs_dilation=(dilation, dilation),
        dimension_numbers=("NCHW", "OIHW", "NCHW"),
        feature_group_count=groups)
    return y + b.reshape(1, -1, 1, 1)


def _convblock_ref(x, p, dilation):
    x = _conv2d(x, p["wg"], p["bg"], groups=p["groups"])
    x = _conv2d(x, p["wd"], p["bd"], padding=dilation, dilation=dilation,
                groups=x.shape[1])
    return _conv2d(x, p["wp"], p["bp"])


def _lrelu(x):
    return jnp.where(x >= 0, x, LRELU_SLOPE * x)


def mirb2_reference(x, params):
    res = x
    c1_1 = _lrelu(_convblock_ref(res, params["conv3_1"], 1))
    c2_1 = _lrelu(_convblock_ref(res, params["convd_1"], 2))
    cat1 = jnp.concatenate([c1_1, c2_1], axis=1)
    c1_2 = _lrelu(_convblock_ref(cat1, params["conv3_2"], 1))
    c2_2 = _lrelu(_convblock_ref(cat1, params["convd_2"], 2))
    cat2 = jnp.concatenate([c1_2, c2_2], axis=1)
    c1_4 = _lrelu(_convblock_ref(cat2, params["conv3_3"], 1))
    c2_4 = _lrelu(_convblock_ref(cat2, params["convd_3"], 2))
    cat3 = jnp.concatenate([c1_4, c2_4], axis=1)
    out = _conv2d(cat3, params["conv_last"]["w"], params["conv_last"]["b"])
    return out + x


if __name__ == "__main__":
    key = jax.random.PRNGKey(0)
    # n_feats must be divisible by 6 (groups=3 and the half-channel split).
    batch, n_feats, height, width = 2, 12, 16, 16
    k_x, k_p = jax.random.split(key)
    x = jax.random.normal(k_x, (batch, n_feats, height, width), dtype=jnp.float32)

    params = make_mirb2_params(k_p, n_feats)
    kparams = prepare_kernel_params(params, n_feats)

    forward = jax.jit(mirb2_forward)
    y = jax.block_until_ready(forward(x, kparams))

    y_ref = mirb2_reference(x, params)
    assert y.shape == x.shape and y.dtype == x.dtype
    max_err = float(jnp.max(jnp.abs(y - y_ref)))
    assert jnp.allclose(y, y_ref, atol=2e-3, rtol=2e-3), f"max abs err={max_err}"
    print("KERNEL_OK")
</pallas_src>

<mosaic_0001>
module attributes {stable_mosaic.version = 11 : i64} {
  func.func @kernel(%arg0: i32, %arg1: memref<1x12x256xf32, #tpu.memory_space<vmem>>, %arg2: memref<4x256xf32, #tpu.memory_space<vmem>>, %arg3: memref<6x12x6xf32, #tpu.memory_space<vmem>>, %arg4: memref<6x12x6xf32, #tpu.memory_space<vmem>>, %arg5: memref<6x12x1xf32, #tpu.memory_space<vmem>>, %arg6: memref<6x12x9xf32, #tpu.memory_space<vmem>>, %arg7: memref<6x6x12xf32, #tpu.memory_space<vmem>>, %arg8: memref<6x6x1xf32, #tpu.memory_space<vmem>>, %arg9: memref<12x6xf32, #tpu.memory_space<vmem>>, %arg10: memref<12x6xf32, #tpu.memory_space<vmem>>, %arg11: memref<12x1xf32, #tpu.memory_space<vmem>>, %arg12: memref<1x12x256xf32, #tpu.memory_space<vmem>>, %arg13: memref<2x12x418xf32, #tpu.memory_space<vmem>>) attributes {dimension_semantics = [#tpu.dimension_semantics<parallel>], iteration_bounds = array<i64: 2>, scalar_prefetch = 0 : i64, scratch_operands = 1 : i64, tpu.core_type = #tpu.core_type<tc>, window_params = [{transform_indices = @transform_0, window_bounds = array<i64: 1, 12, 256>}, {pipeline_mode = #tpu.pipeline_mode<synchronous>, transform_indices = @transform_1, window_bounds = array<i64: 4, 256>}, {pipeline_mode = #tpu.pipeline_mode<synchronous>, transform_indices = @transform_2, window_bounds = array<i64: 6, 12, 6>}, {pipeline_mode = #tpu.pipeline_mode<synchronous>, transform_indices = @transform_3, window_bounds = array<i64: 6, 12, 6>}, {pipeline_mode = #tpu.pipeline_mode<synchronous>, transform_indices = @transform_4, window_bounds = array<i64: 6, 12, 1>}, {pipeline_mode = #tpu.pipeline_mode<synchronous>, transform_indices = @transform_5, window_bounds = array<i64: 6, 12, 9>}, {pipeline_mode = #tpu.pipeline_mode<synchronous>, transform_indices = @transform_6, window_bounds = array<i64: 6, 6, 12>}, {pipeline_mode = #tpu.pipeline_mode<synchronous>, transform_indices = @transform_7, window_bounds = array<i64: 6, 6, 1>}, {pipeline_mode = #tpu.pipeline_mode<synchronous>, transform_indices = @transform_8, window_bounds = array<i64: 12, 6>}, {pipeline_mode = #tpu.pipeline_mode<synchronous>, transform_indices = @transform_9, window_bounds = array<i64: 12, 6>}, {pipeline_mode = #tpu.pipeline_mode<synchronous>, transform_indices = @transform_10, window_bounds = array<i64: 12, 1>}, {transform_indices = @transform_11, window_bounds = array<i64: 1, 12, 256>}]} {
    %c0 = arith.constant 0 : index
    %c0_0 = arith.constant 0 : index
    %c0_1 = arith.constant 0 : index
    %0 = vector.load %arg1[%c0, %c0_0, %c0_1] : memref<1x12x256xf32, #tpu.memory_space<vmem>>, vector<1x12x256xf32>
    %1 = vector.shape_cast %0 : vector<1x12x256xf32> to vector<12x256xf32>
    %c0_2 = arith.constant 0 : index
    %c0_3 = arith.constant 0 : index
    %2 = vector.load %arg2[%c0_2, %c0_3] : memref<4x256xf32, #tpu.memory_space<vmem>>, vector<4x256xf32>
    %cst = arith.constant 0.000000e+00 : f32
    %3 = vector.broadcast %cst : f32 to vector<12x128xf32>
    %c0_4 = arith.constant 0 : index
    %c0_5 = arith.constant 0 : index
    %c0_6 = arith.constant 0 : index
    %4 = vector.load %arg13[%c0_4, %c0_5, %c0_6] : memref<2x12x418xf32, #tpu.memory_space<vmem>>, vector<1x12x128xf32>
    %5 = vector.shape_cast %4 : vector<1x12x128xf32> to vector<12x128xf32>
    %6 = vector.shape_cast %3 : vector<12x128xf32> to vector<1x12x128xf32>
    tpu.vector_store %arg13[%c0_4, %c0_5, %c0_6], %6 {strides = array<i32>} : memref<2x12x418xf32, #tpu.memory_space<vmem>>, vector<1x12x128xf32>,
    %cst_7 = arith.constant 0.000000e+00 : f32
    %7 = vector.broadcast %cst_7 : f32 to vector<12x34xf32>
    %c0_8 = arith.constant 0 : index
    %c0_9 = arith.constant 0 : index
    %c384 = arith.constant 384 : index
    %8 = vector.load %arg13[%c0_8, %c0_9, %c384] : memref<2x12x418xf32, #tpu.memory_space<vmem>>, vector<1x12x34xf32>
    %9 = vector.shape_cast %8 : vector<1x12x34xf32> to vector<12x34xf32>
    %10 = vector.shape_cast %7 : vector<12x34xf32> to vector<1x12x34xf32>
    tpu.vector_store %arg13[%c0_8, %c0_9, %c384], %10 {strides = array<i32>} : memref<2x12x418xf32, #tpu.memory_space<vmem>>, vector<1x12x34xf32>,
    %cst_10 = arith.constant 0.000000e+00 : f32
    %11 = vector.broadcast %cst_10 : f32 to vector<12x128xf32>
    %c1 = arith.constant 1 : index
    %c0_11 = arith.constant 0 : index
    %c0_12 = arith.constant 0 : index
    %12 = vector.load %arg13[%c1, %c0_11, %c0_12] : memref<2x12x418xf32, #tpu.memory_space<vmem>>, vector<1x12x128xf32>
    %13 = vector.shape_cast %12 : vector<1x12x128xf32> to vector<12x128xf32>
    %14 = vector.shape_cast %11 : vector<12x128xf32> to vector<1x12x128xf32>
    tpu.vector_store %arg13[%c1, %c0_11, %c0_12], %14 {strides = array<i32>} : memref<2x12x418xf32, #tpu.memory_space<vmem>>, vector<1x12x128xf32>,
    %cst_13 = arith.constant 0.000000e+00 : f32
    %15 = vector.broadcast %cst_13 : f32 to vector<12x34xf32>
    %c1_14 = arith.constant 1 : index
    %c0_15 = arith.constant 0 : index
    %c384_16 = arith.constant 384 : index
    %16 = vector.load %arg13[%c1_14, %c0_15, %c384_16] : memref<2x12x418xf32, #tpu.memory_space<vmem>>, vector<1x12x34xf32>
    %17 = vector.shape_cast %16 : vector<1x12x34xf32> to vector<12x34xf32>
    %18 = vector.shape_cast %15 : vector<12x34xf32> to vector<1x12x34xf32>
    tpu.vector_store %arg13[%c1_14, %c0_15, %c384_16], %18 {strides = array<i32>} : memref<2x12x418xf32, #tpu.memory_space<vmem>>, vector<1x12x34xf32>,
    %19 = vector.extract_strided_slice %1 {offsets = [0, 0], sizes = [6, 256], strides = [1, 1]} : vector<12x256xf32> to vector<6x256xf32>
    %20 = vector.extract_strided_slice %1 {offsets = [6, 0], sizes = [6, 256], strides = [1, 1]} : vector<12x256xf32> to vector<6x256xf32>
    %c0_17 = arith.constant 0 : index
    %c0_18 = arith.constant 0 : index
    %c0_19 = arith.constant 0 : index
    %21 = vector.load %arg3[%c0_17, %c0_18, %c0_19] : memref<6x12x6xf32, #tpu.memory_space<vmem>>, vector<1x12x6xf32>
    %22 = vector.shape_cast %21 : vector<1x12x6xf32> to vector<12x6xf32>
    %cst_20 = arith.constant dense<0.000000e+00> : vector<12x256xf32>
    %23 = tpu.matmul %22, %19, %cst_20 {dimension_numbers = #tpu.dot_dimension_numbers<[1], [0], [0], [1], [0, 0, 1, 1], [], []>} : vector<12x6xf32>, vector<6x256xf32>, vector<12x256xf32> -> vector<12x256xf32>
    %c0_21 = arith.constant 0 : index
    %c0_22 = arith.constant 0 : index
    %c0_23 = arith.constant 0 : index
    %24 = vector.load %arg4[%c0_21, %c0_22, %c0_23] : memref<6x12x6xf32, #tpu.memory_space<vmem>>, vector<1x12x6xf32>
    %25 = vector.shape_cast %24 : vector<1x12x6xf32> to vector<12x6xf32>
    %cst_24 = arith.constant dense<0.000000e+00> : vector<12x256xf32>
    %26 = tpu.matmul %25, %20, %cst_24 {dimension_numbers = #tpu.dot_dimension_numbers<[1], [0], [0], [1], [0, 0, 1, 1], [], []>} : vector<12x6xf32>, vector<6x256xf32>, vector<12x256xf32> -> vector<12x256xf32>
    %27 = arith.addf %23, %26 : vector<12x256xf32>
    %c0_25 = arith.constant 0 : index
    %c0_26 = arith.constant 0 : index
    %c0_27 = arith.constant 0 : index
    %28 = vector.load %arg5[%c0_25, %c0_26, %c0_27] : memref<6x12x1xf32, #tpu.memory_space<vmem>>, vector<1x12x1xf32>
    %29 = vector.shape_cast %28 : vector<1x12x1xf32> to vector<12x1xf32>
    %30 = vector.broadcast %29 : vector<12x1xf32> to vector<12x256xf32>
    %31 = arith.addf %27, %30 : vector<12x256xf32>
    %c0_28 = arith.constant 0 : index
    %c0_29 = arith.constant 0 : index
    %c0_30 = arith.constant 0 : index
    %32 = vector.load %arg6[%c0_28, %c0_29, %c0_30] : memref<6x12x9xf32, #tpu.memory_space<vmem>>, vector<1x12x9xf32>
    %33 = vector.shape_cast %32 : vector<1x12x9xf32> to vector<12x9xf32>
    %34 = vector.extract_strided_slice %33 {offsets = [0, 4], sizes = [12, 1], strides = [1, 1]} : vector<12x9xf32> to vector<12x1xf32>
    %35 = vector.broadcast %34 : vector<12x1xf32> to vector<12x256xf32>
    %36 = arith.mulf %31, %35 : vector<12x256xf32>
    %c0_31 = arith.constant 0 : index
    %c0_32 = arith.constant 0 : index
    %c128 = arith.constant 128 : index
    %37 = vector.load %arg13[%c0_31, %c0_32, %c128] : memref<2x12x418xf32, #tpu.memory_space<vmem>>, vector<1x12x256xf32>
    %38 = vector.shape_cast %37 : vector<1x12x256xf32> to vector<12x256xf32>
    %39 = vector.shape_cast %31 : vector<12x256xf32> to vector<1x12x256xf32>
    tpu.vector_store %arg13[%c0_31, %c0_32, %c128], %39 {strides = array<i32>} : memref<2x12x418xf32, #tpu.memory_space<vmem>>, vector<1x12x256xf32>,
    %40 = vector.extract_strided_slice %2 {offsets = [0, 0], sizes = [1, 256], strides = [1, 1]} : vector<4x256xf32> to vector<1x256xf32>
    %41 = vector.extract_strided_slice %2 {offsets = [1, 0], sizes = [1, 256], strides = [1, 1]} : vector<4x256xf32> to vector<1x256xf32>
    %c0_33 = arith.constant 0 : index
    %c0_34 = arith.constant 0 : index
    %c111 = arith.constant 111 : index
    %42 = vector.load %arg13[%c0_33, %c0_34, %c111] : memref<2x12x418xf32, #tpu.memory_space<vmem>>, vector<1x12x256xf32>
    %43 = vector.shape_cast %42 : vector<1x12x256xf32> to vector<12x256xf32>
    %44 = vector.extract_strided_slice %33 {offsets = [0, 0], sizes = [12, 1], strides = [1, 1]} : vector<12x9xf32> to vector<12x1xf32>
    %45 = vector.broadcast %44 : vector<12x1xf32> to vector<12x256xf32>
    %46 = arith.mulf %43, %45 : vector<12x256xf32>
    %47 = vector.broadcast %40 : vector<1x256xf32> to vector<12x256xf32>
    %48 = arith.mulf %46, %47 : vector<12x256xf32>
    %49 = arith.addf %36, %48 : vector<12x256xf32>
    %c0_35 = arith.constant 0 : index
    %c0_36 = arith.constant 0 : index
    %c112 = arith.constant 112 : index
    %50 = vector.load %arg13[%c0_35, %c0_36, %c112] : memref<2x12x418xf32, #tpu.memory_space<vmem>>, vector<1x12x256xf32>
    %51 = vector.shape_cast %50 : vector<1x12x256xf32> to vector<12x256xf32>
    %52 = vector.extract_strided_slice %33 {offsets = [0, 1], sizes = [12, 1], strides = [1, 1]} : vector<12x9xf32> to vector<12x1xf32>
    %53 = vector.broadcast %52 : vector<12x1xf32> to vector<12x256xf32>
    %54 = arith.mulf %51, %53 : vector<12x256xf32>
    %55 = arith.addf %49, %54 : vector<12x256xf32>
    %c0_37 = arith.constant 0 : index
    %c0_38 = arith.constant 0 : index
    %c113 = arith.constant 113 : index
    %56 = vector.load %arg13[%c0_37, %c0_38, %c113] : memref<2x12x418xf32, #tpu.memory_space<vmem>>, vector<1x12x256xf32>
    %57 = vector.shape_cast %56 : vector<1x12x256xf32> to vector<12x256xf32>
    %58 = vector.extract_strided_slice %33 {offsets = [0, 2], sizes = [12, 1], strides = [1, 1]} : vector<12x9xf32> to vector<12x1xf32>
    %59 = vector.broadcast %58 : vector<12x1xf32> to vector<12x256xf32>
    %60 = arith.mulf %57, %59 : vector<12x256xf32>
    %61 = vector.broadcast %41 : vector<1x256xf32> to vector<12x256xf32>
    %62 = arith.mulf %60, %61 : vector<12x256xf32>
    %63 = arith.addf %55, %62 : vector<12x256xf32>
    %c0_39 = arith.constant 0 : index
    %c0_40 = arith.constant 0 : index
    %c127 = arith.constant 127 : index
    %64 = vector.load %arg13[%c0_39, %c0_40, %c127] : memref<2x12x418xf32, #tpu.memory_space<vmem>>, vector<1x12x256xf32>
    %65 = vector.shape_cast %64 : vector<1x12x256xf32> to vector<12x256xf32>
    %66 = vector.extract_strided_slice %33 {offsets = [0, 3], sizes = [12, 1], strides = [1, 1]} : vector<12x9xf32> to vector<12x1xf32>
    %67 = vector.broadcast %66 : vector<12x1xf32> to vector<12x256xf32>
    %68 = arith.mulf %65, %67 : vector<12x256xf32>
    %69 = vector.broadcast %40 : vector<1x256xf32> to vector<12x256xf32>
    %70 = arith.mulf %68, %69 : vector<12x256xf32>
    %71 = arith.addf %63, %70 : vector<12x256xf32>
    %c0_41 = arith.constant 0 : index
    %c0_42 = arith.constant 0 : index
    %c129 = arith.constant 129 : index
    %72 = vector.load %arg13[%c0_41, %c0_42, %c129] : memref<2x12x418xf32, #tpu.memory_space<vmem>>, vector<1x12x256xf32>
    %73 = vector.shape_cast %72 : vector<1x12x256xf32> to vector<12x256xf32>
    %74 = vector.extract_strided_slice %33 {offsets = [0, 5], sizes = [12, 1], strides = [1, 1]} : vector<12x9xf32> to vector<12x1xf32>
    %75 = vector.broadcast %74 : vector<12x1xf32> to vector<12x256xf32>
    %76 = arith.mulf %73, %75 : vector<12x256xf32>
    %77 = vector.broadcast %41 : vector<1x256xf32> to vector<12x256xf32>
    %78 = arith.mulf %76, %77 : vector<12x256xf32>
    %79 = arith.addf %71, %78 : vector<12x256xf32>
    %c0_43 = arith.constant 0 : index
    %c0_44 = arith.constant 0 : index
    %c143 = arith.constant 143 : index
    %80 = vector.load %arg13[%c0_43, %c0_44, %c143] : memref<2x12x418xf32, #tpu.memory_space<vmem>>, vector<1x12x256xf32>
    %81 = vector.shape_cast %80 : vector<1x12x256xf32> to vector<12x256xf32>
    %82 = vector.extract_strided_slice %33 {offsets = [0, 6], sizes = [12, 1], strides = [1, 1]} : vector<12x9xf32> to vector<12x1xf32>
    %83 = vector.broadcast %82 : vector<12x1xf32> to vector<12x256xf32>
    %84 = arith.mulf %81, %83 : vector<12x256xf32>
    %85 = vector.broadcast %40 : vector<1x256xf32> to vector<12x256xf32>
    %86 = arith.mulf %84, %85 : vector<12x256xf32>
    %87 = arith.addf %79, %86 : vector<12x256xf32>
    %c0_45 = arith.constant 0 : index
    %c0_46 = arith.constant 0 : index
    %c144 = arith.constant 144 : index
    %88 = vector.load %arg13[%c0_45, %c0_46, %c144] : memref<2x12x418xf32, #tpu.memory_space<vmem>>, vector<1x12x256xf32>
    %89 = vector.shape_cast %88 : vector<1x12x256xf32> to vector<12x256xf32>
    %90 = vector.extract_strided_slice %33 {offsets = [0, 7], sizes = [12, 1], strides = [1, 1]} : vector<12x9xf32> to vector<12x1xf32>
    %91 = vector.broadcast %90 : vector<12x1xf32> to vector<12x256xf32>
    %92 = arith.mulf %89, %91 : vector<12x256xf32>
    %93 = arith.addf %87, %92 : vector<12x256xf32>
    %c0_47 = arith.constant 0 : index
    %c0_48 = arith.constant 0 : index
    %c145 = arith.constant 145 : index
    %94 = vector.load %arg13[%c0_47, %c0_48, %c145] : memref<2x12x418xf32, #tpu.memory_space<vmem>>, vector<1x12x256xf32>
    %95 = vector.shape_cast %94 : vector<1x12x256xf32> to vector<12x256xf32>
    %96 = vector.extract_strided_slice %33 {offsets = [0, 8], sizes = [12, 1], strides = [1, 1]} : vector<12x9xf32> to vector<12x1xf32>
    %97 = vector.broadcast %96 : vector<12x1xf32> to vector<12x256xf32>
    %98 = arith.mulf %95, %97 : vector<12x256xf32>
    %99 = vector.broadcast %41 : vector<1x256xf32> to vector<12x256xf32>
    %100 = arith.mulf %98, %99 : vector<12x256xf32>
    %101 = arith.addf %93, %100 : vector<12x256xf32>
    %c0_49 = arith.constant 0 : index
    %c0_50 = arith.constant 0 : index
    %c0_51 = arith.constant 0 : index
    %102 = vector.load %arg7[%c0_49, %c0_50, %c0_51] : memref<6x6x12xf32, #tpu.memory_space<vmem>>, vector<1x6x12xf32>
    %103 = vector.shape_cast %102 : vector<1x6x12xf32> to vector<6x12xf32>
    %cst_52 = arith.constant dense<0.000000e+00> : vector<6x256xf32>
    %104 = tpu.matmul %103, %101, %cst_52 {dimension_numbers = #tpu.dot_dimension_numbers<[1], [0], [0], [1], [0, 0, 1, 1], [], []>} : vector<6x12xf32>, vector<12x256xf32>, vector<6x256xf32> -> vector<6x256xf32>
    %c0_53 = arith.constant 0 : index
    %c0_54 = arith.constant 0 : index
    %c0_55 = arith.constant 0 : index
    %105 = vector.load %arg8[%c0_53, %c0_54, %c0_55] : memref<6x6x1xf32, #tpu.memory_space<vmem>>, vector<1x6x1xf32>
    %106 = vector.shape_cast %105 : vector<1x6x1xf32> to vector<6x1xf32>
    %107 = vector.broadcast %106 : vector<6x1xf32> to vector<6x256xf32>
    %108 = arith.addf %104, %107 : vector<6x256xf32>
    %cst_56 = arith.constant 2.000000e-01 : f32
    %109 = vector.broadcast %cst_56 : f32 to vector<6x256xf32>
    %110 = arith.mulf %109, %108 : vector<6x256xf32>
    %111 = arith.maximumf %108, %110 : vector<6x256xf32>
    %c1_57 = arith.constant 1 : index
    %c0_58 = arith.constant 0 : index
    %c0_59 = arith.constant 0 : index
    %112 = vector.load %arg3[%c1_57, %c0_58, %c0_59] : memref<6x12x6xf32, #tpu.memory_space<vmem>>, vector<1x12x6xf32>
    %113 = vector.shape_cast %112 : vector<1x12x6xf32> to vector<12x6xf32>
    %cst_60 = arith.constant dense<0.000000e+00> : vector<12x256xf32>
    %114 = tpu.matmul %113, %19, %cst_60 {dimension_numbers = #tpu.dot_dimension_numbers<[1], [0], [0], [1], [0, 0, 1, 1], [], []>} : vector<12x6xf32>, vector<6x256xf32>, vector<12x256xf32> -> vector<12x256xf32>
    %c1_61 = arith.constant 1 : index
    %c0_62 = arith.constant 0 : index
    %c0_63 = arith.constant 0 : index
    %115 = vector.load %arg4[%c1_61, %c0_62, %c0_63] : memref<6x12x6xf32, #tpu.memory_space<vmem>>, vector<1x12x6xf32>
    %116 = vector.shape_cast %115 : vector<1x12x6xf32> to vector<12x6xf32>
    %cst_64 = arith.constant dense<0.000000e+00> : vector<12x256xf32>
    %117 = tpu.matmul %116, %20, %cst_64 {dimension_numbers = #tpu.dot_dimension_numbers<[1], [0], [0], [1], [0, 0, 1, 1], [], []>} : vector<12x6xf32>, vector<6x256xf32>, vector<12x256xf32> -> vector<12x256xf32>
    %118 = arith.addf %114, %117 : vector<12x256xf32>
    %c1_65 = arith.constant 1 : index
    %c0_66 = arith.constant 0 : index
    %c0_67 = arith.constant 0 : index
    %119 = vector.load %arg5[%c1_65, %c0_66, %c0_67] : memref<6x12x1xf32, #tpu.memory_space<vmem>>, vector<1x12x1xf32>
    %120 = vector.shape_cast %119 : vector<1x12x1xf32> to vector<12x1xf32>
    %121 = vector.broadcast %120 : vector<12x1xf32> to vector<12x256xf32>
    %122 = arith.addf %118, %121 : vector<12x256xf32>
    %c1_68 = arith.constant 1 : index
    %c0_69 = arith.constant 0 : index
    %c0_70 = arith.constant 0 : index
    %123 = vector.load %arg6[%c1_68, %c0_69, %c0_70] : memref<6x12x9xf32, #tpu.memory_space<vmem>>, vector<1x12x9xf32>
    %124 = vector.shape_cast %123 : vector<1x12x9xf32> to vector<12x9xf32>
    %125 = vector.extract_strided_slice %124 {offsets = [0, 4], sizes = [12, 1], strides = [1, 1]} : vector<12x9xf32> to vector<12x1xf32>
    %126 = vector.broadcast %125 : vector<12x1xf32> to vector<12x256xf32>
    %127 = arith.mulf %122, %126 : vector<12x256xf32>
    %c1_71 = arith.constant 1 : index
    %c0_72 = arith.constant 0 : index
    %c128_73 = arith.constant 128 : index
    %128 = vector.load %arg13[%c1_71, %c0_72, %c128_73] : memref<2x12x418xf32, #tpu.memory_space<vmem>>, vector<1x12x256xf32>
    %129 = vector.shape_cast %128 : vector<1x12x256xf32> to vector<12x256xf32>
    %130 = vector.shape_cast %122 : vector<12x256xf32> to vector<1x12x256xf32>
    tpu.vector_store %arg13[%c1_71, %c0_72, %c128_73], %130 {strides = array<i32>} : memref<2x12x418xf32, #tpu.memory_space<vmem>>, vector<1x12x256xf32>,
    %131 = vector.extract_strided_slice %2 {offsets = [2, 0], sizes = [1, 256], strides = [1, 1]} : vector<4x256xf32> to vector<1x256xf32>
    %132 = vector.extract_strided_slice %2 {offsets = [3, 0], sizes = [1, 256], strides = [1, 1]} : vector<4x256xf32> to vector<1x256xf32>
    %c1_74 = arith.constant 1 : index
    %c0_75 = arith.constant 0 : index
    %c94 = arith.constant 94 : index
    %133 = vector.load %arg13[%c1_74, %c0_75, %c94] : memref<2x12x418xf32, #tpu.memory_space<vmem>>, vector<1x12x256xf32>
    %134 = vector.shape_cast %133 : vector<1x12x256xf32> to vector<12x256xf32>
    %135 = vector.extract_strided_slice %124 {offsets = [0, 0], sizes = [12, 1], strides = [1, 1]} : vector<12x9xf32> to vector<12x1xf32>
    %136 = vector.broadcast %135 : vector<12x1xf32> to vector<12x256xf32>
    %137 = arith.mulf %134, %136 : vector<12x256xf32>
    %138 = vector.broadcast %131 : vector<1x256xf32> to vector<12x256xf32>
    %139 = arith.mulf %137, %138 : vector<12x256xf32>
    %140 = arith.addf %127, %139 : vector<12x256xf32>
    %c1_76 = arith.constant 1 : index
    %c0_77 = arith.constant 0 : index
    %c96 = arith.constant 96 : index
    %141 = vector.load %arg13[%c1_76, %c0_77, %c96] : memref<2x12x418xf32, #tpu.memory_space<vmem>>, vector<1x12x256xf32>
    %142 = vector.shape_cast %141 : vector<1x12x256xf32> to vector<12x256xf32>
    %143 = vector.extract_strided_slice %124 {offsets = [0, 1], sizes = [12, 1], strides = [1, 1]} : vector<12x9xf32> to vector<12x1xf32>
    %144 = vector.broadcast %143 : vector<12x1xf32> to vector<12x256xf32>
    %145 = arith.mulf %142, %144 : vector<12x256xf32>
    %146 = arith.addf %140, %145 : vector<12x256xf32>
    %c1_78 = arith.constant 1 : index
    %c0_79 = arith.constant 0 : index
    %c98 = arith.constant 98 : index
    %147 = vector.load %arg13[%c1_78, %c0_79, %c98] : memref<2x12x418xf32, #tpu.memory_space<vmem>>, vector<1x12x256xf32>
    %148 = vector.shape_cast %147 : vector<1x12x256xf32> to vector<12x256xf32>
    %149 = vector.extract_strided_slice %124 {offsets = [0, 2], sizes = [12, 1], strides = [1, 1]} : vector<12x9xf32> to vector<12x1xf32>
    %150 = vector.broadcast %149 : vector<12x1xf32> to vector<12x256xf32>
    %151 = arith.mulf %148, %150 : vector<12x256xf32>
    %152 = vector.broadcast %132 : vector<1x256xf32> to vector<12x256xf32>
    %153 = arith.mulf %151, %152 : vector<12x256xf32>
    %154 = arith.addf %146, %153 : vector<12x256xf32>
    %c1_80 = arith.constant 1 : index
    %c0_81 = arith.constant 0 : index
    %c126 = arith.constant 126 : index
    %155 = vector.load %arg13[%c1_80, %c0_81, %c126] : memref<2x12x418xf32, #tpu.memory_space<vmem>>, vector<1x12x256xf32>
    %156 = vector.shape_cast %155 : vector<1x12x256xf32> to vector<12x256xf32>
    %157 = vector.extract_strided_slice %124 {offsets = [0, 3], sizes = [12, 1], strides = [1, 1]} : vector<12x9xf32> to vector<12x1xf32>
    %158 = vector.broadcast %157 : vector<12x1xf32> to vector<12x256xf32>
    %159 = arith.mulf %156, %158 : vector<12x256xf32>
    %160 = vector.broadcast %131 : vector<1x256xf32> to vector<12x256xf32>
    %161 = arith.mulf %159, %160 : vector<12x256xf32>
    %162 = arith.addf %154, %161 : vector<12x256xf32>
    %c1_82 = arith.constant 1 : index
    %c0_83 = arith.constant 0 : index
    %c130 = arith.constant 130 : index
    %163 = vector.load %arg13[%c1_82, %c0_83, %c130] : memref<2x12x418xf32, #tpu.memory_space<vmem>>, vector<1x12x256xf32>
    %164 = vector.shape_cast %163 : vector<1x12x256xf32> to vector<12x256xf32>
    %165 = vector.extract_strided_slice %124 {offsets = [0, 5], sizes = [12, 1], strides = [1, 1]} : vector<12x9xf32> to vector<12x1xf32>
    %166 = vector.broadcast %165 : vector<12x1xf32> to vector<12x256xf32>
    %167 = arith.mulf %164, %166 : vector<12x256xf32>
    %168 = vector.broadcast %132 : vector<1x256xf32> to vector<12x256xf32>
    %169 = arith.mulf %167, %168 : vector<12x256xf32>
    %170 = arith.addf %162, %169 : vector<12x256xf32>
    %c1_84 = arith.constant 1 : index
    %c0_85 = arith.constant 0 : index
    %c158 = arith.constant 158 : index
    %171 = vector.load %arg13[%c1_84, %c0_85, %c158] : memref<2x12x418xf32, #tpu.memory_space<vmem>>, vector<1x12x256xf32>
    %172 = vector.shape_cast %171 : vector<1x12x256xf32> to vector<12x256xf32>
    %173 = vector.extract_strided_slice %124 {offsets = [0, 6], sizes = [12, 1], strides = [1, 1]} : vector<12x9xf32> to vector<12x1xf32>
    %174 = vector.broadcast %173 : vector<12x1xf32> to vector<12x256xf32>
    %175 = arith.mulf %172, %174 : vector<12x256xf32>
    %176 = vector.broadcast %131 : vector<1x256xf32> to vector<12x256xf32>
    %177 = arith.mulf %175, %176 : vector<12x256xf32>
    %178 = arith.addf %170, %177 : vector<12x256xf32>
    %c1_86 = arith.constant 1 : index
    %c0_87 = arith.constant 0 : index
    %c160 = arith.constant 160 : index
    %179 = vector.load %arg13[%c1_86, %c0_87, %c160] : memref<2x12x418xf32, #tpu.memory_space<vmem>>, vector<1x12x256xf32>
    %180 = vector.shape_cast %179 : vector<1x12x256xf32> to vector<12x256xf32>
    %181 = vector.extract_strided_slice %124 {offsets = [0, 7], sizes = [12, 1], strides = [1, 1]} : vector<12x9xf32> to vector<12x1xf32>
    %182 = vector.broadcast %181 : vector<12x1xf32> to vector<12x256xf32>
    %183 = arith.mulf %180, %182 : vector<12x256xf32>
    %184 = arith.addf %178, %183 : vector<12x256xf32>
    %c1_88 = arith.constant 1 : index
    %c0_89 = arith.constant 0 : index
    %c162 = arith.constant 162 : index
    %185 = vector.load %arg13[%c1_88, %c0_89, %c162] : memref<2x12x418xf32, #tpu.memory_space<vmem>>, vector<1x12x256xf32>
    %186 = vector.shape_cast %185 : vector<1x12x256xf32> to vector<12x256xf32>
    %187 = vector.extract_strided_slice %124 {offsets = [0, 8], sizes = [12, 1], strides = [1, 1]} : vector<12x9xf32> to vector<12x1xf32>
    %188 = vector.broadcast %187 : vector<12x1xf32> to vector<12x256xf32>
    %189 = arith.mulf %186, %188 : vector<12x256xf32>
    %190 = vector.broadcast %132 : vector<1x256xf32> to vector<12x256xf32>
    %191 = arith.mulf %189, %190 : vector<12x256xf32>
    %192 = arith.addf %184, %191 : vector<12x256xf32>
    %c1_90 = arith.constant 1 : index
    %c0_91 = arith.constant 0 : index
    %c0_92 = arith.constant 0 : index
    %193 = vector.load %arg7[%c1_90, %c0_91, %c0_92] : memref<6x6x12xf32, #tpu.memory_space<vmem>>, vector<1x6x12xf32>
    %194 = vector.shape_cast %193 : vector<1x6x12xf32> to vector<6x12xf32>
    %cst_93 = arith.constant dense<0.000000e+00> : vector<6x256xf32>
    %195 = tpu.matmul %194, %192, %cst_93 {dimension_numbers = #tpu.dot_dimension_numbers<[1], [0], [0], [1], [0, 0, 1, 1], [], []>} : vector<6x12xf32>, vector<12x256xf32>, vector<6x256xf32> -> vector<6x256xf32>
    %c1_94 = arith.constant 1 : index
    %c0_95 = arith.constant 0 : index
    %c0_96 = arith.constant 0 : index
    %196 = vector.load %arg8[%c1_94, %c0_95, %c0_96] : memref<6x6x1xf32, #tpu.memory_space<vmem>>, vector<1x6x1xf32>
    %197 = vector.shape_cast %196 : vector<1x6x1xf32> to vector<6x1xf32>
    %198 = vector.broadcast %197 : vector<6x1xf32> to vector<6x256xf32>
    %199 = arith.addf %195, %198 : vector<6x256xf32>
    %cst_97 = arith.constant 2.000000e-01 : f32
    %200 = vector.broadcast %cst_97 : f32 to vector<6x256xf32>
    %201 = arith.mulf %200, %199 : vector<6x256xf32>
    %202 = arith.maximumf %199, %201 : vector<6x256xf32>
    %c2 = arith.constant 2 : index
    %c0_98 = arith.constant 0 : index
    %c0_99 = arith.constant 0 : index
    %203 = vector.load %arg3[%c2, %c0_98, %c0_99] : memref<6x12x6xf32, #tpu.memory_space<vmem>>, vector<1x12x6xf32>
    %204 = vector.shape_cast %203 : vector<1x12x6xf32> to vector<12x6xf32>
    %cst_100 = arith.constant dense<0.000000e+00> : vector<12x256xf32>
    %205 = tpu.matmul %204, %111, %cst_100 {dimension_numbers = #tpu.dot_dimension_numbers<[1], [0], [0], [1], [0, 0, 1, 1], [], []>} : vector<12x6xf32>, vector<6x256xf32>, vector<12x256xf32> -> vector<12x256xf32>
    %c2_101 = arith.constant 2 : index
    %c0_102 = arith.constant 0 : index
    %c0_103 = arith.constant 0 : index
    %206 = vector.load %arg4[%c2_101, %c0_102, %c0_103] : memref<6x12x6xf32, #tpu.memory_space<vmem>>, vector<1x12x6xf32>
    %207 = vector.shape_cast %206 : vector<1x12x6xf32> to vector<12x6xf32>
    %cst_104 = arith.constant dense<0.000000e+00> : vector<12x256xf32>
    %208 = tpu.matmul %207, %202, %cst_104 {dimension_numbers = #tpu.dot_dimension_numbers<[1], [0], [0], [1], [0, 0, 1, 1], [], []>} : vector<12x6xf32>, vector<6x256xf32>, vector<12x256xf32> -> vector<12x256xf32>
    %209 = arith.addf %205, %208 : vector<12x256xf32>
    %c2_105 = arith.constant 2 : index
    %c0_106 = arith.constant 0 : index
    %c0_107 = arith.constant 0 : index
    %210 = vector.load %arg5[%c2_105, %c0_106, %c0_107] : memref<6x12x1xf32, #tpu.memory_space<vmem>>, vector<1x12x1xf32>
    %211 = vector.shape_cast %210 : vector<1x12x1xf32> to vector<12x1xf32>
    %212 = vector.broadcast %211 : vector<12x1xf32> to vector<12x256xf32>
    %213 = arith.addf %209, %212 : vector<12x256xf32>
    %c2_108 = arith.constant 2 : index
    %c0_109 = arith.constant 0 : index
    %c0_110 = arith.constant 0 : index
    %214 = vector.load %arg6[%c2_108, %c0_109, %c0_110] : memref<6x12x9xf32, #tpu.memory_space<vmem>>, vector<1x12x9xf32>
    %215 = vector.shape_cast %214 : vector<1x12x9xf32> to vector<12x9xf32>
    %216 = vector.extract_strided_slice %215 {offsets = [0, 4], sizes = [12, 1], strides = [1, 1]} : vector<12x9xf32> to vector<12x1xf32>
    %217 = vector.broadcast %216 : vector<12x1xf32> to vector<12x256xf32>
    %218 = arith.mulf %213, %217 : vector<12x256xf32>
    %c0_111 = arith.constant 0 : index
    %c0_112 = arith.constant 0 : index
    %c128_113 = arith.constant 128 : index
    %219 = vector.load %arg13[%c0_111, %c0_112, %c128_113] : memref<2x12x418xf32, #tpu.memory_space<vmem>>, vector<1x12x256xf32>
    %220 = vector.shape_cast %219 : vector<1x12x256xf32> to vector<12x256xf32>
    %221 = vector.shape_cast %213 : vector<12x256xf32> to vector<1x12x256xf32>
    tpu.vector_store %arg13[%c0_111, %c0_112, %c128_113], %221 {strides = array<i32>} : memref<2x12x418xf32, #tpu.memory_space<vmem>>, vector<1x12x256xf32>,
    %222 = vector.extract_strided_slice %2 {offsets = [0, 0], sizes = [1, 256], strides = [1, 1]} : vector<4x256xf32> to vector<1x256xf32>
    %223 = vector.extract_strided_slice %2 {offsets = [1, 0], sizes = [1, 256], strides = [1, 1]} : vector<4x256xf32> to vector<1x256xf32>
    %c0_114 = arith.constant 0 : index
    %c0_115 = arith.constant 0 : index
    %c111_116 = arith.constant 111 : index
    %224 = vector.load %arg13[%c0_114, %c0_115, %c111_116] : memref<2x12x418xf32, #tpu.memory_space<vmem>>, vector<1x12x256xf32>
    %225 = vector.shape_cast %224 : vector<1x12x256xf32> to vector<12x256xf32>
    %226 = vector.extract_strided_slice %215 {offsets = [0, 0], sizes = [12, 1], strides = [1, 1]} : vector<12x9xf32> to vector<12x1xf32>
    %227 = vector.broadcast %226 : vector<12x1xf32> to vector<12x256xf32>
    %228 = arith.mulf %225, %227 : vector<12x256xf32>
    %229 = vector.broadcast %222 : vector<1x256xf32> to vector<12x256xf32>
    %230 = arith.mulf %228, %229 : vector<12x256xf32>
    %231 = arith.addf %218, %230 : vector<12x256xf32>
    %c0_117 = arith.constant 0 : index
    %c0_118 = arith.constant 0 : index
    %c112_119 = arith.constant 112 : index
    %232 = vector.load %arg13[%c0_117, %c0_118, %c112_119] : memref<2x12x418xf32, #tpu.memory_space<vmem>>, vector<1x12x256xf32>
    %233 = vector.shape_cast %232 : vector<1x12x256xf32> to vector<12x256xf32>
    %234 = vector.extract_strided_slice %215 {offsets = [0, 1], sizes = [12, 1], strides = [1, 1]} : vector<12x9xf32> to vector<12x1xf32>
    %235 = vector.broadcast %234 : vector<12x1xf32> to vector<12x256xf32>
    %236 = arith.mulf %233, %235 : vector<12x256xf32>
    %237 = arith.addf %231, %236 : vector<12x256xf32>
    %c0_120 = arith.constant 0 : index
    %c0_121 = arith.constant 0 : index
    %c113_122 = arith.constant 113 : index
    %238 = vector.load %arg13[%c0_120, %c0_121, %c113_122] : memref<2x12x418xf32, #tpu.memory_space<vmem>>, vector<1x12x256xf32>
    %239 = vector.shape_cast %238 : vector<1x12x256xf32> to vector<12x256xf32>
    %240 = vector.extract_strided_slice %215 {offsets = [0, 2], sizes = [12, 1], strides = [1, 1]} : vector<12x9xf32> to vector<12x1xf32>
    %241 = vector.broadcast %240 : vector<12x1xf32> to vector<12x256xf32>
    %242 = arith.mulf %239, %241 : vector<12x256xf32>
    %243 = vector.broadcast %223 : vector<1x256xf32> to vector<12x256xf32>
    %244 = arith.mulf %242, %243 : vector<12x256xf32>
    %245 = arith.addf %237, %244 : vector<12x256xf32>
    %c0_123 = arith.constant 0 : index
    %c0_124 = arith.constant 0 : index
    %c127_125 = arith.constant 127 : index
    %246 = vector.load %arg13[%c0_123, %c0_124, %c127_125] : memref<2x12x418xf32, #tpu.memory_space<vmem>>, vector<1x12x256xf32>
    %247 = vector.shape_cast %246 : vector<1x12x256xf32> to vector<12x256xf32>
    %248 = vector.extract_strided_slice %215 {offsets = [0, 3], sizes = [12, 1], strides = [1, 1]} : vector<12x9xf32> to vector<12x1xf32>
    %249 = vector.broadcast %248 : vector<12x1xf32> to vector<12x256xf32>
    %250 = arith.mulf %247, %249 : vector<12x256xf32>
    %251 = vector.broadcast %222 : vector<1x256xf32> to vector<12x256xf32>
    %252 = arith.mulf %250, %251 : vector<12x256xf32>
    %253 = arith.addf %245, %252 : vector<12x256xf32>
    %c0_126 = arith.constant 0 : index
    %c0_127 = arith.constant 0 : index
    %c129_128 = arith.constant 129 : index
    %254 = vector.load %arg13[%c0_126, %c0_127, %c129_128] : memref<2x12x418xf32, #tpu.memory_space<vmem>>, vector<1x12x256xf32>
    %255 = vector.shape_cast %254 : vector<1x12x256xf32> to vector<12x256xf32>
    %256 = vector.extract_strided_slice %215 {offsets = [0, 5], sizes = [12, 1], strides = [1, 1]} : vector<12x9xf32> to vector<12x1xf32>
    %257 = vector.broadcast %256 : vector<12x1xf32> to vector<12x256xf32>
    %258 = arith.mulf %255, %257 : vector<12x256xf32>
    %259 = vector.broadcast %223 : vector<1x256xf32> to vector<12x256xf32>
    %260 = arith.mulf %258, %259 : vector<12x256xf32>
    %261 = arith.addf %253, %260 : vector<12x256xf32>
    %c0_129 = arith.constant 0 : index
    %c0_130 = arith.constant 0 : index
    %c143_131 = arith.constant 143 : index
    %262 = vector.load %arg13[%c0_129, %c0_130, %c143_131] : memref<2x12x418xf32, #tpu.memory_space<vmem>>, vector<1x12x256xf32>
    %263 = vector.shape_cast %262 : vector<1x12x256xf32> to vector<12x256xf32>
    %264 = vector.extract_strided_slice %215 {offsets = [0, 6], sizes = [12, 1], strides = [1, 1]} : vector<12x9xf32> to vector<12x1xf32>
    %265 = vector.broadcast %264 : vector<12x1xf32> to vector<12x256xf32>
    %266 = arith.mulf %263, %265 : vector<12x256xf32>
    %267 = vector.broadcast %222 : vector<1x256xf32> to vector<12x256xf32>
    %268 = arith.mulf %266, %267 : vector<12x256xf32>
    %269 = arith.addf %261, %268 : vector<12x256xf32>
    %c0_132 = arith.constant 0 : index
    %c0_133 = arith.constant 0 : index
    %c144_134 = arith.constant 144 : index
    %270 = vector.load %arg13[%c0_132, %c0_133, %c144_134] : memref<2x12x418xf32, #tpu.memory_space<vmem>>, vector<1x12x256xf32>
    %271 = vector.shape_cast %270 : vector<1x12x256xf32> to vector<12x256xf32>
    %272 = vector.extract_strided_slice %215 {offsets = [0, 7], sizes = [12, 1], strides = [1, 1]} : vector<12x9xf32> to vector<12x1xf32>
    %273 = vector.broadcast %272 : vector<12x1xf32> to vector<12x256xf32>
    %274 = arith.mulf %271, %273 : vector<12x256xf32>
    %275 = arith.addf %269, %274 : vector<12x256xf32>
    %c0_135 = arith.constant 0 : index
    %c0_136 = arith.constant 0 : index
    %c145_137 = arith.constant 145 : index
    %276 = vector.load %arg13[%c0_135, %c0_136, %c145_137] : memref<2x12x418xf32, #tpu.memory_space<vmem>>, vector<1x12x256xf32>
    %277 = vector.shape_cast %276 : vector<1x12x256xf32> to vector<12x256xf32>
    %278 = vector.extract_strided_slice %215 {offsets = [0, 8], sizes = [12, 1], strides = [1, 1]} : vector<12x9xf32> to vector<12x1xf32>
    %279 = vector.broadcast %278 : vector<12x1xf32> to vector<12x256xf32>
    %280 = arith.mulf %277, %279 : vector<12x256xf32>
    %281 = vector.broadcast %223 : vector<1x256xf32> to vector<12x256xf32>
    %282 = arith.mulf %280, %281 : vector<12x256xf32>
    %283 = arith.addf %275, %282 : vector<12x256xf32>
    %c2_138 = arith.constant 2 : index
    %c0_139 = arith.constant 0 : index
    %c0_140 = arith.constant 0 : index
    %284 = vector.load %arg7[%c2_138, %c0_139, %c0_140] : memref<6x6x12xf32, #tpu.memory_space<vmem>>, vector<1x6x12xf32>
    %285 = vector.shape_cast %284 : vector<1x6x12xf32> to vector<6x12xf32>
    %cst_141 = arith.constant dense<0.000000e+00> : vector<6x256xf32>
    %286 = tpu.matmul %285, %283, %cst_141 {dimension_numbers = #tpu.dot_dimension_numbers<[1], [0], [0], [1], [0, 0, 1, 1], [], []>} : vector<6x12xf32>, vector<12x256xf32>, vector<6x256xf32> -> vector<6x256xf32>
    %c2_142 = arith.constant 2 : index
    %c0_143 = arith.constant 0 : index
    %c0_144 = arith.constant 0 : index
    %287 = vector.load %arg8[%c2_142, %c0_143, %c0_144] : memref<6x6x1xf32, #tpu.memory_space<vmem>>, vector<1x6x1xf32>
    %288 = vector.shape_cast %287 : vector<1x6x1xf32> to vector<6x1xf32>
    %289 = vector.broadcast %288 : vector<6x1xf32> to vector<6x256xf32>
    %290 = arith.addf %286, %289 : vector<6x256xf32>
    %cst_145 = arith.constant 2.000000e-01 : f32
    %291 = vector.broadcast %cst_145 : f32 to vector<6x256xf32>
    %292 = arith.mulf %291, %290 : vector<6x256xf32>
    %293 = arith.maximumf %290, %292 : vector<6x256xf32>
    %c3 = arith.constant 3 : index
    %c0_146 = arith.constant 0 : index
    %c0_147 = arith.constant 0 : index
    %294 = vector.load %arg3[%c3, %c0_146, %c0_147] : memref<6x12x6xf32, #tpu.memory_space<vmem>>, vector<1x12x6xf32>
    %295 = vector.shape_cast %294 : vector<1x12x6xf32> to vector<12x6xf32>
    %cst_148 = arith.constant dense<0.000000e+00> : vector<12x256xf32>
    %296 = tpu.matmul %295, %111, %cst_148 {dimension_numbers = #tpu.dot_dimension_numbers<[1], [0], [0], [1], [0, 0, 1, 1], [], []>} : vector<12x6xf32>, vector<6x256xf32>, vector<12x256xf32> -> vector<12x256xf32>
    %c3_149 = arith.constant 3 : index
    %c0_150 = arith.constant 0 : index
    %c0_151 = arith.constant 0 : index
    %297 = vector.load %arg4[%c3_149, %c0_150, %c0_151] : memref<6x12x6xf32, #tpu.memory_space<vmem>>, vector<1x12x6xf32>
    %298 = vector.shape_cast %297 : vector<1x12x6xf32> to vector<12x6xf32>
    %cst_152 = arith.constant dense<0.000000e+00> : vector<12x256xf32>
    %299 = tpu.matmul %298, %202, %cst_152 {dimension_numbers = #tpu.dot_dimension_numbers<[1], [0], [0], [1], [0, 0, 1, 1], [], []>} : vector<12x6xf32>, vector<6x256xf32>, vector<12x256xf32> -> vector<12x256xf32>
    %300 = arith.addf %296, %299 : vector<12x256xf32>
    %c3_153 = arith.constant 3 : index
    %c0_154 = arith.constant 0 : index
    %c0_155 = arith.constant 0 : index
    %301 = vector.load %arg5[%c3_153, %c0_154, %c0_155] : memref<6x12x1xf32, #tpu.memory_space<vmem>>, vector<1x12x1xf32>
    %302 = vector.shape_cast %301 : vector<1x12x1xf32> to vector<12x1xf32>
    %303 = vector.broadcast %302 : vector<12x1xf32> to vector<12x256xf32>
    %304 = arith.addf %300, %303 : vector<12x256xf32>
    %c3_156 = arith.constant 3 : index
    %c0_157 = arith.constant 0 : index
    %c0_158 = arith.constant 0 : index
    %305 = vector.load %arg6[%c3_156, %c0_157, %c0_158] : memref<6x12x9xf32, #tpu.memory_space<vmem>>, vector<1x12x9xf32>
    %306 = vector.shape_cast %305 : vector<1x12x9xf32> to vector<12x9xf32>
    %307 = vector.extract_strided_slice %306 {offsets = [0, 4], sizes = [12, 1], strides = [1, 1]} : vector<12x9xf32> to vector<12x1xf32>
    %308 = vector.broadcast %307 : vector<12x1xf32> to vector<12x256xf32>
    %309 = arith.mulf %304, %308 : vector<12x256xf32>
    %c1_159 = arith.constant 1 : index
    %c0_160 = arith.constant 0 : index
    %c128_161 = arith.constant 128 : index
    %310 = vector.load %arg13[%c1_159, %c0_160, %c128_161] : memref<2x12x418xf32, #tpu.memory_space<vmem>>, vector<1x12x256xf32>
    %311 = vector.shape_cast %310 : vector<1x12x256xf32> to vector<12x256xf32>
    %312 = vector.shape_cast %304 : vector<12x256xf32> to vector<1x12x256xf32>
    tpu.vector_store %arg13[%c1_159, %c0_160, %c128_161], %312 {strides = array<i32>} : memref<2x12x418xf32, #tpu.memory_space<vmem>>, vector<1x12x256xf32>,
    %313 = vector.extract_strided_slice %2 {offsets = [2, 0], sizes = [1, 256], strides = [1, 1]} : vector<4x256xf32> to vector<1x256xf32>
    %314 = vector.extract_strided_slice %2 {offsets = [3, 0], sizes = [1, 256], strides = [1, 1]} : vector<4x256xf32> to vector<1x256xf32>
    %c1_162 = arith.constant 1 : index
    %c0_163 = arith.constant 0 : index
    %c94_164 = arith.constant 94 : index
    %315 = vector.load %arg13[%c1_162, %c0_163, %c94_164] : memref<2x12x418xf32, #tpu.memory_space<vmem>>, vector<1x12x256xf32>
    %316 = vector.shape_cast %315 : vector<1x12x256xf32> to vector<12x256xf32>
    %317 = vector.extract_strided_slice %306 {offsets = [0, 0], sizes = [12, 1], strides = [1, 1]} : vector<12x9xf32> to vector<12x1xf32>
    %318 = vector.broadcast %317 : vector<12x1xf32> to vector<12x256xf32>
    %319 = arith.mulf %316, %318 : vector<12x256xf32>
    %320 = vector.broadcast %313 : vector<1x256xf32> to vector<12x256xf32>
    %321 = arith.mulf %319, %320 : vector<12x256xf32>
    %322 = arith.addf %309, %321 : vector<12x256xf32>
    %c1_165 = arith.constant 1 : index
    %c0_166 = arith.constant 0 : index
    %c96_167 = arith.constant 96 : index
    %323 = vector.load %arg13[%c1_165, %c0_166, %c96_167] : memref<2x12x418xf32, #tpu.memory_space<vmem>>, vector<1x12x256xf32>
    %324 = vector.shape_cast %323 : vector<1x12x256xf32> to vector<12x256xf32>
    %325 = vector.extract_strided_slice %306 {offsets = [0, 1], sizes = [12, 1], strides = [1, 1]} : vector<12x9xf32> to vector<12x1xf32>
    %326 = vector.broadcast %325 : vector<12x1xf32> to vector<12x256xf32>
    %327 = arith.mulf %324, %326 : vector<12x256xf32>
    %328 = arith.addf %322, %327 : vector<12x256xf32>
    %c1_168 = arith.constant 1 : index
    %c0_169 = arith.constant 0 : index
    %c98_170 = arith.constant 98 : index
    %329 = vector.load %arg13[%c1_168, %c0_169, %c98_170] : memref<2x12x418xf32, #tpu.memory_space<vmem>>, vector<1x12x256xf32>
    %330 = vector.shape_cast %329 : vector<1x12x256xf32> to vector<12x256xf32>
    %331 = vector.extract_strided_slice %306 {offsets = [0, 2], sizes = [12, 1], strides = [1, 1]} : vector<12x9xf32> to vector<12x1xf32>
    %332 = vector.broadcast %331 : vector<12x1xf32> to vector<12x256xf32>
    %333 = arith.mulf %330, %332 : vector<12x256xf32>
    %334 = vector.broadcast %314 : vector<1x256xf32> to vector<12x256xf32>
    %335 = arith.mulf %333, %334 : vector<12x256xf32>
    %336 = arith.addf %328, %335 : vector<12x256xf32>
    %c1_171 = arith.constant 1 : index
    %c0_172 = arith.constant 0 : index
    %c126_173 = arith.constant 126 : index
    %337 = vector.load %arg13[%c1_171, %c0_172, %c126_173] : memref<2x12x418xf32, #tpu.memory_space<vmem>>, vector<1x12x256xf32>
    %338 = vector.shape_cast %337 : vector<1x12x256xf32> to vector<12x256xf32>
    %339 = vector.extract_strided_slice %306 {offsets = [0, 3], sizes = [12, 1], strides = [1, 1]} : vector<12x9xf32> to vector<12x1xf32>
    %340 = vector.broadcast %339 : vector<12x1xf32> to vector<12x256xf32>
    %341 = arith.mulf %338, %340 : vector<12x256xf32>
    %342 = vector.broadcast %313 : vector<1x256xf32> to vector<12x256xf32>
    %343 = arith.mulf %341, %342 : vector<12x256xf32>
    %344 = arith.addf %336, %343 : vector<12x256xf32>
    %c1_174 = arith.constant 1 : index
    %c0_175 = arith.constant 0 : index
    %c130_176 = arith.constant 130 : index
    %345 = vector.load %arg13[%c1_174, %c0_175, %c130_176] : memref<2x12x418xf32, #tpu.memory_space<vmem>>, vector<1x12x256xf32>
    %346 = vector.shape_cast %345 : vector<1x12x256xf32> to vector<12x256xf32>
    %347 = vector.extract_strided_slice %306 {offsets = [0, 5], sizes = [12, 1], strides = [1, 1]} : vector<12x9xf32> to vector<12x1xf32>
    %348 = vector.broadcast %347 : vector<12x1xf32> to vector<12x256xf32>
    %349 = arith.mulf %346, %348 : vector<12x256xf32>
    %350 = vector.broadcast %314 : vector<1x256xf32> to vector<12x256xf32>
    %351 = arith.mulf %349, %350 : vector<12x256xf32>
    %352 = arith.addf %344, %351 : vector<12x256xf32>
    %c1_177 = arith.constant 1 : index
    %c0_178 = arith.constant 0 : index
    %c158_179 = arith.constant 158 : index
    %353 = vector.load %arg13[%c1_177, %c0_178, %c158_179] : memref<2x12x418xf32, #tpu.memory_space<vmem>>, vector<1x12x256xf32>
    %354 = vector.shape_cast %353 : vector<1x12x256xf32> to vector<12x256xf32>
    %355 = vector.extract_strided_slice %306 {offsets = [0, 6], sizes = [12, 1], strides = [1, 1]} : vector<12x9xf32> to vector<12x1xf32>
    %356 = vector.broadcast %355 : vector<12x1xf32> to vector<12x256xf32>
    %357 = arith.mulf %354, %356 : vector<12x256xf32>
    %358 = vector.broadcast %313 : vector<1x256xf32> to vector<12x256xf32>
    %359 = arith.mulf %357, %358 : vector<12x256xf32>
    %360 = arith.addf %352, %359 : vector<12x256xf32>
    %c1_180 = arith.constant 1 : index
    %c0_181 = arith.constant 0 : index
    %c160_182 = arith.constant 160 : index
    %361 = vector.load %arg13[%c1_180, %c0_181, %c160_182] : memref<2x12x418xf32, #tpu.memory_space<vmem>>, vector<1x12x256xf32>
    %362 = vector.shape_cast %361 : vector<1x12x256xf32> to vector<12x256xf32>
    %363 = vector.extract_strided_slice %306 {offsets = [0, 7], sizes = [12, 1], strides = [1, 1]} : vector<12x9xf32> to vector<12x1xf32>
    %364 = vector.broadcast %363 : vector<12x1xf32> to vector<12x256xf32>
    %365 = arith.mulf %362, %364 : vector<12x256xf32>
    %366 = arith.addf %360, %365 : vector<12x256xf32>
    %c1_183 = arith.constant 1 : index
    %c0_184 = arith.constant 0 : index
    %c162_185 = arith.constant 162 : index
    %367 = vector.load %arg13[%c1_183, %c0_184, %c162_185] : memref<2x12x418xf32, #tpu.memory_space<vmem>>, vector<1x12x256xf32>
    %368 = vector.shape_cast %367 : vector<1x12x256xf32> to vector<12x256xf32>
    %369 = vector.extract_strided_slice %306 {offsets = [0, 8], sizes = [12, 1], strides = [1, 1]} : vector<12x9xf32> to vector<12x1xf32>
    %370 = vector.broadcast %369 : vector<12x1xf32> to vector<12x256xf32>
    %371 = arith.mulf %368, %370 : vector<12x256xf32>
    %372 = vector.broadcast %314 : vector<1x256xf32> to vector<12x256xf32>
    %373 = arith.mulf %371, %372 : vector<12x256xf32>
    %374 = arith.addf %366, %373 : vector<12x256xf32>
    %c3_186 = arith.constant 3 : index
    %c0_187 = arith.constant 0 : index
    %c0_188 = arith.constant 0 : index
    %375 = vector.load %arg7[%c3_186, %c0_187, %c0_188] : memref<6x6x12xf32, #tpu.memory_space<vmem>>, vector<1x6x12xf32>
    %376 = vector.shape_cast %375 : vector<1x6x12xf32> to vector<6x12xf32>
    %cst_189 = arith.constant dense<0.000000e+00> : vector<6x256xf32>
    %377 = tpu.matmul %376, %374, %cst_189 {dimension_numbers = #tpu.dot_dimension_numbers<[1], [0], [0], [1], [0, 0, 1, 1], [], []>} : vector<6x12xf32>, vector<12x256xf32>, vector<6x256xf32> -> vector<6x256xf32>
    %c3_190 = arith.constant 3 : index
    %c0_191 = arith.constant 0 : index
    %c0_192 = arith.constant 0 : index
    %378 = vector.load %arg8[%c3_190, %c0_191, %c0_192] : memref<6x6x1xf32, #tpu.memory_space<vmem>>, vector<1x6x1xf32>
    %379 = vector.shape_cast %378 : vector<1x6x1xf32> to vector<6x1xf32>
    %380 = vector.broadcast %379 : vector<6x1xf32> to vector<6x256xf32>
    %381 = arith.addf %377, %380 : vector<6x256xf32>
    %cst_193 = arith.constant 2.000000e-01 : f32
    %382 = vector.broadcast %cst_193 : f32 to vector<6x256xf32>
    %383 = arith.mulf %382, %381 : vector<6x256xf32>
    %384 = arith.maximumf %381, %383 : vector<6x256xf32>
    %c4 = arith.constant 4 : index
    %c0_194 = arith.constant 0 : index
    %c0_195 = arith.constant 0 : index
    %385 = vector.load %arg3[%c4, %c0_194, %c0_195] : memref<6x12x6xf32, #tpu.memory_space<vmem>>, vector<1x12x6xf32>
    %386 = vector.shape_cast %385 : vector<1x12x6xf32> to vector<12x6xf32>
    %cst_196 = arith.constant dense<0.000000e+00> : vector<12x256xf32>
    %387 = tpu.matmul %386, %293, %cst_196 {dimension_numbers = #tpu.dot_dimension_numbers<[1], [0], [0], [1], [0, 0, 1, 1], [], []>} : vector<12x6xf32>, vector<6x256xf32>, vector<12x256xf32> -> vector<12x256xf32>
    %c4_197 = arith.constant 4 : index
    %c0_198 = arith.constant 0 : index
    %c0_199 = arith.constant 0 : index
    %388 = vector.load %arg4[%c4_197, %c0_198, %c0_199] : memref<6x12x6xf32, #tpu.memory_space<vmem>>, vector<1x12x6xf32>
    %389 = vector.shape_cast %388 : vector<1x12x6xf32> to vector<12x6xf32>
    %cst_200 = arith.constant dense<0.000000e+00> : vector<12x256xf32>
    %390 = tpu.matmul %389, %384, %cst_200 {dimension_numbers = #tpu.dot_dimension_numbers<[1], [0], [0], [1], [0, 0, 1, 1], [], []>} : vector<12x6xf32>, vector<6x256xf32>, vector<12x256xf32> -> vector<12x256xf32>
    %391 = arith.addf %387, %390 : vector<12x256xf32>
    %c4_201 = arith.constant 4 : index
    %c0_202 = arith.constant 0 : index
    %c0_203 = arith.constant 0 : index
    %392 = vector.load %arg5[%c4_201, %c0_202, %c0_203] : memref<6x12x1xf32, #tpu.memory_space<vmem>>, vector<1x12x1xf32>
    %393 = vector.shape_cast %392 : vector<1x12x1xf32> to vector<12x1xf32>
    %394 = vector.broadcast %393 : vector<12x1xf32> to vector<12x256xf32>
    %395 = arith.addf %391, %394 : vector<12x256xf32>
    %c4_204 = arith.constant 4 : index
    %c0_205 = arith.constant 0 : index
    %c0_206 = arith.constant 0 : index
    %396 = vector.load %arg6[%c4_204, %c0_205, %c0_206] : memref<6x12x9xf32, #tpu.memory_space<vmem>>, vector<1x12x9xf32>
    %397 = vector.shape_cast %396 : vector<1x12x9xf32> to vector<12x9xf32>
    %398 = vector.extract_strided_slice %397 {offsets = [0, 4], sizes = [12, 1], strides = [1, 1]} : vector<12x9xf32> to vector<12x1xf32>
    %399 = vector.broadcast %398 : vector<12x1xf32> to vector<12x256xf32>
    %400 = arith.mulf %395, %399 : vector<12x256xf32>
    %c0_207 = arith.constant 0 : index
    %c0_208 = arith.constant 0 : index
    %c128_209 = arith.constant 128 : index
    %401 = vector.load %arg13[%c0_207, %c0_208, %c128_209] : memref<2x12x418xf32, #tpu.memory_space<vmem>>, vector<1x12x256xf32>
    %402 = vector.shape_cast %401 : vector<1x12x256xf32> to vector<12x256xf32>
    %403 = vector.shape_cast %395 : vector<12x256xf32> to vector<1x12x256xf32>
    tpu.vector_store %arg13[%c0_207, %c0_208, %c128_209], %403 {strides = array<i32>} : memref<2x12x418xf32, #tpu.memory_space<vmem>>, vector<1x12x256xf32>,
    %404 = vector.extract_strided_slice %2 {offsets = [0, 0], sizes = [1, 256], strides = [1, 1]} : vector<4x256xf32> to vector<1x256xf32>
    %405 = vector.extract_strided_slice %2 {offsets = [1, 0], sizes = [1, 256], strides = [1, 1]} : vector<4x256xf32> to vector<1x256xf32>
    %c0_210 = arith.constant 0 : index
    %c0_211 = arith.constant 0 : index
    %c111_212 = arith.constant 111 : index
    %406 = vector.load %arg13[%c0_210, %c0_211, %c111_212] : memref<2x12x418xf32, #tpu.memory_space<vmem>>, vector<1x12x256xf32>
    %407 = vector.shape_cast %406 : vector<1x12x256xf32> to vector<12x256xf32>
    %408 = vector.extract_strided_slice %397 {offsets = [0, 0], sizes = [12, 1], strides = [1, 1]} : vector<12x9xf32> to vector<12x1xf32>
    %409 = vector.broadcast %408 : vector<12x1xf32> to vector<12x256xf32>
    %410 = arith.mulf %407, %409 : vector<12x256xf32>
    %411 = vector.broadcast %404 : vector<1x256xf32> to vector<12x256xf32>
    %412 = arith.mulf %410, %411 : vector<12x256xf32>
    %413 = arith.addf %400, %412 : vector<12x256xf32>
    %c0_213 = arith.constant 0 : index
    %c0_214 = arith.constant 0 : index
    %c112_215 = arith.constant 112 : index
    %414 = vector.load %arg13[%c0_213, %c0_214, %c112_215] : memref<2x12x418xf32, #tpu.memory_space<vmem>>, vector<1x12x256xf32>
    %415 = vector.shape_cast %414 : vector<1x12x256xf32> to vector<12x256xf32>
    %416 = vector.extract_strided_slice %397 {offsets = [0, 1], sizes = [12, 1], strides = [1, 1]} : vector<12x9xf32> to vector<12x1xf32>
    %417 = vector.broadcast %416 : vector<12x1xf32> to vector<12x256xf32>
    %418 = arith.mulf %415, %417 : vector<12x256xf32>
    %419 = arith.addf %413, %418 : vector<12x256xf32>
    %c0_216 = arith.constant 0 : index
    %c0_217 = arith.constant 0 : index
    %c113_218 = arith.constant 113 : index
    %420 = vector.load %arg13[%c0_216, %c0_217, %c113_218] : memref<2x12x418xf32, #tpu.memory_space<vmem>>, vector<1x12x256xf32>
    %421 = vector.shape_cast %420 : vector<1x12x256xf32> to vector<12x256xf32>
    %422 = vector.extract_strided_slice %397 {offsets = [0, 2], sizes = [12, 1], strides = [1, 1]} : vector<12x9xf32> to vector<12x1xf32>
    %423 = vector.broadcast %422 : vector<12x1xf32> to vector<12x256xf32>
    %424 = arith.mulf %421, %423 : vector<12x256xf32>
    %425 = vector.broadcast %405 : vector<1x256xf32> to vector<12x256xf32>
    %426 = arith.mulf %424, %425 : vector<12x256xf32>
    %427 = arith.addf %419, %426 : vector<12x256xf32>
    %c0_219 = arith.constant 0 : index
    %c0_220 = arith.constant 0 : index
    %c127_221 = arith.constant 127 : index
    %428 = vector.load %arg13[%c0_219, %c0_220, %c127_221] : memref<2x12x418xf32, #tpu.memory_space<vmem>>, vector<1x12x256xf32>
    %429 = vector.shape_cast %428 : vector<1x12x256xf32> to vector<12x256xf32>
    %430 = vector.extract_strided_slice %397 {offsets = [0, 3], sizes = [12, 1], strides = [1, 1]} : vector<12x9xf32> to vector<12x1xf32>
    %431 = vector.broadcast %430 : vector<12x1xf32> to vector<12x256xf32>
    %432 = arith.mulf %429, %431 : vector<12x256xf32>
    %433 = vector.broadcast %404 : vector<1x256xf32> to vector<12x256xf32>
    %434 = arith.mulf %432, %433 : vector<12x256xf32>
    %435 = arith.addf %427, %434 : vector<12x256xf32>
    %c0_222 = arith.constant 0 : index
    %c0_223 = arith.constant 0 : index
    %c129_224 = arith.constant 129 : index
    %436 = vector.load %arg13[%c0_222, %c0_223, %c129_224] : memref<2x12x418xf32, #tpu.memory_space<vmem>>, vector<1x12x256xf32>
    %437 = vector.shape_cast %436 : vector<1x12x256xf32> to vector<12x256xf32>
    %438 = vector.extract_strided_slice %397 {offsets = [0, 5], sizes = [12, 1], strides = [1, 1]} : vector<12x9xf32> to vector<12x1xf32>
    %439 = vector.broadcast %438 : vector<12x1xf32> to vector<12x256xf32>
    %440 = arith.mulf %437, %439 : vector<12x256xf32>
    %441 = vector.broadcast %405 : vector<1x256xf32> to vector<12x256xf32>
    %442 = arith.mulf %440, %441 : vector<12x256xf32>
    %443 = arith.addf %435, %442 : vector<12x256xf32>
    %c0_225 = arith.constant 0 : index
    %c0_226 = arith.constant 0 : index
    %c143_227 = arith.constant 143 : index
    %444 = vector.load %arg13[%c0_225, %c0_226, %c143_227] : memref<2x12x418xf32, #tpu.memory_space<vmem>>, vector<1x12x256xf32>
    %445 = vector.shape_cast %444 : vector<1x12x256xf32> to vector<12x256xf32>
    %446 = vector.extract_strided_slice %397 {offsets = [0, 6], sizes = [12, 1], strides = [1, 1]} : vector<12x9xf32> to vector<12x1xf32>
    %447 = vector.broadcast %446 : vector<12x1xf32> to vector<12x256xf32>
    %448 = arith.mulf %445, %447 : vector<12x256xf32>
    %449 = vector.broadcast %404 : vector<1x256xf32> to vector<12x256xf32>
    %450 = arith.mulf %448, %449 : vector<12x256xf32>
    %451 = arith.addf %443, %450 : vector<12x256xf32>
    %c0_228 = arith.constant 0 : index
    %c0_229 = arith.constant 0 : index
    %c144_230 = arith.constant 144 : index
    %452 = vector.load %arg13[%c0_228, %c0_229, %c144_230] : memref<2x12x418xf32, #tpu.memory_space<vmem>>, vector<1x12x256xf32>
    %453 = vector.shape_cast %452 : vector<1x12x256xf32> to vector<12x256xf32>
    %454 = vector.extract_strided_slice %397 {offsets = [0, 7], sizes = [12, 1], strides = [1, 1]} : vector<12x9xf32> to vector<12x1xf32>
    %455 = vector.broadcast %454 : vector<12x1xf32> to vector<12x256xf32>
    %456 = arith.mulf %453, %455 : vector<12x256xf32>
    %457 = arith.addf %451, %456 : vector<12x256xf32>
    %c0_231 = arith.constant 0 : index
    %c0_232 = arith.constant 0 : index
    %c145_233 = arith.constant 145 : index
    %458 = vector.load %arg13[%c0_231, %c0_232, %c145_233] : memref<2x12x418xf32, #tpu.memory_space<vmem>>, vector<1x12x256xf32>
    %459 = vector.shape_cast %458 : vector<1x12x256xf32> to vector<12x256xf32>
    %460 = vector.extract_strided_slice %397 {offsets = [0, 8], sizes = [12, 1], strides = [1, 1]} : vector<12x9xf32> to vector<12x1xf32>
    %461 = vector.broadcast %460 : vector<12x1xf32> to vector<12x256xf32>
    %462 = arith.mulf %459, %461 : vector<12x256xf32>
    %463 = vector.broadcast %405 : vector<1x256xf32> to vector<12x256xf32>
    %464 = arith.mulf %462, %463 : vector<12x256xf32>
    %465 = arith.addf %457, %464 : vector<12x256xf32>
    %c4_234 = arith.constant 4 : index
    %c0_235 = arith.constant 0 : index
    %c0_236 = arith.constant 0 : index
    %466 = vector.load %arg7[%c4_234, %c0_235, %c0_236] : memref<6x6x12xf32, #tpu.memory_space<vmem>>, vector<1x6x12xf32>
    %467 = vector.shape_cast %466 : vector<1x6x12xf32> to vector<6x12xf32>
    %cst_237 = arith.constant dense<0.000000e+00> : vector<6x256xf32>
    %468 = tpu.matmul %467, %465, %cst_237 {dimension_numbers = #tpu.dot_dimension_numbers<[1], [0], [0], [1], [0, 0, 1, 1], [], []>} : vector<6x12xf32>, vector<12x256xf32>, vector<6x256xf32> -> vector<6x256xf32>
    %c4_238 = arith.constant 4 : index
    %c0_239 = arith.constant 0 : index
    %c0_240 = arith.constant 0 : index
    %469 = vector.load %arg8[%c4_238, %c0_239, %c0_240] : memref<6x6x1xf32, #tpu.memory_space<vmem>>, vector<1x6x1xf32>
    %470 = vector.shape_cast %469 : vector<1x6x1xf32> to vector<6x1xf32>
    %471 = vector.broadcast %470 : vector<6x1xf32> to vector<6x256xf32>
    %472 = arith.addf %468, %471 : vector<6x256xf32>
    %cst_241 = arith.constant 2.000000e-01 : f32
    %473 = vector.broadcast %cst_241 : f32 to vector<6x256xf32>
    %474 = arith.mulf %473, %472 : vector<6x256xf32>
    %475 = arith.maximumf %472, %474 : vector<6x256xf32>
    %c5 = arith.constant 5 : index
    %c0_242 = arith.constant 0 : index
    %c0_243 = arith.constant 0 : index
    %476 = vector.load %arg3[%c5, %c0_242, %c0_243] : memref<6x12x6xf32, #tpu.memory_space<vmem>>, vector<1x12x6xf32>
    %477 = vector.shape_cast %476 : vector<1x12x6xf32> to vector<12x6xf32>
    %cst_244 = arith.constant dense<0.000000e+00> : vector<12x256xf32>
    %478 = tpu.matmul %477, %293, %cst_244 {dimension_numbers = #tpu.dot_dimension_numbers<[1], [0], [0], [1], [0, 0, 1, 1], [], []>} : vector<12x6xf32>, vector<6x256xf32>, vector<12x256xf32> -> vector<12x256xf32>
    %c5_245 = arith.constant 5 : index
    %c0_246 = arith.constant 0 : index
    %c0_247 = arith.constant 0 : index
    %479 = vector.load %arg4[%c5_245, %c0_246, %c0_247] : memref<6x12x6xf32, #tpu.memory_space<vmem>>, vector<1x12x6xf32>
    %480 = vector.shape_cast %479 : vector<1x12x6xf32> to vector<12x6xf32>
    %cst_248 = arith.constant dense<0.000000e+00> : vector<12x256xf32>
    %481 = tpu.matmul %480, %384, %cst_248 {dimension_numbers = #tpu.dot_dimension_numbers<[1], [0], [0], [1], [0, 0, 1, 1], [], []>} : vector<12x6xf32>, vector<6x256xf32>, vector<12x256xf32> -> vector<12x256xf32>
    %482 = arith.addf %478, %481 : vector<12x256xf32>
    %c5_249 = arith.constant 5 : index
    %c0_250 = arith.constant 0 : index
    %c0_251 = arith.constant 0 : index
    %483 = vector.load %arg5[%c5_249, %c0_250, %c0_251] : memref<6x12x1xf32, #tpu.memory_space<vmem>>, vector<1x12x1xf32>
    %484 = vector.shape_cast %483 : vector<1x12x1xf32> to vector<12x1xf32>
    %485 = vector.broadcast %484 : vector<12x1xf32> to vector<12x256xf32>
    %486 = arith.addf %482, %485 : vector<12x256xf32>
    %c5_252 = arith.constant 5 : index
    %c0_253 = arith.constant 0 : index
    %c0_254 = arith.constant 0 : index
    %487 = vector.load %arg6[%c5_252, %c0_253, %c0_254] : memref<6x12x9xf32, #tpu.memory_space<vmem>>, vector<1x12x9xf32>
    %488 = vector.shape_cast %487 : vector<1x12x9xf32> to vector<12x9xf32>
    %489 = vector.extract_strided_slice %488 {offsets = [0, 4], sizes = [12, 1], strides = [1, 1]} : vector<12x9xf32> to vector<12x1xf32>
    %490 = vector.broadcast %489 : vector<12x1xf32> to vector<12x256xf32>
    %491 = arith.mulf %486, %490 : vector<12x256xf32>
    %c1_255 = arith.constant 1 : index
    %c0_256 = arith.constant 0 : index
    %c128_257 = arith.constant 128 : index
    %492 = vector.load %arg13[%c1_255, %c0_256, %c128_257] : memref<2x12x418xf32, #tpu.memory_space<vmem>>, vector<1x12x256xf32>
    %493 = vector.shape_cast %492 : vector<1x12x256xf32> to vector<12x256xf32>
    %494 = vector.shape_cast %486 : vector<12x256xf32> to vector<1x12x256xf32>
    tpu.vector_store %arg13[%c1_255, %c0_256, %c128_257], %494 {strides = array<i32>} : memref<2x12x418xf32, #tpu.memory_space<vmem>>, vector<1x12x256xf32>,
    %495 = vector.extract_strided_slice %2 {offsets = [2, 0], sizes = [1, 256], strides = [1, 1]} : vector<4x256xf32> to vector<1x256xf32>
    %496 = vector.extract_strided_slice %2 {offsets = [3, 0], sizes = [1, 256], strides = [1, 1]} : vector<4x256xf32> to vector<1x256xf32>
    %c1_258 = arith.constant 1 : index
    %c0_259 = arith.constant 0 : index
    %c94_260 = arith.constant 94 : index
    %497 = vector.load %arg13[%c1_258, %c0_259, %c94_260] : memref<2x12x418xf32, #tpu.memory_space<vmem>>, vector<1x12x256xf32>
    %498 = vector.shape_cast %497 : vector<1x12x256xf32> to vector<12x256xf32>
    %499 = vector.extract_strided_slice %488 {offsets = [0, 0], sizes = [12, 1], strides = [1, 1]} : vector<12x9xf32> to vector<12x1xf32>
    %500 = vector.broadcast %499 : vector<12x1xf32> to vector<12x256xf32>
    %501 = arith.mulf %498, %500 : vector<12x256xf32>
    %502 = vector.broadcast %495 : vector<1x256xf32> to vector<12x256xf32>
    %503 = arith.mulf %501, %502 : vector<12x256xf32>
    %504 = arith.addf %491, %503 : vector<12x256xf32>
    %c1_261 = arith.constant 1 : index
    %c0_262 = arith.constant 0 : index
    %c96_263 = arith.constant 96 : index
    %505 = vector.load %arg13[%c1_261, %c0_262, %c96_263] : memref<2x12x418xf32, #tpu.memory_space<vmem>>, vector<1x12x256xf32>
    %506 = vector.shape_cast %505 : vector<1x12x256xf32> to vector<12x256xf32>
    %507 = vector.extract_strided_slice %488 {offsets = [0, 1], sizes = [12, 1], strides = [1, 1]} : vector<12x9xf32> to vector<12x1xf32>
    %508 = vector.broadcast %507 : vector<12x1xf32> to vector<12x256xf32>
    %509 = arith.mulf %506, %508 : vector<12x256xf32>
    %510 = arith.addf %504, %509 : vector<12x256xf32>
    %c1_264 = arith.constant 1 : index
    %c0_265 = arith.constant 0 : index
    %c98_266 = arith.constant 98 : index
    %511 = vector.load %arg13[%c1_264, %c0_265, %c98_266] : memref<2x12x418xf32, #tpu.memory_space<vmem>>, vector<1x12x256xf32>
    %512 = vector.shape_cast %511 : vector<1x12x256xf32> to vector<12x256xf32>
    %513 = vector.extract_strided_slice %488 {offsets = [0, 2], sizes = [12, 1], strides = [1, 1]} : vector<12x9xf32> to vector<12x1xf32>
    %514 = vector.broadcast %513 : vector<12x1xf32> to vector<12x256xf32>
    %515 = arith.mulf %512, %514 : vector<12x256xf32>
    %516 = vector.broadcast %496 : vector<1x256xf32> to vector<12x256xf32>
    %517 = arith.mulf %515, %516 : vector<12x256xf32>
    %518 = arith.addf %510, %517 : vector<12x256xf32>
    %c1_267 = arith.constant 1 : index
    %c0_268 = arith.constant 0 : index
    %c126_269 = arith.constant 126 : index
    %519 = vector.load %arg13[%c1_267, %c0_268, %c126_269] : memref<2x12x418xf32, #tpu.memory_space<vmem>>, vector<1x12x256xf32>
    %520 = vector.shape_cast %519 : vector<1x12x256xf32> to vector<12x256xf32>
    %521 = vector.extract_strided_slice %488 {offsets = [0, 3], sizes = [12, 1], strides = [1, 1]} : vector<12x9xf32> to vector<12x1xf32>
    %522 = vector.broadcast %521 : vector<12x1xf32> to vector<12x256xf32>
    %523 = arith.mulf %520, %522 : vector<12x256xf32>
    %524 = vector.broadcast %495 : vector<1x256xf32> to vector<12x256xf32>
    %525 = arith.mulf %523, %524 : vector<12x256xf32>
    %526 = arith.addf %518, %525 : vector<12x256xf32>
    %c1_270 = arith.constant 1 : index
    %c0_271 = arith.constant 0 : index
    %c130_272 = arith.constant 130 : index
    %527 = vector.load %arg13[%c1_270, %c0_271, %c130_272] : memref<2x12x418xf32, #tpu.memory_space<vmem>>, vector<1x12x256xf32>
    %528 = vector.shape_cast %527 : vector<1x12x256xf32> to vector<12x256xf32>
    %529 = vector.extract_strided_slice %488 {offsets = [0, 5], sizes = [12, 1], strides = [1, 1]} : vector<12x9xf32> to vector<12x1xf32>
    %530 = vector.broadcast %529 : vector<12x1xf32> to vector<12x256xf32>
    %531 = arith.mulf %528, %530 : vector<12x256xf32>
    %532 = vector.broadcast %496 : vector<1x256xf32> to vector<12x256xf32>
    %533 = arith.mulf %531, %532 : vector<12x256xf32>
    %534 = arith.addf %526, %533 : vector<12x256xf32>
    %c1_273 = arith.constant 1 : index
    %c0_274 = arith.constant 0 : index
    %c158_275 = arith.constant 158 : index
    %535 = vector.load %arg13[%c1_273, %c0_274, %c158_275] : memref<2x12x418xf32, #tpu.memory_space<vmem>>, vector<1x12x256xf32>
    %536 = vector.shape_cast %535 : vector<1x12x256xf32> to vector<12x256xf32>
    %537 = vector.extract_strided_slice %488 {offsets = [0, 6], sizes = [12, 1], strides = [1, 1]} : vector<12x9xf32> to vector<12x1xf32>
    %538 = vector.broadcast %537 : vector<12x1xf32> to vector<12x256xf32>
    %539 = arith.mulf %536, %538 : vector<12x256xf32>
    %540 = vector.broadcast %495 : vector<1x256xf32> to vector<12x256xf32>
    %541 = arith.mulf %539, %540 : vector<12x256xf32>
    %542 = arith.addf %534, %541 : vector<12x256xf32>
    %c1_276 = arith.constant 1 : index
    %c0_277 = arith.constant 0 : index
    %c160_278 = arith.constant 160 : index
    %543 = vector.load %arg13[%c1_276, %c0_277, %c160_278] : memref<2x12x418xf32, #tpu.memory_space<vmem>>, vector<1x12x256xf32>
    %544 = vector.shape_cast %543 : vector<1x12x256xf32> to vector<12x256xf32>
    %545 = vector.extract_strided_slice %488 {offsets = [0, 7], sizes = [12, 1], strides = [1, 1]} : vector<12x9xf32> to vector<12x1xf32>
    %546 = vector.broadcast %545 : vector<12x1xf32> to vector<12x256xf32>
    %547 = arith.mulf %544, %546 : vector<12x256xf32>
    %548 = arith.addf %542, %547 : vector<12x256xf32>
    %c1_279 = arith.constant 1 : index
    %c0_280 = arith.constant 0 : index
    %c162_281 = arith.constant 162 : index
    %549 = vector.load %arg13[%c1_279, %c0_280, %c162_281] : memref<2x12x418xf32, #tpu.memory_space<vmem>>, vector<1x12x256xf32>
    %550 = vector.shape_cast %549 : vector<1x12x256xf32> to vector<12x256xf32>
    %551 = vector.extract_strided_slice %488 {offsets = [0, 8], sizes = [12, 1], strides = [1, 1]} : vector<12x9xf32> to vector<12x1xf32>
    %552 = vector.broadcast %551 : vector<12x1xf32> to vector<12x256xf32>
    %553 = arith.mulf %550, %552 : vector<12x256xf32>
    %554 = vector.broadcast %496 : vector<1x256xf32> to vector<12x256xf32>
    %555 = arith.mulf %553, %554 : vector<12x256xf32>
    %556 = arith.addf %548, %555 : vector<12x256xf32>
    %c5_282 = arith.constant 5 : index
    %c0_283 = arith.constant 0 : index
    %c0_284 = arith.constant 0 : index
    %557 = vector.load %arg7[%c5_282, %c0_283, %c0_284] : memref<6x6x12xf32, #tpu.memory_space<vmem>>, vector<1x6x12xf32>
    %558 = vector.shape_cast %557 : vector<1x6x12xf32> to vector<6x12xf32>
    %cst_285 = arith.constant dense<0.000000e+00> : vector<6x256xf32>
    %559 = tpu.matmul %558, %556, %cst_285 {dimension_numbers = #tpu.dot_dimension_numbers<[1], [0], [0], [1], [0, 0, 1, 1], [], []>} : vector<6x12xf32>, vector<12x256xf32>, vector<6x256xf32> -> vector<6x256xf32>
    %c5_286 = arith.constant 5 : index
    %c0_287 = arith.constant 0 : index
    %c0_288 = arith.constant 0 : index
    %560 = vector.load %arg8[%c5_286, %c0_287, %c0_288] : memref<6x6x1xf32, #tpu.memory_space<vmem>>, vector<1x6x1xf32>
    %561 = vector.shape_cast %560 : vector<1x6x1xf32> to vector<6x1xf32>
    %562 = vector.broadcast %561 : vector<6x1xf32> to vector<6x256xf32>
    %563 = arith.addf %559, %562 : vector<6x256xf32>
    %cst_289 = arith.constant 2.000000e-01 : f32
    %564 = vector.broadcast %cst_289 : f32 to vector<6x256xf32>
    %565 = arith.mulf %564, %563 : vector<6x256xf32>
    %566 = arith.maximumf %563, %565 : vector<6x256xf32>
    %c0_290 = arith.constant 0 : index
    %c0_291 = arith.constant 0 : index
    %567 = vector.load %arg9[%c0_290, %c0_291] : memref<12x6xf32, #tpu.memory_space<vmem>>, vector<12x6xf32>
    %cst_292 = arith.constant dense<0.000000e+00> : vector<12x256xf32>
    %568 = tpu.matmul %567, %475, %cst_292 {dimension_numbers = #tpu.dot_dimension_numbers<[1], [0], [0], [1], [0, 0, 1, 1], [], []>} : vector<12x6xf32>, vector<6x256xf32>, vector<12x256xf32> -> vector<12x256xf32>
    %c0_293 = arith.constant 0 : index
    %c0_294 = arith.constant 0 : index
    %569 = vector.load %arg10[%c0_293, %c0_294] : memref<12x6xf32, #tpu.memory_space<vmem>>, vector<12x6xf32>
    %cst_295 = arith.constant dense<0.000000e+00> : vector<12x256xf32>
    %570 = tpu.matmul %569, %566, %cst_295 {dimension_numbers = #tpu.dot_dimension_numbers<[1], [0], [0], [1], [0, 0, 1, 1], [], []>} : vector<12x6xf32>, vector<6x256xf32>, vector<12x256xf32> -> vector<12x256xf32>
    %571 = arith.addf %568, %570 : vector<12x256xf32>
    %c0_296 = arith.constant 0 : index
    %c0_297 = arith.constant 0 : index
    %572 = vector.load %arg11[%c0_296, %c0_297] : memref<12x1xf32, #tpu.memory_space<vmem>>, vector<12x1xf32>
    %573 = vector.broadcast %572 : vector<12x1xf32> to vector<12x256xf32>
    %574 = arith.addf %571, %573 : vector<12x256xf32>
    %575 = arith.addf %574, %1 : vector<12x256xf32>
    %c0_298 = arith.constant 0 : index
    %c0_299 = arith.constant 0 : index
    %c0_300 = arith.constant 0 : index
    %576 = vector.load %arg12[%c0_298, %c0_299, %c0_300] : memref<1x12x256xf32, #tpu.memory_space<vmem>>, vector<1x12x256xf32>
    %577 = vector.shape_cast %576 : vector<1x12x256xf32> to vector<12x256xf32>
    %578 = vector.shape_cast %575 : vector<12x256xf32> to vector<1x12x256xf32>
    tpu.vector_store %arg12[%c0_298, %c0_299, %c0_300], %578 {strides = array<i32>} : memref<1x12x256xf32, #tpu.memory_space<vmem>>, vector<1x12x256xf32>,
    return
  }
  func.func @transform_0(%arg0: i32) -> (i32, i32, i32) {
    %c0_i32 = arith.constant 0 : i32
    %c0_i32_0 = arith.constant 0 : i32
    %c0_i32_1 = arith.constant 0 : i32
    return %arg0, %c0_i32, %c0_i32_0 : i32, i32, i32
  }
  func.func @transform_1(%arg0: i32) -> (i32, i32) {
    %c0_i32 = arith.constant 0 : i32
    %c0_i32_0 = arith.constant 0 : i32
    %c0_i32_1 = arith.constant 0 : i32
    return %c0_i32, %c0_i32_0 : i32, i32
  }
  func.func @transform_2(%arg0: i32) -> (i32, i32, i32) {
    %c0_i32 = arith.constant 0 : i32
    %c0_i32_0 = arith.constant 0 : i32
    %c0_i32_1 = arith.constant 0 : i32
    %c0_i32_2 = arith.constant 0 : i32
    return %c0_i32, %c0_i32_0, %c0_i32_1 : i32, i32, i32
  }
  func.func @transform_3(%arg0: i32) -> (i32, i32, i32) {
    %c0_i32 = arith.constant 0 : i32
    %c0_i32_0 = arith.constant 0 : i32
    %c0_i32_1 = arith.constant 0 : i32
    %c0_i32_2 = arith.constant 0 : i32
    return %c0_i32, %c0_i32_0, %c0_i32_1 : i32, i32, i32
  }
  func.func @transform_4(%arg0: i32) -> (i32, i32, i32) {
    %c0_i32 = arith.constant 0 : i32
    %c0_i32_0 = arith.constant 0 : i32
    %c0_i32_1 = arith.constant 0 : i32
    %c0_i32_2 = arith.constant 0 : i32
    return %c0_i32, %c0_i32_0, %c0_i32_1 : i32, i32, i32
  }
  func.func @transform_5(%arg0: i32) -> (i32, i32, i32) {
    %c0_i32 = arith.constant 0 : i32
    %c0_i32_0 = arith.constant 0 : i32
    %c0_i32_1 = arith.constant 0 : i32
    %c0_i32_2 = arith.constant 0 : i32
    return %c0_i32, %c0_i32_0, %c0_i32_1 : i32, i32, i32
  }
  func.func @transform_6(%arg0: i32) -> (i32, i32, i32) {
    %c0_i32 = arith.constant 0 : i32
    %c0_i32_0 = arith.constant 0 : i32
    %c0_i32_1 = arith.constant 0 : i32
    %c0_i32_2 = arith.constant 0 : i32
    return %c0_i32, %c0_i32_0, %c0_i32_1 : i32, i32, i32
  }
  func.func @transform_7(%arg0: i32) -> (i32, i32, i32) {
    %c0_i32 = arith.constant 0 : i32
    %c0_i32_0 = arith.constant 0 : i32
    %c0_i32_1 = arith.constant 0 : i32
    %c0_i32_2 = arith.constant 0 : i32
    return %c0_i32, %c0_i32_0, %c0_i32_1 : i32, i32, i32
  }
  func.func @transform_8(%arg0: i32) -> (i32, i32) {
    %c0_i32 = arith.constant 0 : i32
    %c0_i32_0 = arith.constant 0 : i32
    %c0_i32_1 = arith.constant 0 : i32
    return %c0_i32, %c0_i32_0 : i32, i32
  }
  func.func @transform_9(%arg0: i32) -> (i32, i32) {
    %c0_i32 = arith.constant 0 : i32
    %c0_i32_0 = arith.constant 0 : i32
    %c0_i32_1 = arith.constant 0 : i32
    return %c0_i32, %c0_i32_0 : i32, i32
  }
  func.func @transform_10(%arg0: i32) -> (i32, i32) {
    %c0_i32 = arith.constant 0 : i32
    %c0_i32_0 = arith.constant 0 : i32
    %c0_i32_1 = arith.constant 0 : i32
    return %c0_i32, %c0_i32_0 : i32, i32
  }
  func.func @transform_11(%arg0: i32) -> (i32, i32, i32) {
    %c0_i32 = arith.constant 0 : i32
    %c0_i32_0 = arith.constant 0 : i32
    %c0_i32_1 = arith.constant 0 : i32
    return %arg0, %c0_i32, %c0_i32_0 : i32, i32, i32
  }
}

</mosaic_0001>

<bundles_post_ra>
// kernel: mirb2_forward.1
= control target key start
LH: loop header
LB: loop body
LE: loop exit
PB: predicated region body
PF: predicated region fallthrough
CT: control target
= control target key end

     0   :  { %s5544_s17 = smov 0   ;;  %s8174_s0 = inlined_call_operand.vmem [shape: f32[2,12,256], index: 0, kind: input, shape index: {}]   ;;  %s8175_s1 = inlined_call_operand.vmem [shape: f32[4,256], index: 1, kind: input, shape index: {}]   ;;  %s8176_s2 = inlined_call_operand.vmem [shape: f32[6,12,6], index: 2, kind: input, shape index: {}]   ;;  %s8177_s3 = inlined_call_operand.vmem [shape: f32[6,12,6], index: 3, kind: input, shape index: {}]   ;;  %s8178_s4 = inlined_call_operand.vmem [shape: f32[6,12,1], index: 4, kind: input, shape index: {}]   ;;  %s8179_s5 = inlined_call_operand.vmem [shape: f32[6,12,9], index: 5, kind: input, shape index: {}]   ;;  %s8180_s6 = inlined_call_operand.vmem [shape: f32[6,6,12], index: 6, kind: input, shape index: {}]   ;;  %s8181_s7 = inlined_call_operand.vmem [shape: f32[6,6,1], index: 7, kind: input, shape index: {}]   ;;  %s8182_s8 = inlined_call_operand.vmem [shape: f32[12,6], index: 8, kind: input, shape index: {}]   ;;  %s8183_s9 = inlined_call_operand.vmem [shape: f32[12,6], index: 9, kind: input, shape index: {}]   ;;  %s8184_s10 = inlined_call_operand.vmem [shape: f32[12,1], index: 10, kind: input, shape index: {}]   ;;  %s8185_s11 = inlined_call_operand.vmem [shape: f32[2,12,256], index: 11, kind: output, shape index: {}]  }
   0x1   :  { %8367 = sst [smem:[#allocation39_spill]] %s8174_s0 }
   0x2 LB: > { %s5115_s18 = sadd.s32 4294967295, %s5455_s17   ;;  %p5119_p0 = scmp.ge.s32.totalorder %s5455_s17, 1  ;;  %s5455_s17 = sphi %s5544_s17, %s21_s17  }
   0x3   : > { %p337_p1 = scmp.lt.s32.totalorder %s5455_s17, 3 }
   0x5   : > { %p338_p2 = pnand %p5119_p0, %p337_p1 }
   0x7   : > { %341 = sbr.rel (%p338_p2) target bundleno = 3462 (0xd86), region = 64 }
   0xe   : > { %v5555_v0 = vld [vmem:[%s8179_s5] sm:$0xff]  ;;  %p377_p3 = scmp.lt.s32.totalorder %s5115_s18, 1  ;;  %v651_v2 = vlaneseq  ;;  %v8194_v3 = vmov 0   ;;  %v5568_v4 = vld [vmem:[%s8179_s5 + $0x8] sm:$0xf]  ;;  %v5458_v6 = vmov 0.0  }
   0xf   : > { %v594_v1 = vld [vmem:[%s8178_s4] sm:$0xff]  ;;  %5352 = vset.pattern.permute.xlu1 %v8194_v3  ;;  %5351 = vset.pattern.permute.xlu0 %v8194_v3  ;;  %v595_v5 = vld [vmem:[%s8178_s4 + $0x8] sm:$0xf]  ;;  %392 = vst [vmem:[#allocation2] sm:$0xff] %v5458_v6  ;;  %393 = vst [vmem:[#allocation2 + $0x20] sm:$0xf] %v5458_v6 }
  0x10   : > { %637 = vperm.xlu1 %5352, %v5555_v0   ;;  %598 = vperm.xlu0 %5351, %v594_v1   ;;  %s8588_s18 = smov (!%p377_p3, %s5115_s18), 1  ;;  %400 = vst [vmem:[#allocation2 + $0x60] sm:$0xf] %v5458_v6  ;;  %v5578_v7 = vshrl.u32 %v651_v2, 7  ;;  %vm425_vm0 = vcmask 1045504   ;;  %s8368_s0 = sld [smem:[#allocation39_spill]] }
  0x11   : > { %581 = vmatprep.mubr.f32.mxu0 %v5458_v6  ;;  %494 = vmatprep.mubr.f32.mxu1 %v5458_v6  ;;  %s8234_s27 = sshll.u32 %s8588_s18, 5  ;;  %v403_v8 = vld [vmem:[%s8176_s2] sm:$0xff]  ;;  %vm411_vm1 = vcmask 1041408   ;;  %vm418_vm2 = vcmask 48128   ;;  %v8188_v21 = vmov 1   ;;  %v8192_v22 = vmov 2  }
  0x12   : > { %v5594_v9 = vld [vmem:[%s8175_s1] sm:$0xff]  ;;  %v653_v10 = vsub.s32 0, %v5578_v7  ;;  %v404_v25 = vld [vmem:[%s8176_s2 + $0x8] sm:$0xf]  ;;  %s8235_s24 = smov 111   ;;  %v8190_v28 = vmov 5  }
  0x13   : > { %v405_v24 = vld [vmem:[%s8177_s3] sm:$0xff]  ;;  %v406_v27 = vld [vmem:[%s8177_s3 + $0x8] sm:$0xf]  ;;  %v657_v29 = vsub.s32 4, %v5578_v7  ;;  %v8186_v30 = vmov 3   ;;  %vm394_vm3 = vcmask 277504  }
  0x14   : > { %641 = vperm.xlu1 %5352, %v5568_v4   ;;  %603 = vperm.xlu0 %5351, %v595_v5   ;;  %v654_v19 = vrot.slane %v5594_v9, %v653_v10  ;;  %395 = vst.msk [vmem:[#allocation2 + $0x18] sm:$0xff] %vm394_vm3, %v5458_v6  ;;  %401 = vst.msk [vmem:[#allocation2 + $0x58] sm:$0xff] %vm394_vm3, %v5458_v6  ;;  %v8196_v32 = vmov 6   ;;  %vm396_vm4 = vcmask 273408   ;;  %s8328_s25 = smov 127   ;;  %v8198_v34 = vmov 7  }
  0x15   : > { %v658_v31 = vrot.slane %v5594_v9, %v657_v29  ;;  %397 = vst.msk [vmem:[#allocation2 + $0x38] sm:$0xf] %vm396_vm4, %v5458_v6  ;;  %402 = vst.msk [vmem:[#allocation2 + $0x78] sm:$0xf] %vm396_vm4, %v5458_v6  ;;  %v778_v35 = vsub.s32 1, %v5578_v7  ;;  %v782_v37 = vsub.s32 5, %v5578_v7 }
  0x16   : > { %s5586_s30 = scalar_lea.vmem %s8368_s0, %s8234_s27  ;;  %v664_v26 = vrot.slane %v654_v19, %v653_v10  ;;  %v8208_v38 = vmov 8   ;;  %s8332_s26 = smov 15   ;;  %v8200_v42 = vmov 4   ;;  %v633_v47 = vld [vmem:[#allocation2 + $0x20] sm:$0xf]  ;;  %vm8239_vm5 = vcmask 908288  }
  0x17   : > { %v5599_v11 = vld [vmem:[%s5586_s30 + $0x8] sm:$0xff]  ;;  %v390_v12 = vld [vmem:[%s5586_s30 + $0x18] sm:$0xf]  ;;  %v5603_v13 = vld [vmem:[%s5586_s30] sm:$0xff]  ;;  %v668_v33 = vrot.slane %v658_v31, %v653_v10  ;;  %v779_v36 = vrot.slane %v5594_v9, %v778_v35  ;;  %v783_v40 = vrot.slane %v5594_v9, %v782_v37  ;;  %s8326_s28 = smov 113   ;;  %s8361_s29 = smov 17  }
  0x18   : > { %5128 = vmatprep.subr.msk.mxu0 %vm425_vm0, %v5599_v11  ;;  %v415_v14 = vrot.slane %v5599_v11, 6  ;;  %v416_v15 = vrot.slane %v390_v12, 6  ;;  %v389_v16 = vld [vmem:[%s5586_s30 + $0x10] sm:$0xf]  ;;  %v412_v17 = vrot.slane %v5603_v13, 6  ;;  %5353 = vset.pattern.permute.xlu1 %v8188_v21  ;;  %s8330_s12 = smov 1  }
  0x19   : > { %5129 = vmatpush1.msk.msra.mxu0 %vm425_vm0, %v5603_v13  ;;  %v413_v18 = vrot.slane %v389_v16, 6  ;;  %5355 = vset.pattern.permute.xlu0 %v8192_v22  ;;  %v789_v39 = vrot.slane %v779_v36, %v778_v35  ;;  %v793_v41 = vrot.slane %v783_v40, %v778_v35  ;;  %s8363_s13 = smov 16   ;;  %s8237_s14 = smov 112   ;;  %vm8288_vm6 = vcmask 924672  }
  0x1a   : > { %v5614_v20 = vsel %vm411_vm1, %v415_v14, %v416_v15  ;;  %5130 = vmatmul.mubr.msk.f32.vlgmr.msra.gmra.mrb[0].mxu0 %vm418_vm2, %v403_v8  ;;  %722 = vperm.xlu1 %5353, %v5568_v4   ;;  %vm8323_vm7 = vcmask 1039360   ;;  %vm8321_vm8 = vcmask 7168   ;;  %vm8322_vm9 = vcmask 121856   ;;  %s8245_s21 = smov 94   ;;  %s8293_s15 = smov 126  }
  0x1b   : > { %v5620_v23 = vsel %vm411_vm1, %v412_v17, %v413_v18  ;;  %5124 = vmatprep.subr.msk.mxu1 %vm425_vm0, %v5614_v20  ;;  %767 = vperm.xlu0 %5355, %v5568_v4   ;;  %v5726_v59 = vld [vmem:[#allocation2 + $0x18] sm:$0xff]  ;;  %vm8324_vm10 = vcmask 138240   ;;  %s8336_s16 = smov 30   ;;  %s8359_s19 = smov 34   ;;  %vm8320_vm11 = vcmask 130048   ;;  %vm8240_vm12 = vcmask 916480  }
  0x1c   : > { %5125 = vmatpush1.msk.msra.mxu1 %vm425_vm0, %v5620_v23  ;;  %587 = vmatprep.mubr.f32.mxu0 %v5458_v6  ;;  %v5751_v10 = vld [vmem:[#allocation2 + $0x38] sm:$0xf]  ;;  %s8247_s20 = smov 98   ;;  %s8334_s22 = smov 2   ;;  %vm1138_vm13 = vcmask 1043456   ;;  %vm5481_vm14 = vmmov 1  }
  0x1d   : > { %5126 = vmatmul.mubr.msk.f32.vlgmr.msra.gmra.mrb[0].mxu1 %vm418_vm2, %v405_v24  ;;  %vm6163_vm15 = vmpackc.low %vm1138_vm13, %vm5481_vm14  ;;  %vm1134_vm1 = vcmask 97280   ;;  %vm8325_vm4 = vcmask 769024   ;;  %vm8365_vm13 = vcmask 801792   ;;  %vm8366_vm14 = vcmask 1031168   ;;  %s8452_s27 = smov 32   ;;  %s8456_s23 = smov 126  }
  0x1e   : > { %500 = vmatprep.mubr.f32.mxu1 %v5458_v6  ;;  %5131 = vmatmul.mubr.msk.f32.gmra.mrb[2].mxu0 %vm418_vm2, %v404_v25  ;;  %s8497_s0 = smov 16  }
  0x1f   : > { %5354 = vset.pattern.permute.xlu1 %v8192_v22  ;;  %2007 = vmatprep.mubr.f32.mxu0 %v5458_v6 }
  0x20   : > { %671 = vrot.lane.b32.xlu0 %v664_v26, %s8235_s24  ;;  %763 = vperm.xlu1 %5354, %v5555_v0  }
  0x21   : > { %5127 = vmatmul.mubr.msk.f32.gmra.mrb[2].mxu1 %vm418_vm2, %v406_v27  ;;  %5357 = vset.pattern.permute.xlu0 %v8190_v28 }
  0x22   : > { %1209 = vmatprep.mubr.f32.mxu1 %v5458_v6 }
  0x24   : > { %909 = vperm.xlu0 %5357, %v5555_v0   ;;  %5356 = vset.pattern.permute.xlu1 %v8186_v30 }
  0x25   : > { %843 = vperm.xlu1 %5356, %v5555_v0  }
  0x28   : > { %5360 = vset.pattern.permute.xlu0 %v8196_v32 }
  0x29   : > { %971 = vperm.xlu0 %5360, %v5568_v4   ;;  %847 = vperm.xlu1 %5356, %v5568_v4  }
  0x2d   : > { %856 = vrot.lane.b32.xlu0 %v664_v26, %s8328_s25  ;;  %673 = vrot.lane.b32.xlu1 %v668_v33, %s8235_s24 }
  0x2e   : > { %5361 = vset.pattern.permute.xlu0 %v8198_v34  ;;  %5358 = vset.pattern.permute.xlu1 %v8190_v28 }
  0x31   : > { %1025 = vperm.xlu0 %5361, %v5555_v0   ;;  %913 = vperm.xlu1 %5358, %v5568_v4  }
  0x35   : > { %5364 = vset.pattern.permute.xlu0 %v8208_v38  ;;  %5359 = vset.pattern.permute.xlu1 %v8196_v32 }
  0x36   : > { %1074 = vperm.xlu0 %5364, %v5568_v4   ;;  %967 = vperm.xlu1 %5359, %v5555_v0  }
  0x3a   : > { %980 = vrot.lane.b32.xlu0 %v664_v26, %s8332_s26  ;;  %796 = vrot.lane.b32.xlu1 %v789_v39, %s8326_s28 }
  0x3b   : > { %5365 = vset.pattern.permute.xlu0 %v8200_v42  ;;  %5362 = vset.pattern.permute.xlu1 %v8198_v34 }
  0x3e   : > { %1083 = vrot.lane.b32.xlu0 %v789_v39, %s8361_s29  ;;  %798 = vrot.lane.b32.xlu1 %v793_v41, %s8326_s28 }
  0x42   : > { %614 = vperm.xlu0 %5365, %v5555_v0   ;;  %858 = vrot.lane.b32.xlu1 %v668_v33, %s8328_s25 }
  0x46   : > { %5366 = vset.pattern.permute.xlu0 %v8188_v21  ;;  %1029 = vperm.xlu1 %5362, %v5568_v4  }
  0x47   : > { %718 = vperm.xlu0 %5366, %v5555_v0  }
  0x4a   : > { %5363 = vset.pattern.permute.xlu1 %v8208_v38 }
  0x4b   : > { %1070 = vperm.xlu1 %5363, %v5555_v0  }
  0x4f   : > { %922 = vrot.lane.b32.xlu1 %v789_v39, %s8330_s12 }
  0x50   : > { %5367 = vset.pattern.permute.xlu1 %v8200_v42 }
  0x53   : > { %924 = vrot.lane.b32.xlu1 %v793_v41, %s8330_s12 }
  0x57   : > { %982 = vrot.lane.b32.xlu1 %v668_v33, %s8332_s26 }
  0x5b   : > { %1085 = vrot.lane.b32.xlu1 %v793_v41, %s8361_s29 }
  0x5f   : > { %619 = vperm.xlu1 %5367, %v5568_v4  }
  0x63   : > { %5368 = vset.pattern.permute.xlu1 %v8194_v3 }
  0x8f   : > { %v5696_v43 = vpop.permute.xlu1 %637  ;;  %v5698_v44 = vpop.permute.xlu0 %598 }
  0x90   : > { %v644_v17 = vmul.f32 0.0, %v5696_v43 }
  0x93   : > { %v5700_v45 = vpop.permute.xlu1 %641  ;;  %v5702_v46 = vpop.permute.xlu0 %603 }
  0x94   : > { %v647_v14 = vmul.f32 %v5700_v45, %v633_v47 }
  0x99   : > { %v5704_v48 = vpop.permute.xlu1 %722 }
  0x9a   : > { %v5706_v49 = vpop.permute.xlu0 %767  ;;  %v728_v50 = vmul.f32 %v5704_v48, %v633_v47 }
  0x9b   : > { %v773_v19 = vmul.f32 %v5706_v49, %v633_v47 }
  0x9c   : > { %743 = vrot.lane.b32.xlu0 %v728_v50, %s8363_s13 }
  0x9e   : > { %v5712_v52 = vpop.permute.xlu0 %671 }
  0x9f   : > { %v5710_v51 = vpop.permute.xlu1 %763  ;;  %8369 = vst [vmem:[#allocation3_spill] sm:$0xff] %v5712_v52  ;;  %v683_v25 = vmul.f32 %v5712_v52, %v647_v14  ;;  %v680_v27 = vmul.f32 %v5712_v52, %v644_v17 }
  0xa0   : > { %v770_v26 = vmul.f32 0.0, %v5710_v51 }
  0xa3   : > { %v5714_v53 = vpop.permute.xlu0 %909 }
  0xa4   : > { %v5716_v54 = vpop.permute.xlu1 %843  ;;  %v918_v41 = vmul.f32 %v5714_v53, %v5726_v59 }
  0xa5   : > { %v850_v35 = vmul.f32 0.0, %v5716_v54 }
  0xa8   : > { %v5718_v55 = vpop.permute.xlu1 %847  ;;  %v5720_v56 = vpop.permute.xlu0 %971 }
  0xa9   : > { %v853_v29 = vmul.f32 %v5718_v55, %v633_v47 }
  0xac   : > { %v5722_v57 = vpop.permute.xlu1 %673  ;;  %v5724_v58 = vpop.permute.xlu0 %856 }
  0xad   : > { %8370 = vst [vmem:[#allocation4_spill] sm:$0xff] %v5722_v57  ;;  %8371 = vst [vmem:[#allocation5_spill] sm:$0xff] %v5724_v58  ;;  %v868_v37 = vmul.f32 %v5724_v58, %v853_v29  ;;  %v865_v40 = vmul.f32 %v5724_v58, %v850_v35 }
  0xb0   : > { %v5728_v60 = vpop.permute.xlu1 %913  ;;  %v5730_v61 = vpop.permute.xlu0 %1025 }
  0xb1   : > { %v1034_v62 = vmul.f32 %v5730_v61, %v5726_v59  ;;  %v921_v47 = vmul.f32 %v5728_v60, %v5751_v10 }
  0xb3   : > { %1048 = vrot.lane.b32.xlu0 %v1034_v62, %s8237_s14 }
  0xb5   : > { %v5735_v63 = vpop.permute.xlu1 %967  ;;  %v5737_v0 = vpop.permute.xlu0 %1074 }
  0xb6   : > { %v976_v62 = vmul.f32 %v5735_v63, %v5726_v59 }
  0xb9   : > { %v5739_v1 = vpop.permute.xlu1 %796  ;;  %v5741_v2 = vpop.permute.xlu0 %980 }
  0xba   : > { %8372 = vst [vmem:[#allocation6_spill] sm:$0xff] %v5739_v1  ;;  %8373 = vst [vmem:[#allocation7_spill] sm:$0xff] %v5741_v2  ;;  %v808_v33 = vmul.f32 %v5739_v1, %v773_v19  ;;  %v805_v36 = vmul.f32 %v5739_v1, %v770_v26 }
  0xbd   : > { %v5743_v4 = vpop.permute.xlu1 %798  ;;  %v5745_v5 = vpop.permute.xlu0 %1083 }
  0xbe   : > { %8374 = vst [vmem:[#allocation8_spill] sm:$0xff] %v5743_v4  ;;  %8375 = vst [vmem:[#allocation9_spill] sm:$0xff] %v5745_v5 }
  0xc1   : > { %v5747_v6 = vpop.permute.xlu1 %858  ;;  %v5749_v8 = vpop.permute.xlu0 %614 }
  0xc2   : > { %8376 = vst [vmem:[#allocation10_spill] sm:$0xff] %v5747_v6 }
  0xc5   : > { %v5753_v12 = vpop.permute.xlu1 %1029 }
  0xc6   : > { %v719_v15 = vpop.permute.xlu0 %718  ;;  %v1037_v16 = vmul.f32 %v5753_v12, %v5751_v10 }
  0xc7   : > { %v725_v18 = vmul.f32 0.0, %v719_v15 }
  0xc8   : > { %1054 = vrot.lane.b32.xlu0 %v1037_v16, %s8237_s14 }
  0xc9   : > { %737 = vrot.lane.b32.xlu1 %v725_v18, %s8363_s13  ;;  %v979_v18 = vmul.f32 %v5720_v56, %v5751_v10 }
  0xca   : > { %v5762_v24 = vpop.permute.xlu1 %1070 }
  0xcc   : > { %698 = vrot.lane.b32.xlu0 %v683_v25, %s8361_s29 }
  0xcd   : > { %692 = vrot.lane.b32.xlu1 %v680_v27, %s8361_s29 }
  0xce   : > { %v5770_v31 = vpop.permute.xlu1 %922 }
  0xcf   : > { %8377 = vst [vmem:[#allocation11_spill] sm:$0xff] %v5770_v31 }
  0xd0   : > { %823 = vrot.lane.b32.xlu0 %v808_v33, %s8332_s26 }
  0xd1   : > { %817 = vrot.lane.b32.xlu1 %v805_v36, %s8332_s26 }
  0xd2   : > { %v5778_v39 = vpop.permute.xlu1 %924 }
  0xd3   : > { %8378 = vst [vmem:[#allocation12_spill] sm:$0xff] %v5778_v39  ;;  %v932_v50 = vmul.f32 %v5778_v39, %v918_v41  ;;  %v935_v14 = vmul.f32 %v5778_v39, %v921_v47 }
  0xd4   : > { %883 = vrot.lane.b32.xlu0 %v868_v37, %s8330_s12 }
  0xd5   : > { %877 = vrot.lane.b32.xlu1 %v865_v40, %s8330_s12 }
  0xd6   : > { %v5792_v16 = vpop.permute.xlu1 %982 }
  0xd7   : > { %8379 = vst [vmem:[#allocation13_spill] sm:$0xff] %v5792_v16  ;;  %v990_v17 = vmul.f32 %v5792_v16, %v976_v62  ;;  %v993_v19 = vmul.f32 %v5792_v16, %v979_v18 }
  0xd8   : > { %946 = vrot.lane.b32.xlu0 %v932_v50, %s8328_s25 }
  0xdc   : > { %952 = vrot.lane.b32.xlu0 %v935_v14, %s8328_s25 }
  0xe0   : > { %1004 = vrot.lane.b32.xlu0 %v990_v17, %s8326_s28 }
  0xe4   : > { %1010 = vrot.lane.b32.xlu0 %v993_v19, %s8326_s28 }
  0xed   : > { %v583_v25 = vpop.f32.mrb[0].mxu0 }
  0xee   : > { %v585_v26 = vpop.f32.mrb[1].mxu0 }
  0xf0   : > { %v496_v27 = vpop.f32.mrb[0].mxu1 }
  0xf1   : > { %v584_v29 = vadd.f32 %v583_v25, %v496_v27  ;;  %v498_v33 = vpop.f32.mrb[1].mxu1  ;;  %v589_v35 = vpop.f32.mrb[2].mxu0 }
  0xf2   : > { %v586_v36 = vadd.f32 %v585_v26, %v498_v33  ;;  %v591_v37 = vpop.f32.mrb[3].mxu0 }
  0xf3   : > { %v5802_v40 = vadd.f32 %v5698_v44, %v584_v29 }
  0xf4   : > { %v5805_v41 = vadd.f32 %v5698_v44, %v586_v36  ;;  %v502_v47 = vpop.f32.mrb[2].mxu1  ;;  %v5840_v36 = vsel %vm8239_vm5, %v5712_v52, %v5722_v57 }
  0xf5   : > { %v590_v50 = vadd.f32 %v589_v35, %v502_v47  ;;  %v504_v62 = vpop.f32.mrb[3].mxu1  ;;  %v726_v14 = vmul.f32 %v719_v15, %v5802_v40  ;;  %v1032_v44 = vmul.f32 %v5730_v61, %v5802_v40  ;;  %v645_v29 = vmul.f32 %v5696_v43, %v5802_v40  ;;  %8380 = vst [vmem:[#allocation14_spill] sm:$0xff] %v5840_v36 }
  0xf6   : > { %v592_v17 = vadd.f32 %v591_v37, %v504_v62  ;;  %v727_v18 = vmul.f32 %v719_v15, %v5805_v41  ;;  %v646_v19 = vmul.f32 %v5696_v43, %v5805_v41  ;;  %v772_v27 = vmul.f32 %v5710_v51, %v5805_v41 }
  0xf7   : > { %v5812_v25 = vadd.f32 %v5702_v46, %v590_v50  ;;  %739 = vrot.lane.b32.xlu1 %v726_v14, %s8363_s13  ;;  %v852_v35 = vmul.f32 %v5716_v54, %v5805_v41  ;;  %v771_v43 = vmul.f32 %v5710_v51, %v5802_v40  ;;  %v5853_v50 = vsel %vm8288_vm6, %v5739_v1, %v5743_v4 }
  0xf8   : > { %v5816_v26 = vadd.f32 %v5702_v46, %v592_v17  ;;  %741 = vrot.lane.b32.xlu0 %v727_v18, %s8363_s13  ;;  %v682_v15 = vmul.f32 %v5722_v57, %v646_v19  ;;  %v1033_v46 = vmul.f32 %v5730_v61, %v5805_v41  ;;  %v807_v33 = vmul.f32 %v5743_v4, %v772_v27 }
  0xf9   : > { %628 = vst [vmem:[#allocation2 + $0x28] sm:$0xf] %v5812_v25  ;;  %v681_v61 = vmul.f32 %v5840_v36, %v645_v29  ;;  %v867_v37 = vmul.f32 %v5747_v6, %v852_v35  ;;  %8381 = vst [vmem:[#allocation15_spill] sm:$0xff] %v5853_v50  ;;  %v806_v62 = vmul.f32 %v5853_v50, %v771_v43 }
  0xfa   : > { %629 = vst [vmem:[#allocation2 + $0x30] sm:$0xf] %v5816_v26  ;;  %v851_v14 = vmul.f32 %v5716_v54, %v5802_v40  ;;  %v5865_v18 = vsel %vm8323_vm7, %v5724_v58, %v5747_v6 }
  0xfb   : > { %1044 = vrot.lane.b32.xlu1 %v1032_v44, %s8237_s14  ;;  %8382 = vst [vmem:[#allocation16_spill] sm:$0xff] %v5865_v18  ;;  %v916_v44 = vmul.f32 %v5714_v53, %v5802_v40 }
  0xfc   : > { %696 = vrot.lane.b32.xlu0 %v682_v15, %s8361_s29  ;;  %v866_v19 = vmul.f32 %v5865_v18, %v851_v14 }
  0xfd   : > { %v930_v27 = vmul.f32 %v5770_v31, %v916_v44  ;;  %v5905_v44 = vsel %vm8322_vm9, %v5741_v2, %v5792_v16 }
  0xfe   : > { %8384 = vst [vmem:[#allocation18_spill] sm:$0xff] %v5905_v44 }
  0xff   : > { %1046 = vrot.lane.b32.xlu1 %v1033_v46, %s8237_s14  ;;  %v974_v46 = vmul.f32 %v5735_v63, %v5802_v40 }
 0x100   : > { %821 = vrot.lane.b32.xlu0 %v807_v33, %s8332_s26  ;;  %v5847_v47 = vld [vmem:[#allocation2 + $0x28] sm:$0xf] }
 0x101   : > { %v1035_v51 = vmul.f32 %v5753_v12, %v5847_v47  ;;  %v635_v17 = vld [vmem:[#allocation2 + $0x30] sm:$0xf]  ;;  %v919_v15 = vmul.f32 %v5728_v60, %v5847_v47  ;;  %v977_v33 = vmul.f32 %v5720_v56, %v5847_v47  ;;  %v988_v35 = vmul.f32 %v5741_v2, %v974_v46 }
 0x102   : > { %v730_v54 = vmul.f32 %v5704_v48, %v635_v17  ;;  %v855_v46 = vmul.f32 %v5718_v55, %v635_v17 }
 0x103   : > { %694 = vrot.lane.b32.xlu1 %v681_v61, %s8361_s29  ;;  %v933_v29 = vmul.f32 %v5770_v31, %v919_v15  ;;  %v917_v61 = vmul.f32 %v5714_v53, %v5805_v41  ;;  %v991_v43 = vmul.f32 %v5741_v2, %v977_v33 }
 0x104   : > { %881 = vrot.lane.b32.xlu0 %v867_v37, %s8330_s12  ;;  %v5890_v37 = vsel %vm8321_vm8, %v5770_v31, %v5778_v39  ;;  %v8388_v31 = vmov 0  }
 0x105   : > { %8383 = vst [vmem:[#allocation17_spill] sm:$0xff] %v5890_v37  ;;  %v931_v14 = vmul.f32 %v5890_v37, %v917_v61  ;;  %v870_v61 = vmul.f32 %v5747_v6, %v855_v46  ;;  %v623_v6 = vmul.f32 %v5749_v8, %v5805_v41 }
 0x107   : > { %819 = vrot.lane.b32.xlu1 %v806_v62, %s8332_s26  ;;  %v649_v62 = vmul.f32 %v5700_v45, %v635_v17 }
 0x108   : > { %1050 = vrot.lane.b32.xlu0 %v1035_v51, %s8237_s14  ;;  %v975_v51 = vmul.f32 %v5735_v63, %v5805_v41  ;;  %v1078_v63 = vmul.f32 %v5762_v24, %v5805_v41  ;;  %v622_v41 = vmul.f32 %v5749_v8, %v5802_v40 }
 0x109   : > { %v685_v53 = vmul.f32 %v5722_v57, %v649_v62 }
 0x10a   : > { %v989_v15 = vmul.f32 %v5905_v44, %v975_v51  ;;  %v1082_v51 = vmul.f32 %v5737_v0, %v5751_v10 }
 0x10b   : > { %879 = vrot.lane.b32.xlu1 %v866_v19, %s8330_s12  ;;  %v775_v19 = vmul.f32 %v5706_v49, %v635_v17 }
 0x10c   : > { %747 = vrot.lane.b32.xlu0 %v730_v54, %s8363_s13  ;;  %v5907_v54 = vpop.permute.xlu1 %1085 }
 0x10d   : > { %8385 = vst [vmem:[#allocation19_spill] sm:$0xff] %v5907_v54 }
 0x10f   : > { %942 = vrot.lane.b32.xlu1 %v930_v27, %s8328_s25  ;;  %v810_v27 = vmul.f32 %v5743_v4, %v775_v19  ;;  %v1096_v19 = vmul.f32 %v5907_v54, %v1082_v51 }
 0x110   : > { %948 = vrot.lane.b32.xlu0 %v933_v29, %s8328_s25  ;;  %v5919_v29 = vsel %vm8324_vm10, %v5745_v5, %v5907_v54 }
 0x111   : > { %8386 = vst [vmem:[#allocation20_spill] sm:$0xff] %v5919_v29  ;;  %v1092_v33 = vmul.f32 %v5919_v29, %v1078_v63 }
 0x113   : > { %1000 = vrot.lane.b32.xlu1 %v988_v35, %s8326_s28  ;;  %v1079_v35 = vmul.f32 %v5762_v24, %v5726_v59 }
 0x114   : > { %1006 = vrot.lane.b32.xlu0 %v991_v43, %s8326_s28  ;;  %v634_v43 = vld [vmem:[#allocation2 + $0x28] sm:$0xf] }
 0x115   : > { %v729_v17 = vmul.f32 %v5704_v48, %v634_v43  ;;  %v1093_v62 = vmul.f32 %v5907_v54, %v1079_v35  ;;  %v774_v63 = vmul.f32 %v5706_v49, %v634_v43  ;;  %v5956_v49 = vpop.permute.xlu0 %743 }
 0x117   : > { %944 = vrot.lane.b32.xlu1 %v931_v14, %s8328_s25  ;;  %v906_v14 = vld [vmem:[#allocation2 + $0x30] sm:$0xf] }
 0x118   : > { %702 = vrot.lane.b32.xlu0 %v685_v53, %s8361_s29  ;;  %v1036_v59 = vmul.f32 %v5753_v12, %v906_v14  ;;  %v648_v53 = vmul.f32 %v5700_v45, %v634_v43  ;;  %v809_v45 = vmul.f32 %v5853_v50, %v774_v63  ;;  %v5949_v12 = vld [vmem:[%s8179_s5 + $0x10] sm:$0xff]  ;;  %v1081_v51 = vmul.f32 %v5737_v0, %v906_v14  ;;  %v6008_v63 = vpop.permute.xlu1 %619 }
 0x119   : > { %v624_v4 = vmul.f32 %v6008_v63, %v5812_v25 }
 0x11a   : > { %v684_v48 = vmul.f32 %v5840_v36, %v648_v53  ;;  %v1077_v53 = vmul.f32 %v5762_v24, %v5802_v40 }
 0x11b   : > { %1002 = vrot.lane.b32.xlu1 %v989_v15, %s8326_s28  ;;  %v1080_v15 = vmul.f32 %v5737_v0, %v5847_v47  ;;  %v854_v47 = vmul.f32 %v5718_v55, %v634_v43  ;;  %v5966_v55 = vld [vmem:[%s8179_s5 + $0x18] sm:$0xf]  ;;  %v978_v43 = vmul.f32 %v5720_v56, %v906_v14 }
 0x11c   : > { %827 = vrot.lane.b32.xlu0 %v810_v27, %s8332_s26  ;;  %v5953_v27 = vsub.s32 2, %v5578_v7  ;;  %v1091_v0 = vmul.f32 %v5745_v5, %v1077_v53 }
 0x11d   : > { %v1094_v10 = vmul.f32 %v5745_v5, %v1080_v15  ;;  %v869_v46 = vmul.f32 %v5865_v18, %v854_v47  ;;  %v1576_v15 = vsub.s32 3, %v5578_v7  ;;  %v8387_v5 = vmov 4  }
 0x11e   : > { %v1453_v35 = vrot.slane %v5594_v9, %v5953_v27 }
 0x11f   : > { %1105 = vrot.lane.b32.xlu1 %v1092_v33, %s8235_s24  ;;  %v920_v33 = vmul.f32 %v5728_v60, %v906_v14 }
 0x120   : > { %887 = vrot.lane.b32.xlu0 %v870_v61, %s8330_s12  ;;  %v1463_v60 = vrot.slane %v1453_v35, %v5953_v27 }
 0x121   : > { %v934_v61 = vmul.f32 %v5890_v37, %v920_v33 }
 0x123   : > { %745 = vrot.lane.b32.xlu1 %v729_v17, %s8363_s13 }
 0x124   : > { %1107 = vrot.lane.b32.xlu0 %v1093_v62, %s8235_s24  ;;  %v992_v62 = vmul.f32 %v5905_v44, %v978_v43 }
 0x125   : > { %v5974_v17 = vpop.permute.xlu0 %1048 }
 0x127   : > { %1052 = vrot.lane.b32.xlu1 %v1036_v59, %s8237_s14  ;;  %v1095_v59 = vmul.f32 %v5919_v29, %v1081_v51  ;;  %s8241_s14 = smov 96  }
 0x128   : > { %1113 = vrot.lane.b32.xlu0 %v1096_v19, %s8235_s24  ;;  %v5147_v19 = vld [vmem:[%s8178_s4 + $0x10] sm:$0xff] }
 0x12b   : > { %700 = vrot.lane.b32.xlu1 %v684_v48, %s8361_s29 }
 0x12c   : > { %1109 = vrot.lane.b32.xlu0 %v1094_v10, %s8235_s24  ;;  %v1577_v10 = vrot.slane %v5594_v9, %v1576_v15 }
 0x12f   : > { %825 = vrot.lane.b32.xlu1 %v809_v45, %s8332_s26 }
 0x130   : > { %1516 = vperm.xlu0 %5366, %v5949_v12  }
 0x133   : > { %885 = vrot.lane.b32.xlu1 %v869_v46, %s8330_s12  ;;  %v1587_v46 = vrot.slane %v1577_v10, %v1576_v15  ;;  %v1580_v10 = vsub.s32 7, %v5578_v7 }
 0x134   : > { %5371 = vset.pattern.permute.xlu0 %v8192_v22 }
 0x135   : > { %1565 = vperm.xlu0 %5371, %v5966_v55  }
 0x137   : > { %950 = vrot.lane.b32.xlu1 %v934_v61, %s8328_s25  ;;  %v1456_v61 = vsub.s32 6, %v5578_v7 }
 0x139   : > { %1470 = vrot.lane.b32.xlu0 %v1463_v60, %s8245_s21  ;;  %v1457_v43 = vrot.slane %v5594_v9, %v1456_v61 }
 0x13a   : > { %5373 = vset.pattern.permute.xlu0 %v8190_v28  ;;  %v5982_v56 = vpop.permute.xlu0 %1054 }
 0x13b   : > { %1008 = vrot.lane.b32.xlu1 %v992_v62, %s8326_s28  ;;  %v6013_v45 = vpop.permute.xlu1 %737  ;;  %v1467_v51 = vrot.slane %v1457_v43, %v5953_v27  ;;  %v1581_v27 = vrot.slane %v5594_v9, %v1580_v10 }
 0x13d   : > { %1707 = vperm.xlu0 %5373, %v5949_v12  }
 0x13e   : > { %v5991_v14 = vpop.permute.xlu0 %698 }
 0x13f   : > { %1111 = vrot.lane.b32.xlu1 %v1095_v59, %s8235_s24  ;;  %v6023_v33 = vpop.permute.xlu1 %692 }
 0x141   : > { %5376 = vset.pattern.permute.xlu0 %v8196_v32 }
 0x142   : > { %1769 = vperm.xlu0 %5376, %v5966_v55   ;;  %v6000_v24 = vpop.permute.xlu0 %823 }
 0x143   : > { %1103 = vrot.lane.b32.xlu1 %v1091_v0, %s8235_s24  ;;  %s8243_s24 = smov 32  }
 0x146   : > { %1654 = vrot.lane.b32.xlu0 %v1463_v60, %s8293_s15  ;;  %v6005_v48 = vpop.permute.xlu0 %883 }
 0x147   : > { %1397 = vperm.xlu1 %5368, %v5147_v19   ;;  %5377 = vset.pattern.permute.xlu0 %v8198_v34 }
 0x14a   : > { %1823 = vperm.xlu0 %5377, %v5949_v12   ;;  %v6017_v47 = vpop.permute.xlu0 %946 }
 0x14b   : > { %1437 = vperm.xlu1 %5368, %v5949_v12  }
 0x14e   : > { %5380 = vset.pattern.permute.xlu0 %v8208_v38  ;;  %v6026_v35 = vpop.permute.xlu0 %952 }
 0x14f   : > { %1441 = vperm.xlu1 %5368, %v5966_v55   ;;  %1872 = vperm.xlu0 %5380, %v5966_v55  }
 0x152   : > { %v6036_v62 = vpop.permute.xlu0 %1004 }
 0x153   : > { %5369 = vset.pattern.permute.xlu1 %v8188_v21  ;;  %1778 = vrot.lane.b32.xlu0 %v1463_v60, %s8336_s16  ;;  %v6033_v60 = vpop.permute.xlu1 %817 }
 0x154   : > { %1520 = vperm.xlu1 %5369, %v5966_v55   ;;  %5381 = vset.pattern.permute.xlu0 %v8200_v42 }
 0x156   : > { %v6042_v53 = vpop.permute.xlu0 %1010 }
 0x157   : > { %1881 = vrot.lane.b32.xlu0 %v1587_v46, %s8359_s19  ;;  %v6040_v59 = vpop.permute.xlu1 %877 }
 0x158   : > { %5370 = vset.pattern.permute.xlu1 %v8192_v22 }
 0x159   : > { %1561 = vperm.xlu1 %5370, %v5949_v12  }
 0x15b   : > { %1414 = vperm.xlu0 %5381, %v5949_v12  }
 0x15d   : > { %5372 = vset.pattern.permute.xlu1 %v8186_v30 }
 0x15e   : > { %1641 = vperm.xlu1 %5372, %v5949_v12  }
 0x15f   : > { %5382 = vset.pattern.permute.xlu0 %v8194_v3 }
 0x162   : > { %1645 = vperm.xlu1 %5372, %v5966_v55  }
 0x166   : > { %1472 = vrot.lane.b32.xlu1 %v1467_v51, %s8245_s21 }
 0x167   : > { %5374 = vset.pattern.permute.xlu1 %v8190_v28  ;;  %v1591_v28 = vrot.slane %v1581_v27, %v1576_v15 }
 0x169   : > { %v6046_v0 = vpop.permute.xlu1 %739 }
 0x16a   : > { %v742_v19 = vpop.permute.xlu0 %741  ;;  %1711 = vperm.xlu1 %5374, %v5966_v55  }
 0x16d   : > { %v6050_v61 = vpop.permute.xlu1 %1044 }
 0x16e   : > { %v697_v30 = vpop.permute.xlu0 %696  ;;  %5375 = vset.pattern.permute.xlu1 %v8196_v32  ;;  %v5148_v32 = vld [vmem:[%s8178_s4 + $0x18] sm:$0xf] }
 0x16f   : > { %1765 = vperm.xlu1 %5375, %v5949_v12   ;;  %1402 = vperm.xlu0 %5382, %v5148_v32  }
 0x171   : > { %v6055_v43 = vpop.permute.xlu1 %1046 }
 0x172   : > { %v822_v21 = vpop.permute.xlu0 %821 }
 0x173   : > { %1594 = vrot.lane.b32.xlu1 %v1587_v46, %s8247_s20 }
 0x174   : > { %5378 = vset.pattern.permute.xlu1 %v8198_v34 }
 0x175   : > { %v695_v22 = vpop.permute.xlu1 %694 }
 0x176   : > { %v882_v7 = vpop.permute.xlu0 %881  ;;  %v706_v2 = vsel %vm8324_vm10, %v695_v22, %v697_v30  ;;  %v705_v30 = vsel %vm8324_vm10, %v6023_v33, %v695_v22 }
 0x177   : > { %1596 = vrot.lane.b32.xlu1 %v1591_v28, %s8247_s20  ;;  %v714_v50 = vadd.f32 %v706_v2, %v623_v6 }
 0x179   : > { %v820_v3 = vpop.permute.xlu1 %819 }
 0x17a   : > { %v6064_v9 = vpop.permute.xlu0 %1050  ;;  %v831_v39 = vsel %vm8322_vm9, %v820_v3, %v822_v21 }
 0x17b   : > { %1656 = vrot.lane.b32.xlu1 %v1467_v51, %s8293_s15 }
 0x17d   : > { %v6066_v10 = vpop.permute.xlu1 %879 }
 0x17e   : > { %v748_v27 = vpop.permute.xlu0 %747  ;;  %v891_v8 = vsel %vm8321_vm8, %v6066_v10, %v882_v7 }
 0x17f   : > { %1827 = vperm.xlu1 %5378, %v5966_v55  }
 0x181   : > { %v6069_v15 = vpop.permute.xlu1 %942 }
 0x182   : > { %v949_v42 = vpop.permute.xlu0 %948 }
 0x183   : > { %5379 = vset.pattern.permute.xlu1 %v8208_v38 }
 0x184   : > { %1868 = vperm.xlu1 %5379, %v5949_v12  }
 0x185   : > { %v6073_v34 = vpop.permute.xlu1 %1000 }
 0x186   : > { %v6082_v29 = vpop.permute.xlu0 %1006 }
 0x188   : > { %1720 = vrot.lane.b32.xlu1 %v1587_v46, %s8334_s22 }
 0x189   : > { %v6076_v32 = vpop.permute.xlu1 %944  ;;  %5383 = vset.pattern.permute.xlu1 %v8387_v5 }
 0x18a   : > { %v703_v12 = vpop.permute.xlu0 %702 }
 0x18c   : > { %1722 = vrot.lane.b32.xlu1 %v1591_v28, %s8334_s22 }
 0x18d   : > { %v6080_v54 = vpop.permute.xlu1 %1002 }
 0x18e   : > { %v828_v37 = vpop.permute.xlu0 %827 }
 0x190   : > { %1780 = vrot.lane.b32.xlu1 %v1467_v51, %s8336_s16 }
 0x191   : > { %v6085_v38 = vpop.permute.xlu1 %1105 }
 0x192   : > { %v888_v57 = vpop.permute.xlu0 %887 }
 0x194   : > { %1883 = vrot.lane.b32.xlu1 %v1591_v28, %s8359_s19 }
 0x195   : > { %v746_v44 = vpop.permute.xlu1 %745 }
 0x196   : > { %v752_v2 = vsel %vm8320_vm11, %v5956_v49, %v746_v44  ;;  %v753_v6 = vsel %vm8320_vm11, %v746_v44, %v748_v27  ;;  %v1108_v49 = vpop.permute.xlu0 %1107 }
 0x198   : > { %1419 = vperm.xlu1 %5383, %v5966_v55   ;;  %v625_v55 = vmul.f32 %v6008_v63, %v5816_v26 }
 0x199   : > { %v6089_v46 = vpop.permute.xlu1 %1052 }
 0x19c   : > { %5384 = vset.pattern.permute.xlu1 %v8388_v31 }
 0x19d   : > { %v701_v18 = vpop.permute.xlu1 %700 }
 0x19e   : > { %v707_v51 = vsel %vm8324_vm10, %v5991_v14, %v701_v18  ;;  %v708_v28 = vsel %vm8324_vm10, %v701_v18, %v703_v12  ;;  %v751_v18 = vsel %vm8320_vm11, %v6046_v0, %v742_v19  ;;  %v713_v12 = vadd.f32 %v705_v30, %v622_v41 }
 0x19f   : > { %v715_v36 = vadd.f32 %v707_v51, %v624_v4  ;;  %v716_v16 = vadd.f32 %v708_v28, %v625_v55  ;;  %v759_v25 = vadd.f32 %v751_v18, %v714_v50  ;;  %v750_v4 = vsel %vm8320_vm11, %v6013_v45, %v6046_v0 }
 0x1a0   : > { %v758_v50 = vadd.f32 %v750_v4, %v713_v12  ;;  %v954_v51 = vsel %vm8323_vm7, %v6069_v15, %v6076_v32  ;;  %v1058_v15 = vsel %vm8240_vm12, %v6055_v43, %v5974_v17  ;;  %v1057_v4 = vsel %vm8240_vm12, %v6050_v61, %v6055_v43  ;;  %v1127_v61 = vld [vmem:[%s8180_s6] sm:$0x3f]  ;;  %v5137_v43 = vld [vmem:[%s8177_s3 + $0x10] sm:$0xff] }
 0x1a1   : > { %v826_v14 = vpop.permute.xlu1 %825  ;;  %v760_v22 = vadd.f32 %v752_v2, %v715_v36  ;;  %v761_v26 = vadd.f32 %v753_v6, %v716_v16  ;;  %v839_v33 = vadd.f32 %v831_v39, %v759_v25  ;;  %v830_v36 = vsel %vm8322_vm9, %v6033_v60, %v820_v3 }
 0x1a2   : > { %v832_v40 = vsel %vm8322_vm9, %v6000_v24, %v826_v14  ;;  %v833_v21 = vsel %vm8322_vm9, %v826_v14, %v828_v37  ;;  %v955_v16 = vsel %vm8323_vm7, %v6076_v32, %v6017_v47  ;;  %v890_v39 = vsel %vm8321_vm8, %v6040_v59, %v6066_v10  ;;  %v1114_v10 = vpop.permute.xlu0 %1113 }
 0x1a3   : > { %v899_v0 = vadd.f32 %v891_v8, %v839_v33  ;;  %v840_v19 = vadd.f32 %v832_v40, %v760_v22  ;;  %v841_v24 = vadd.f32 %v833_v21, %v761_v26  ;;  %v1013_v3 = vsel %vm8288_vm6, %v6080_v54, %v6036_v62 }
 0x1a4   : > { %v1116_v32 = vsel %vm8239_vm5, %v6085_v38, %v1108_v49 }
 0x1a5   : > { %v886_v63 = vpop.permute.xlu1 %885  ;;  %v963_v60 = vadd.f32 %v955_v16, %v899_v0  ;;  %v5136_v0 = vld [vmem:[%s8176_s2 + $0x18] sm:$0xf] }
 0x1a6   : > { %v892_v44 = vsel %vm8321_vm8, %v6005_v48, %v886_v63  ;;  %v893_v45 = vsel %vm8321_vm8, %v886_v63, %v888_v57  ;;  %v838_v48 = vadd.f32 %v830_v36, %v758_v50  ;;  %v1110_v17 = vpop.permute.xlu0 %1109 }
 0x1a7   : > { %v900_v57 = vadd.f32 %v892_v44, %v840_v19  ;;  %v901_v27 = vadd.f32 %v893_v45, %v841_v24  ;;  %v1021_v59 = vadd.f32 %v1013_v3, %v963_v60  ;;  %v1433_v19 = vld [vmem:[#allocation2 + $0x60] sm:$0xf] }
 0x1a8   : > { %v898_v28 = vadd.f32 %v890_v39, %v838_v48 }
 0x1a9   : > { %v951_v7 = vpop.permute.xlu1 %950 }
 0x1aa   : > { %v956_v37 = vsel %vm8323_vm7, %v949_v42, %v951_v7  ;;  %v957_v47 = vsel %vm8323_vm7, %v951_v7, %v6026_v35  ;;  %v1012_v42 = vsel %vm8288_vm6, %v6073_v34, %v6080_v54  ;;  %v962_v14 = vadd.f32 %v954_v51, %v898_v28 }
 0x1ab   : > { %v964_v55 = vadd.f32 %v956_v37, %v900_v57  ;;  %v965_v30 = vadd.f32 %v957_v47, %v901_v27  ;;  %v1060_v34 = vsel %vm8240_vm12, %v6089_v46, %v5982_v56 }
 0x1ac   : > { %v1020_v54 = vadd.f32 %v1012_v42, %v962_v14 }
 0x1ad   : > { %v1009_v62 = vpop.permute.xlu1 %1008 }
 0x1ae   : > { %v1014_v35 = vsel %vm8288_vm6, %v6082_v29, %v1009_v62  ;;  %v1015_v41 = vsel %vm8288_vm6, %v1009_v62, %v6042_v53  ;;  %v1066_v29 = vadd.f32 %v1058_v15, %v1021_v59  ;;  %v1059_v53 = vsel %vm8240_vm12, %v6064_v9, %v6089_v46 }
 0x1af   : > { %v1022_v18 = vadd.f32 %v1014_v35, %v964_v55  ;;  %v1023_v12 = vadd.f32 %v1015_v41, %v965_v30  ;;  %v1065_v21 = vadd.f32 %v1057_v4, %v1020_v54  ;;  %v6187_v36 = vpop.permute.xlu0 %1516  ;;  %vm8292_vm12 = vcmask 244736  }
 0x1b0   : > { %v1124_v22 = vadd.f32 %v1116_v32, %v1066_v29  ;;  %vm1547_vm6 = vcmask 261120  }
 0x1b1   : > { %v1112_v25 = vpop.permute.xlu1 %1111  ;;  %v1068_v2 = vadd.f32 %v1060_v34, %v1023_v12  ;;  %v1067_v26 = vadd.f32 %v1059_v53, %v1022_v18  ;;  %v6278_v53 = vld [vmem:[#allocation2 + $0x78] sm:$0xf] }
 0x1b2   : > { %v1118_v6 = vsel %vm8239_vm5, %v1112_v25, %v1114_v10  ;;  %v1117_v56 = vsel %vm8239_vm5, %v1110_v17, %v1112_v25 }
 0x1b3   : > { %v1126_v63 = vadd.f32 %v1118_v6, %v1068_v2  ;;  %v1125_v50 = vadd.f32 %v1117_v56, %v1067_v26  ;;  %v6276_v2 = vld [vmem:[#allocation2 + $0x58] sm:$0xff] }
 0x1b5   : > { %v5252_v40 = vpack.c.bf16 %v1126_v63, %v1124_v22  ;;  %v1104_v9 = vpop.permute.xlu1 %1103 }
 0x1b6   : > { %v1115_v46 = vsel %vm8239_vm5, %v1104_v9, %v6085_v38  ;;  %v6181_v38 = vld [vmem:[#allocation2] sm:$0xff]  ;;  %vm1687_vm5 = vcmask 15360  }
 0x1b7   : > { %v1123_v33 = vadd.f32 %v1115_v46, %v1065_v21  ;;  %5254 = vmatprep.subr.msk.bf16.mxu1 %vm6163_vm15, %v5252_v40  ;;  %v1523_v3 = vmul.f32 %v6181_v38, %v6187_v36 }
 0x1b9   : > { %v5255_v49 = vpack.c.bf16 %v1125_v50, %v1123_v33 }
 0x1bb   : > { %5257 = vmatpush1.bf16.msk.msra.mxu1 %vm6163_vm15, %v5255_v49 }
 0x1bc   : > { %5139 = vmatprep.subr.msk.mxu1 %vm425_vm0, %v5614_v20  ;;  %v5138_v20 = vld [vmem:[%s8177_s3 + $0x18] sm:$0xf] }
 0x1be   : > { %5134 = vmatmul.mubr.msk.f32.vlgmr.msra.gmra.mrb[4].mxu1 %vm1134_vm1, %v1127_v61 }
 0x1bf   : > { %5140 = vmatpush1.msk.msra.mxu1 %vm425_vm0, %v5620_v23  ;;  %1296 = vmatprep.mubr.f32.mxu1 %v6181_v38  ;;  %v6198_v23 = vpop.permute.xlu0 %1565 }
 0x1c0   : > { %5143 = vmatprep.subr.msk.mxu1 %vm425_vm0, %v5599_v11  ;;  %v5135_v11 = vld [vmem:[%s8176_s2 + $0x10] sm:$0xff]  ;;  %v1571_v30 = vmul.f32 %v6198_v23, %v1433_v19 }
 0x1c2   : > { %5141 = vmatmul.mubr.msk.f32.vlgmr.msra.gmra.mrb[6].mxu1 %vm418_vm2, %v5137_v43 }
 0x1c3   : > { %1302 = vmatprep.mubr.f32.mxu1 %v6181_v38  ;;  %5144 = vmatpush1.msk.msra.mxu1 %vm425_vm0, %v5603_v13  ;;  %v6210_v45 = vpop.permute.xlu0 %1470 }
 0x1c4   : > { %8391 = vst [vmem:[#allocation21_spill] sm:$0xff] %v6210_v45 }
 0x1c6   : > { %v6200_v16 = vpop.permute.xlu1 %1397  ;;  %5142 = vmatmul.mubr.msk.f32.gmra.mrb[8].mxu1 %vm418_vm2, %v5138_v20 }
 0x1c7   : > { %1379 = vmatprep.mubr.f32.mxu1 %v6181_v38  ;;  %v6242_v28 = vpop.permute.xlu0 %1707 }
 0x1c8   : > { %v1716_v22 = vmul.f32 %v6242_v28, %v6276_v2 }
 0x1ca   : > { %v6207_v44 = vpop.permute.xlu1 %1437  ;;  %5145 = vmatmul.mubr.msk.f32.vlgmr.msra.gmra.mrb[6].mxu1 %vm418_vm2, %v5135_v11 }
 0x1cb   : > { %v1444_v13 = vmul.f32 %v6181_v38, %v6207_v44  ;;  %1385 = vmatprep.mubr.f32.mxu1 %v6181_v38  ;;  %v6246_v10 = vpop.permute.xlu0 %1769 }
 0x1cc   : > { %v1777_v21 = vmul.f32 %v6246_v10, %v6278_v53 }
 0x1cd   : > { %v1479_v24 = vmul.f32 %v6210_v45, %v1444_v13 }
 0x1ce   : > { %5146 = vmatmul.mubr.msk.f32.gmra.mrb[8].mxu1 %vm418_vm2, %v5136_v0  ;;  %v6220_v7 = vpop.permute.xlu1 %1441 }
 0x1cf   : > { %1491 = vrot.lane.b32.xlu1 %v1479_v24, %s8359_s19  ;;  %v1447_v39 = vmul.f32 %v6220_v7, %v1433_v19  ;;  %2722 = vmatprep.mubr.f32.mxu1 %v6181_v38  ;;  %v6258_v14 = vpop.permute.xlu0 %1654 }
 0x1d0   : > { %8394 = vst [vmem:[#allocation24_spill] sm:$0xff] %v6258_v14 }
 0x1d1   : > { %v1482_v37 = vmul.f32 %v6210_v45, %v1447_v39 }
 0x1d3   : > { %1535 = vrot.lane.b32.xlu1 %v1523_v3, %s8243_s24  ;;  %v6229_v47 = vpop.permute.xlu1 %1520  ;;  %1497 = vrot.lane.b32.xlu0 %v1482_v37, %s8359_s19  ;;  %v1824_v50 = vpop.permute.xlu0 %1823 }
 0x1d4   : > { %v1526_v48 = vmul.f32 %v6229_v47, %v1433_v19  ;;  %v1832_v33 = vmul.f32 %v1824_v50, %v6276_v2 }
 0x1d7   : > { %1541 = vrot.lane.b32.xlu0 %v1526_v48, %s8243_s24  ;;  %v6307_v61 = vpop.permute.xlu0 %1872 }
 0x1d8   : > { %v6234_v60 = vpop.permute.xlu1 %1561 }
 0x1d9   : > { %v1568_v62 = vmul.f32 %v6181_v38, %v6234_v60 }
 0x1db   : > { %v6309_v43 = vpop.permute.xlu0 %1778 }
 0x1dc   : > { %8400 = vst [vmem:[#allocation30_spill] sm:$0xff] %v6309_v43 }
 0x1dd   : > { %v6236_v57 = vpop.permute.xlu1 %1641 }
 0x1de   : > { %v1648_v42 = vmul.f32 %v6181_v38, %v6236_v57 }
 0x1df   : > { %v6315_v13 = vpop.permute.xlu0 %1881 }
 0x1e0   : > { %v1663_v32 = vmul.f32 %v6258_v14, %v1648_v42  ;;  %8401 = vst [vmem:[#allocation31_spill] sm:$0xff] %v6315_v13 }
 0x1e1   : > { %v6238_v27 = vpop.permute.xlu1 %1645 }
 0x1e2   : > { %v1651_v35 = vmul.f32 %v6238_v27, %v1433_v19 }
 0x1e3   : > { %v6317_v0 = vpop.permute.xlu0 %1414 }
 0x1e4   : > { %v1666_v15 = vmul.f32 %v6258_v14, %v1651_v35 }
 0x1e5   : > { %v6240_v51 = vpop.permute.xlu1 %1472 }
 0x1e6   : > { %8392 = vst [vmem:[#allocation22_spill] sm:$0xff] %v6240_v51 }
 0x1e9   : > { %v6244_v59 = vpop.permute.xlu1 %1711 }
 0x1ea   : > { %v1719_v17 = vmul.f32 %v6244_v59, %v6278_v53 }
 0x1ee   : > { %v6248_v55 = vpop.permute.xlu1 %1765  ;;  %v1403_v37 = vpop.permute.xlu0 %1402 }
 0x1ef   : > { %v1774_v4 = vmul.f32 %v6248_v55, %v6276_v2 }
 0x1f2   : > { %v6256_v41 = vpop.permute.xlu1 %1594 }
 0x1f3   : > { %8393 = vst [vmem:[#allocation23_spill] sm:$0xff] %v6256_v41  ;;  %v1603_v18 = vmul.f32 %v6256_v41, %v1568_v62  ;;  %v1606_v12 = vmul.f32 %v6256_v41, %v1571_v30 }
 0x1f5   : > { %1615 = vrot.lane.b32.xlu1 %v1603_v18, %s8336_s16  ;;  %1621 = vrot.lane.b32.xlu0 %v1606_v12, %s8336_s16 }
 0x1f6   : > { %v6266_v34 = vpop.permute.xlu1 %1596 }
 0x1f7   : > { %8395 = vst [vmem:[#allocation25_spill] sm:$0xff] %v6266_v34 }
 0x1f9   : > { %1681 = vrot.lane.b32.xlu0 %v1666_v15, %s8334_s22  ;;  %1675 = vrot.lane.b32.xlu1 %v1663_v32, %s8334_s22 }
 0x1fa   : > { %v6270_v54 = vpop.permute.xlu1 %1656 }
 0x1fb   : > { %8396 = vst [vmem:[#allocation26_spill] sm:$0xff] %v6270_v54 }
 0x1fe   : > { %v6272_v29 = vpop.permute.xlu1 %1827 }
 0x1ff   : > { %v1835_v49 = vmul.f32 %v6272_v29, %v6278_v53 }
 0x203   : > { %v6274_v25 = vpop.permute.xlu1 %1868 }
 0x207   : > { %v6280_v6 = vpop.permute.xlu1 %1720 }
 0x208   : > { %8397 = vst [vmem:[#allocation27_spill] sm:$0xff] %v6280_v6 }
 0x20b   : > { %v6286_v26 = vpop.permute.xlu1 %1722 }
 0x20c   : > { %8398 = vst [vmem:[#allocation28_spill] sm:$0xff] %v6286_v26  ;;  %v1730_v63 = vmul.f32 %v6286_v26, %v1716_v22  ;;  %v1733_v56 = vmul.f32 %v6286_v26, %v1719_v17 }
 0x20e   : > { %1744 = vrot.lane.b32.xlu0 %v1730_v63, %s8293_s15 }
 0x20f   : > { %v6293_v40 = vpop.permute.xlu1 %1780 }
 0x210   : > { %8399 = vst [vmem:[#allocation29_spill] sm:$0xff] %v6293_v40  ;;  %v1788_v9 = vmul.f32 %v6293_v40, %v1774_v4  ;;  %v1791_v46 = vmul.f32 %v6293_v40, %v1777_v21  ;;  %v6356_v4 = vsel %vm8325_vm4, %v6210_v45, %v6240_v51 }
 0x211   : > { %8402 = vst [vmem:[#allocation32_spill] sm:$0xff] %v6356_v4 }
 0x212   : > { %1750 = vrot.lane.b32.xlu0 %v1733_v56, %s8293_s15 }
 0x216   : > { %1802 = vrot.lane.b32.xlu0 %v1788_v9, %s8247_s20 }
 0x21a   : > { %1808 = vrot.lane.b32.xlu0 %v1791_v46, %s8247_s20  ;;  %v6367_v46 = vsel %vm8365_vm13, %v6256_v41, %v6266_v34 }
 0x21b   : > { %8403 = vst [vmem:[#allocation33_spill] sm:$0xff] %v6367_v46 }
 0x21e   : > { %1846 = vrot.lane.b32.xlu0 %v1832_v33, %s8241_s14 }
 0x222   : > { %1852 = vrot.lane.b32.xlu0 %v1835_v49, %s8241_s14 }
 0x291   : > { %v6311_v20 = vpop.f32.mrb[4].mxu1 }
 0x292   : > { %v6313_v11 = vpop.f32.mrb[5].mxu1 }
 0x29d   : > { %v1381_v19 = vpop.f32.mrb[6].mxu1 }
 0x29e   : > { %v6320_v24 = vadd.f32 %v6200_v16, %v1381_v19  ;;  %v1383_v39 = vpop.f32.mrb[7].mxu1  ;;  %v6378_v19 = vsel %vm8366_vm14, %v6258_v14, %v6270_v54 }
 0x29f   : > { %v6323_v3 = vadd.f32 %v6200_v16, %v1383_v39  ;;  %8404 = vst [vmem:[#allocation34_spill] sm:$0xff] %v6378_v19 }
 0x2a0   : > { %v1524_v48 = vmul.f32 %v6187_v36, %v6320_v24  ;;  %v1830_v16 = vmul.f32 %v1824_v50, %v6320_v24  ;;  %v1445_v22 = vmul.f32 %v6207_v44, %v6320_v24  ;;  %v1649_v33 = vmul.f32 %v6236_v57, %v6320_v24 }
 0x2a1   : > { %v1387_v30 = vpop.f32.mrb[8].mxu1  ;;  %v1525_v62 = vmul.f32 %v6187_v36, %v6323_v3  ;;  %v1446_v42 = vmul.f32 %v6207_v44, %v6323_v3  ;;  %v1570_v15 = vmul.f32 %v6234_v60, %v6323_v3  ;;  %v1831_v32 = vmul.f32 %v1824_v50, %v6323_v3 }
 0x2a2   : > { %v6331_v35 = vadd.f32 %v1403_v37, %v1387_v30  ;;  %v1389_v18 = vpop.f32.mrb[9].mxu1  ;;  %1537 = vrot.lane.b32.xlu1 %v1524_v48, %s8243_s24  ;;  %v1650_v63 = vmul.f32 %v6236_v57, %v6323_v3  ;;  %v1480_v56 = vmul.f32 %v6356_v4, %v1445_v22  ;;  %v1569_v44 = vmul.f32 %v6234_v60, %v6320_v24 }
 0x2a3   : > { %v6334_v12 = vadd.f32 %v1403_v37, %v1389_v18  ;;  %1539 = vrot.lane.b32.xlu0 %v1525_v62, %s8243_s24  ;;  %v1481_v36 = vmul.f32 %v6240_v51, %v1446_v42  ;;  %v1605_v17 = vmul.f32 %v6266_v34, %v1570_v15  ;;  %v1664_v39 = vmul.f32 %v6378_v19, %v1649_v33 }
 0x2a4   : > { %1428 = vst [vmem:[#allocation2 + $0x68] sm:$0xf] %v6331_v35  ;;  %v1665_v21 = vmul.f32 %v6270_v54, %v1650_v63  ;;  %v1604_v50 = vmul.f32 %v6367_v46, %v1569_v44  ;;  %v1714_v37 = vmul.f32 %v6242_v28, %v6320_v24  ;;  %v1772_v62 = vmul.f32 %v6248_v55, %v6320_v24 }
 0x2a5   : > { %1429 = vst [vmem:[#allocation2 + $0x70] sm:$0xf] %v6334_v12  ;;  %v6404_v22 = vsel %vm1687_vm5, %v6280_v6, %v6286_v26  ;;  %v1773_v63 = vmul.f32 %v6248_v55, %v6323_v3  ;;  %v1876_v55 = vmul.f32 %v6274_v25, %v6323_v3 }
 0x2a6   : > { %1842 = vrot.lane.b32.xlu1 %v1830_v16, %s8241_s14  ;;  %v1728_v30 = vmul.f32 %v6280_v6, %v1714_v37  ;;  %v1786_v16 = vmul.f32 %v6309_v43, %v1772_v62  ;;  %8405 = vst [vmem:[#allocation35_spill] sm:$0xff] %v6404_v22 }
 0x2a7   : > { %1495 = vrot.lane.b32.xlu0 %v1481_v36, %s8359_s19  ;;  %v1715_v36 = vmul.f32 %v6242_v28, %v6323_v3 }
 0x2aa   : > { %1844 = vrot.lane.b32.xlu1 %v1831_v32, %s8241_s14 }
 0x2ab   : > { %1619 = vrot.lane.b32.xlu0 %v1605_v17, %s8336_s16  ;;  %v1703_v9 = vld [vmem:[#allocation2 + $0x68] sm:$0xf]  ;;  %v1729_v17 = vmul.f32 %v6404_v22, %v1715_v36 }
 0x2ac   : > { %v1833_v60 = vmul.f32 %v6272_v29, %v1703_v9  ;;  %v1435_v49 = vld [vmem:[#allocation2 + $0x70] sm:$0xf]  ;;  %v1717_v48 = vmul.f32 %v6244_v59, %v1703_v9  ;;  %v1775_v18 = vmul.f32 %v6246_v10, %v1703_v9 }
 0x2ad   : > { %v1528_v57 = vmul.f32 %v6229_v47, %v1435_v49  ;;  %v1449_v32 = vmul.f32 %v6220_v7, %v1435_v49  ;;  %v1573_v44 = vmul.f32 %v6198_v23, %v1435_v49 }
 0x2ae   : > { %1493 = vrot.lane.b32.xlu1 %v1480_v56, %s8359_s19  ;;  %v1731_v42 = vmul.f32 %v6280_v6, %v1717_v48  ;;  %v1789_v15 = vmul.f32 %v6309_v43, %v1775_v18  ;;  %v6413_v56 = vsel %vm8292_vm12, %v6309_v43, %v6293_v40  ;;  %v1704_v18 = vld [vmem:[#allocation2 + $0x70] sm:$0xf] }
 0x2af   : > { %1679 = vrot.lane.b32.xlu0 %v1665_v21, %s8334_s22  ;;  %v1484_v28 = vmul.f32 %v6240_v51, %v1449_v32  ;;  %8406 = vst [vmem:[#allocation36_spill] sm:$0xff] %v6413_v56  ;;  %v6418_v21 = vpop.permute.xlu1 %1883  ;;  %v1608_v33 = vmul.f32 %v6266_v34, %v1573_v44  ;;  %v6475_v44 = vld [vmem:[%s8179_s5 + $0x28] sm:$0xf] }
 0x2b0   : > { %8407 = vst [vmem:[#allocation37_spill] sm:$0xff] %v6418_v21 }
 0x2b2   : > { %1617 = vrot.lane.b32.xlu1 %v1604_v50, %s8336_s16  ;;  %v1787_v50 = vmul.f32 %v6413_v56, %v1773_v63  ;;  %v1718_v63 = vmul.f32 %v6244_v59, %v1704_v18 }
 0x2b3   : > { %1848 = vrot.lane.b32.xlu0 %v1833_v60, %s8241_s14  ;;  %v6427_v60 = vsel %vm394_vm3, %v6315_v13, %v6418_v21 }
 0x2b4   : > { %8408 = vst [vmem:[#allocation38_spill] sm:$0xff] %v6427_v60  ;;  %v1890_v37 = vmul.f32 %v6427_v60, %v1876_v55  ;;  %v8409_v55 = vmov 2  }
 0x2b6   : > { %1677 = vrot.lane.b32.xlu1 %v1664_v39, %s8334_s22  ;;  %v1653_v39 = vmul.f32 %v6238_v27, %v1435_v49  ;;  %v1880_v49 = vmul.f32 %v6307_v61, %v6278_v53 }
 0x2b7   : > { %1545 = vrot.lane.b32.xlu0 %v1528_v57, %s8243_s24  ;;  %v1877_v57 = vmul.f32 %v6274_v25, %v6276_v2  ;;  %v1834_v2 = vmul.f32 %v6272_v29, %v1704_v18  ;;  %v1128_v29 = vld [vmem:[%s8181_s7] sm:$0x3f] }
 0x2b8   : > { %v1668_v48 = vmul.f32 %v6270_v54, %v1653_v39  ;;  %v1894_v36 = vmul.f32 %v6418_v21, %v1880_v49  ;;  %v8410_v39 = vmov 5  }
 0x2ba   : > { %1740 = vrot.lane.b32.xlu1 %v1728_v30, %s8293_s15  ;;  %v1434_v30 = vld [vmem:[#allocation2 + $0x68] sm:$0xf] }
 0x2bb   : > { %1746 = vrot.lane.b32.xlu0 %v1731_v42, %s8293_s15  ;;  %v1527_v62 = vmul.f32 %v6229_v47, %v1434_v30  ;;  %v1891_v42 = vmul.f32 %v6418_v21, %v1877_v57  ;;  %v1572_v53 = vmul.f32 %v6198_v23, %v1434_v30  ;;  %v6465_v23 = vld [vmem:[%s8179_s5 + $0x20] sm:$0xff]  ;;  %v1875_v57 = vmul.f32 %v6274_v25, %v6320_v24 }
 0x2bc   : > { %v8412_v25 = vmov 8  }
 0x2be   : > { %1798 = vrot.lane.b32.xlu1 %v1786_v16, %s8247_s20  ;;  %v1448_v16 = vmul.f32 %v6220_v7, %v1434_v30  ;;  %v1607_v7 = vmul.f32 %v6367_v46, %v1572_v53 }
 0x2bf   : > { %1804 = vrot.lane.b32.xlu0 %v1789_v15, %s8247_s20  ;;  %v1878_v15 = vmul.f32 %v6307_v61, %v1703_v9  ;;  %v1652_v9 = vmul.f32 %v6238_v27, %v1434_v30  ;;  %v1776_v27 = vmul.f32 %v6246_v10, %v1704_v18  ;;  %v1889_v30 = vmul.f32 %v6315_v13, %v1875_v57 }
 0x2c0   : > { %v1483_v47 = vmul.f32 %v6356_v4, %v1448_v16  ;;  %v6516_v16 = vpop.permute.xlu1 %1419 }
 0x2c1   : > { %v1892_v32 = vmul.f32 %v6315_v13, %v1878_v15  ;;  %v1790_v59 = vmul.f32 %v6413_v56, %v1776_v27  ;;  %v8413_v15 = vmov 1  }
 0x2c2   : > { %1742 = vrot.lane.b32.xlu1 %v1729_v17, %s8293_s15  ;;  %v1667_v17 = vmul.f32 %v6378_v19, %v1652_v9 }
 0x2c3   : > { %1501 = vrot.lane.b32.xlu0 %v1484_v28, %s8359_s19  ;;  %v1732_v28 = vmul.f32 %v6404_v22, %v1718_v63 }
 0x2c6   : > { %1800 = vrot.lane.b32.xlu1 %v1787_v50, %s8247_s20  ;;  %v6478_v50 = vpop.permute.xlu0 %1497 }
 0x2c7   : > { %1625 = vrot.lane.b32.xlu0 %v1608_v33, %s8336_s16  ;;  %v1879_v33 = vmul.f32 %v6307_v61, %v1704_v18  ;;  %v8411_v61 = vmov 6  }
 0x2ca   : > { %1903 = vrot.lane.b32.xlu1 %v1890_v37, %s8245_s21  ;;  %v6485_v10 = vpop.permute.xlu0 %1541  ;;  %v1893_v37 = vmul.f32 %v6427_v60, %v1879_v33 }
 0x2cb   : > { %1685 = vrot.lane.b32.xlu0 %v1668_v48, %s8334_s22 }
 0x2ce   : > { %1543 = vrot.lane.b32.xlu1 %v1527_v62, %s8243_s24  ;;  %v6493_v48 = vpop.permute.xlu0 %1621  ;;  %v5152_v62 = vld [vmem:[%s8181_s7 + $0x8] sm:$0x3f]  ;;  %s8418_s24 = smov 112  }
 0x2cf   : > { %1905 = vrot.lane.b32.xlu0 %v1891_v42, %s8245_s21  ;;  %v5168_v42 = vld [vmem:[%s8178_s4 + $0x20] sm:$0xff] }
 0x2d2   : > { %1850 = vrot.lane.b32.xlu1 %v1834_v2, %s8241_s14  ;;  %v6502_v49 = vpop.permute.xlu0 %1681  ;;  %v5169_v2 = vld [vmem:[%s8178_s4 + $0x28] sm:$0xf]  ;;  %s8471_s14 = smov 94  }
 0x2d3   : > { %1911 = vrot.lane.b32.xlu0 %v1894_v36, %s8245_s21 }
 0x2d6   : > { %1499 = vrot.lane.b32.xlu1 %v1483_v47, %s8359_s19  ;;  %v6509_v18 = vpop.permute.xlu0 %1744  ;;  %v1492_v47 = vpop.permute.xlu1 %1491 }
 0x2d7   : > { %1907 = vrot.lane.b32.xlu0 %v1892_v32, %s8245_s21 }
 0x2da   : > { %1623 = vrot.lane.b32.xlu1 %v1607_v7, %s8336_s16  ;;  %v6518_v36 = vpop.permute.xlu0 %1750  ;;  %v6529_v7 = vpop.permute.xlu1 %1535 }
 0x2db   : > { %1131 = vperm.xlu0 %5382, %v1128_v29  }
 0x2de   : > { %1683 = vrot.lane.b32.xlu1 %v1667_v17, %s8334_s22  ;;  %v6523_v53 = vpop.permute.xlu0 %1802  ;;  %v6533_v29 = vpop.permute.xlu1 %1615  ;;  %v8414_v17 = vmov 3  }
 0x2df   : > { %2247 = vperm.xlu0 %5382, %v6465_v23  }
 0x2e2   : > { %1748 = vrot.lane.b32.xlu1 %v1732_v28, %s8293_s15  ;;  %v6527_v32 = vpop.permute.xlu0 %1808  ;;  %v6539_v63 = vpop.permute.xlu1 %1675  ;;  %s8430_s15 = smov 111  }
 0x2e3   : > { %5387 = vset.pattern.permute.xlu0 %v8409_v55 }
 0x2e4   : > { %2345 = vperm.xlu0 %5387, %v6475_v44  }
 0x2e6   : > { %1806 = vrot.lane.b32.xlu1 %v1790_v59, %s8247_s20  ;;  %v6535_v9 = vpop.permute.xlu0 %1846  ;;  %s8459_s20 = smov 96  }
 0x2e8   : > { %5389 = vset.pattern.permute.xlu0 %v8410_v39 }
 0x2e9   : > { %2447 = vperm.xlu0 %5389, %v6465_v23  }
 0x2ea   : > { %1909 = vrot.lane.b32.xlu1 %v1893_v37, %s8245_s21  ;;  %v6541_v28 = vpop.permute.xlu0 %1852 }
 0x2ed   : > { %5392 = vset.pattern.permute.xlu0 %v8411_v61 }
 0x2ee   : > { %1901 = vrot.lane.b32.xlu1 %v1889_v30, %s8245_s21  ;;  %2501 = vperm.xlu0 %5392, %v6475_v44   ;;  %s8458_s21 = smov 98  }
 0x2f2   : > { %1931 = vperm.xlu1 %5384, %v5152_v62   ;;  %5394 = vset.pattern.permute.xlu0 %v8412_v25  ;;  %v8415_v62 = vmov 7  }
 0x2f3   : > { %2591 = vperm.xlu0 %5394, %v6465_v23  }
 0x2f6   : > { %2207 = vperm.xlu1 %5384, %v5168_v42  }
 0x2f7   : > { %5397 = vset.pattern.permute.xlu0 %v8387_v5 }
 0x2f8   : > { %2229 = vperm.xlu0 %5397, %v6475_v44  }
 0x2fa   : > { %2212 = vperm.xlu1 %5384, %v5169_v2  }
 0x2fc   : > { %5398 = vset.pattern.permute.xlu0 %v8413_v15 }
 0x2fd   : > { %2297 = vperm.xlu0 %5398, %v6465_v23  }
 0x2fe   : > { %2251 = vperm.xlu1 %5384, %v6475_v44  }
 0x302   : > { %5385 = vset.pattern.permute.xlu1 %v8413_v15 }
 0x303   : > { %2301 = vperm.xlu1 %5385, %v6475_v44  }
 0x307   : > { %5386 = vset.pattern.permute.xlu1 %v8409_v55 }
 0x308   : > { %2341 = vperm.xlu1 %5386, %v6465_v23  }
 0x30c   : > { %5388 = vset.pattern.permute.xlu1 %v8414_v17 }
 0x30d   : > { %2391 = vperm.xlu1 %5388, %v6465_v23  }
 0x311   : > { %2395 = vperm.xlu1 %5388, %v6475_v44  }
 0x314   : > { %v1538_v27 = vpop.permute.xlu1 %1537 }
 0x315   : > { %v1540_v59 = vpop.permute.xlu0 %1539  ;;  %5390 = vset.pattern.permute.xlu1 %v8410_v39 }
 0x316   : > { %2451 = vperm.xlu1 %5390, %v6475_v44  }
 0x318   : > { %v6546_v33 = vpop.permute.xlu1 %1842 }
 0x319   : > { %v1496_v37 = vpop.permute.xlu0 %1495 }
 0x31a   : > { %5391 = vset.pattern.permute.xlu1 %v8411_v61 }
 0x31b   : > { %2497 = vperm.xlu1 %5391, %v6465_v23  }
 0x31c   : > { %v6550_v57 = vpop.permute.xlu1 %1844 }
 0x31d   : > { %v1620_v30 = vpop.permute.xlu0 %1619 }
 0x31f   : > { %5393 = vset.pattern.permute.xlu1 %v8415_v62 }
 0x320   : > { %v1494_v42 = vpop.permute.xlu1 %1493  ;;  %2547 = vperm.xlu1 %5393, %v6465_v23  }
 0x321   : > { %v1680_v2 = vpop.permute.xlu0 %1679  ;;  %v1504_v14 = vsel %vm394_vm3, %v1494_v42, %v1496_v37  ;;  %v1503_v37 = vsel %vm394_vm3, %v1492_v47, %v1494_v42 }
 0x324   : > { %v1618_v13 = vpop.permute.xlu1 %1617  ;;  %2551 = vperm.xlu1 %5393, %v6475_v44  }
 0x325   : > { %v6555_v21 = vpop.permute.xlu0 %1848 }
 0x328   : > { %v1678_v60 = vpop.permute.xlu1 %1677  ;;  %5395 = vset.pattern.permute.xlu1 %v8412_v25  ;;  %v1425_v25 = vmul.f32 %v6516_v16, %v6334_v12 }
 0x329   : > { %2595 = vperm.xlu1 %5395, %v6475_v44   ;;  %v1546_v56 = vpop.permute.xlu0 %1545 }
 0x32c   : > { %v6559_v22 = vpop.permute.xlu1 %1740 }
 0x32d   : > { %v1747_v43 = vpop.permute.xlu0 %1746  ;;  %5396 = vset.pattern.permute.xlu1 %v8387_v5 }
 0x32e   : > { %2224 = vperm.xlu1 %5396, %v6465_v23   ;;  %v1423_v23 = vmul.f32 %v6317_v0, %v6323_v3  ;;  %v1422_v3 = vmul.f32 %v6317_v0, %v6320_v24 }
 0x330   : > { %v6563_v6 = vpop.permute.xlu1 %1798  ;;  %v1512_v61 = vadd.f32 %v1504_v14, %v1423_v23 }
 0x331   : > { %v6565_v19 = vpop.permute.xlu0 %1804 }
 0x332   : > { %5399 = vset.pattern.permute.xlu1 %v8388_v31  ;;  %v1424_v31 = vmul.f32 %v6516_v16, %v6331_v35  ;;  %v1629_v35 = vsel %vm8292_vm12, %v1618_v13, %v1620_v30 }
 0x334   : > { %v1743_v46 = vpop.permute.xlu1 %1742 }
 0x335   : > { %v1502_v54 = vpop.permute.xlu0 %1501 }
 0x338   : > { %v1801_v4 = vpop.permute.xlu1 %1800 }
 0x339   : > { %v1626_v44 = vpop.permute.xlu0 %1625 }
 0x33c   : > { %v6568_v34 = vpop.permute.xlu1 %1903 }
 0x33d   : > { %v1686_v40 = vpop.permute.xlu0 %1685 }
 0x340   : > { %v1544_v51 = vpop.permute.xlu1 %1543 }
 0x341   : > { %v1906_v62 = vpop.permute.xlu0 %1905  ;;  %v1550_v12 = vsel %vm1547_vm6, %v6485_v10, %v1544_v51  ;;  %v1551_v14 = vsel %vm1547_vm6, %v1544_v51, %v1546_v56  ;;  %v1628_v10 = vsel %vm8292_vm12, %v6533_v29, %v1618_v13  ;;  %v1753_v51 = vsel %vm8366_vm14, %v1743_v46, %v6509_v18 }
 0x344   : > { %v6570_v26 = vpop.permute.xlu1 %1850 }
 0x345   : > { %v1912_v16 = vpop.permute.xlu0 %1911 }
 0x348   : > { %v1500_v41 = vpop.permute.xlu1 %1499 }
 0x349   : > { %v1505_v45 = vsel %vm394_vm3, %v6478_v50, %v1500_v41  ;;  %v1506_v5 = vsel %vm394_vm3, %v1500_v41, %v1502_v54  ;;  %v1549_v50 = vsel %vm1547_vm6, %v1538_v27, %v1540_v59  ;;  %v1511_v41 = vadd.f32 %v1503_v37, %v1422_v3 }
 0x34a   : > { %v1513_v39 = vadd.f32 %v1505_v45, %v1424_v31  ;;  %v1514_v17 = vadd.f32 %v1506_v5, %v1425_v25  ;;  %v1557_v54 = vadd.f32 %v1549_v50, %v1512_v61  ;;  %v1548_v31 = vsel %vm1547_vm6, %v6529_v7, %v1538_v27 }
 0x34b   : > { %v1689_v5 = vsel %vm1687_vm5, %v1678_v60, %v1680_v2  ;;  %v1556_v24 = vadd.f32 %v1548_v31, %v1511_v41  ;;  %v1752_v2 = vsel %vm8366_vm14, %v6559_v22, %v1743_v46  ;;  %v1914_v22 = vsel %vm8325_vm4, %v6568_v34, %v1906_v62 }
 0x34c   : > { %v1624_v55 = vpop.permute.xlu1 %1623  ;;  %v1558_v23 = vadd.f32 %v1550_v12, %v1513_v39  ;;  %v1559_v47 = vadd.f32 %v1551_v14, %v1514_v17  ;;  %v1637_v61 = vadd.f32 %v1629_v35, %v1557_v54 }
 0x34d   : > { %v1630_v45 = vsel %vm8292_vm12, %v6493_v48, %v1624_v55  ;;  %v1631_v0 = vsel %vm8292_vm12, %v1624_v55, %v1626_v44  ;;  %v1688_v55 = vsel %vm1687_vm5, %v6539_v63, %v1678_v60  ;;  %v1811_v48 = vsel %vm8365_vm13, %v1801_v4, %v6523_v53 }
 0x34e   : > { %v1697_v25 = vadd.f32 %v1689_v5, %v1637_v61  ;;  %v1638_v7 = vadd.f32 %v1630_v45, %v1558_v23  ;;  %v1639_v17 = vadd.f32 %v1631_v0, %v1559_v47  ;;  %v1636_v29 = vadd.f32 %v1628_v10, %v1556_v24  ;;  %v5151_v10 = vld [vmem:[%s8180_s6 + $0x8] sm:$0x3f] }
 0x34f   : > { %vm1854_vm12 = vcmask 785408  }
 0x350   : > { %v1684_v42 = vpop.permute.xlu1 %1683  ;;  %v1761_v59 = vadd.f32 %v1753_v51, %v1697_v25  ;;  %v1696_v44 = vadd.f32 %v1688_v55, %v1636_v29  ;;  %v1856_v46 = vsel %vm1854_vm12, %v6550_v57, %v6535_v9  ;;  %v1857_v14 = vsel %vm1854_vm12, %v6555_v21, %v6570_v26  ;;  %v2243_v55 = vld [vmem:[#allocation2 + $0x20] sm:$0xf] }
 0x351   : > { %v1690_v56 = vsel %vm1687_vm5, %v6502_v49, %v1684_v42  ;;  %v1691_v39 = vsel %vm1687_vm5, %v1684_v42, %v1686_v40  ;;  %v1908_v49 = vpop.permute.xlu0 %1907  ;;  %v1855_v62 = vsel %vm1854_vm12, %v6546_v33, %v6550_v57 }
 0x352   : > { %v1698_v30 = vadd.f32 %v1690_v56, %v1638_v7  ;;  %v1699_v40 = vadd.f32 %v1691_v39, %v1639_v17  ;;  %v1819_v37 = vadd.f32 %v1811_v48, %v1761_v59  ;;  %v1760_v50 = vadd.f32 %v1752_v2, %v1696_v44 }
 0x354   : > { %v1749_v27 = vpop.permute.xlu1 %1748 }
 0x355   : > { %v1754_v13 = vsel %vm8366_vm14, %v1747_v43, %v1749_v27  ;;  %v1755_v18 = vsel %vm8366_vm14, %v1749_v27, %v6518_v36  ;;  %v1810_v43 = vsel %vm8365_vm13, %v6563_v6, %v1801_v4  ;;  %v1858_v6 = vsel %vm1854_vm12, %v6570_v26, %v6541_v28 }
 0x356   : > { %v1762_v60 = vadd.f32 %v1754_v13, %v1698_v30  ;;  %v1763_v63 = vadd.f32 %v1755_v18, %v1699_v40  ;;  %v1818_v4 = vadd.f32 %v1810_v43, %v1760_v50  ;;  %v6695_v43 = vld [vmem:[#allocation2 + $0x18] sm:$0xff] }
 0x358   : > { %v1807_v3 = vpop.permute.xlu1 %1806  ;;  %v1863_v0 = vadd.f32 %v1855_v62, %v1818_v4 }
 0x359   : > { %v1812_v36 = vsel %vm8365_vm13, %v6565_v19, %v1807_v3  ;;  %v1813_v53 = vsel %vm8365_vm13, %v1807_v3, %v6527_v32  ;;  %v1864_v19 = vadd.f32 %v1856_v46, %v1819_v37  ;;  %v6707_v46 = vld [vmem:[#allocation2 + $0x38] sm:$0xf] }
 0x35a   : > { %v1820_v41 = vadd.f32 %v1812_v36, %v1762_v60  ;;  %v1821_v54 = vadd.f32 %v1813_v53, %v1763_v63  ;;  %v6618_v35 = vpop.permute.xlu0 %1131 }
 0x35b   : > { %v1922_v47 = vadd.f32 %v1914_v22, %v1864_v19 }
 0x35c   : > { %v1910_v12 = vpop.permute.xlu1 %1909  ;;  %v1866_v32 = vadd.f32 %v1858_v6, %v1821_v54  ;;  %v1865_v42 = vadd.f32 %v1857_v14, %v1820_v41  ;;  %v8416_v6 = vld [vmem:[#allocation12_spill] sm:$0xff] }
 0x35d   : > { %v1916_v23 = vsel %vm8325_vm4, %v1910_v12, %v1912_v16  ;;  %v1915_v28 = vsel %vm8325_vm4, %v1908_v49, %v1910_v12 }
 0x35e   : > { %v1924_v9 = vadd.f32 %v1916_v23, %v1866_v32  ;;  %v6632_v31 = vpop.permute.xlu0 %2247  ;;  %v1923_v16 = vadd.f32 %v1915_v28, %v1865_v42  ;;  %v8417_v23 = vld [vmem:[#allocation13_spill] sm:$0xff] }
 0x35f   : > { %v2254_v5 = vmul.f32 %v6181_v38, %v6632_v31 }
 0x360   : > { %v5258_v45 = vpack.c.bf16 %v1924_v9, %v1922_v47  ;;  %v1902_v24 = vpop.permute.xlu1 %1901 }
 0x361   : > { %v1913_v26 = vsel %vm8325_vm4, %v1902_v24, %v6568_v34  ;;  %v2260_v21 = vmul.f32 %v2254_v5, %v5712_v52  ;;  %v1212_v24 = vadd.f32 %v6311_v20, %v6618_v35  ;;  %vm8447_vm4 = vcmask 908288  }
 0x362   : > { %v1921_v61 = vadd.f32 %v1913_v26, %v1863_v0  ;;  %5260 = vmatprep.subr.msk.bf16.mxu0 %vm6163_vm15, %v5258_v45  ;;  %v1214_v45 = vadd.f32 %v6313_v11, %v6618_v35  ;;  %v5159_v35 = vld [vmem:[%s8177_s3 + $0x28] sm:$0xf] }
 0x363   : > { %2272 = vrot.lane.b32.xlu0 %v2260_v21, %s8361_s29  ;;  %v6646_v33 = vpop.permute.xlu0 %2345 }
 0x364   : > { %v5261_v57 = vpack.c.bf16 %v1923_v16, %v1921_v61  ;;  %v2351_v30 = vmul.f32 %v6646_v33, %v2243_v55 }
 0x366   : > { %5263 = vmatpush1.bf16.msk.msra.mxu0 %vm6163_vm15, %v5261_v57  ;;  %v2357_v44 = vmul.f32 %v2351_v30, %v5739_v1  ;;  %v1217_v57 = vmul.f32 0.2, %v1214_v45 }
 0x368   : > { %v6653_v34 = vpop.permute.xlu0 %2447  ;;  %v6743_v11 = vmax.f32 %v1214_v45, %v1217_v57  ;;  %v8422_v45 = vld [vmem:[#allocation8_spill] sm:$0xff]  ;;  %v8425_v57 = vld [vmem:[#allocation11_spill] sm:$0xff] }
 0x369   : > { %5155 = vmatmul.mubr.msk.f32.vlgmr.msra.gmra.mrb[4].mxu0 %vm1134_vm1, %v5151_v10  ;;  %v2456_v50 = vmul.f32 %v6653_v34, %v6695_v43 }
 0x36a   : > { %2100 = vmatprep.mubr.f32.mxu0 %v6181_v38 }
 0x36b   : > { %v2462_v4 = vmul.f32 %v2456_v50, %v8416_v6 }
 0x36d   : > { %v6657_v51 = vpop.permute.xlu0 %2501 }
 0x36e   : > { %v2509_v14 = vmul.f32 %v6657_v51, %v6707_v46 }
 0x370   : > { %v2515_v9 = vmul.f32 %v2509_v14, %v8417_v23  ;;  %v8420_v14 = vld [vmem:[#allocation4_spill] sm:$0xff] }
 0x371   : > { %v1932_v56 = vpop.permute.xlu1 %1931 }
 0x372   : > { %v6659_v39 = vpop.permute.xlu0 %2591 }
 0x375   : > { %v6661_v25 = vpop.permute.xlu1 %2207 }
 0x377   : > { %v6663_v7 = vpop.permute.xlu0 %2229 }
 0x379   : > { %v6665_v17 = vpop.permute.xlu1 %2212 }
 0x37c   : > { %v6667_v27 = vpop.permute.xlu0 %2297 }
 0x37d   : > { %v6669_v48 = vpop.permute.xlu1 %2251  ;;  %v2304_v13 = vmul.f32 %v6181_v38, %v6667_v27 }
 0x37e   : > { %v2257_v18 = vmul.f32 %v6669_v48, %v2243_v55 }
 0x37f   : > { %2316 = vrot.lane.b32.xlu0 %v2304_v13, %s8363_s13 }
 0x380   : > { %v2263_v29 = vmul.f32 %v2257_v18, %v5712_v52 }
 0x382   : > { %2278 = vrot.lane.b32.xlu1 %v2263_v29, %s8361_s29  ;;  %v6677_v59 = vpop.permute.xlu1 %2301  ;;  %v5158_v29 = vld [vmem:[%s8177_s3 + $0x20] sm:$0xff] }
 0x383   : > { %v2307_v49 = vmul.f32 %v6677_v59, %v2243_v55 }
 0x386   : > { %2322 = vrot.lane.b32.xlu1 %v2307_v49, %s8363_s13  ;;  %v5157_v49 = vld [vmem:[%s8176_s2 + $0x28] sm:$0xf] }
 0x387   : > { %v6682_v40 = vpop.permute.xlu1 %2341 }
 0x388   : > { %v2348_v2 = vmul.f32 %v6181_v38, %v6682_v40 }
 0x38a   : > { %2372 = vrot.lane.b32.xlu1 %v2357_v44, %s8332_s26  ;;  %v2354_v37 = vmul.f32 %v2348_v2, %v5739_v1 }
 0x38c   : > { %v6689_v60 = vpop.permute.xlu1 %2391  ;;  %2366 = vrot.lane.b32.xlu0 %v2354_v37, %s8332_s26 }
 0x38d   : > { %v2398_v63 = vmul.f32 %v6181_v38, %v6689_v60 }
 0x38f   : > { %v2404_v3 = vmul.f32 %v2398_v63, %v5724_v58 }
 0x390   : > { %v6697_v36 = vpop.permute.xlu1 %2395 }
 0x391   : > { %v2401_v53 = vmul.f32 %v6697_v36, %v2243_v55  ;;  %2416 = vrot.lane.b32.xlu0 %v2404_v3, %s8330_s12  ;;  %v1216_v55 = vmul.f32 0.2, %v1212_v24 }
 0x393   : > { %v2407_v41 = vmul.f32 %v2401_v53, %v5724_v58  ;;  %v6747_v20 = vmax.f32 %v1212_v24, %v1216_v55  ;;  %v8423_v24 = vld [vmem:[#allocation16_spill] sm:$0xff] }
 0x395   : > { %v6704_v54 = vpop.permute.xlu1 %2451  ;;  %2422 = vrot.lane.b32.xlu1 %v2407_v41, %s8330_s12 }
 0x396   : > { %v2459_v22 = vmul.f32 %v6704_v54, %v6707_v46 }
 0x398   : > { %v2465_v32 = vmul.f32 %v2459_v22, %v8416_v6 }
 0x399   : > { %2476 = vrot.lane.b32.xlu1 %v2462_v4, %s8328_s25 }
 0x39a   : > { %v6713_v19 = vpop.permute.xlu1 %2497 }
 0x39b   : > { %v2506_v12 = vmul.f32 %v6713_v19, %v6695_v43 }
 0x39d   : > { %2482 = vrot.lane.b32.xlu1 %v2465_v32, %s8328_s25  ;;  %v2512_v47 = vmul.f32 %v2506_v12, %v8417_v23 }
 0x39f   : > { %v2548_v42 = vpop.permute.xlu1 %2547 }
 0x3a0   : > { %v2556_v62 = vmul.f32 %v2548_v42, %v6695_v43 }
 0x3a1   : > { %2526 = vrot.lane.b32.xlu1 %v2512_v47, %s8326_s28 }
 0x3a3   : > { %v6726_v28 = vpop.permute.xlu1 %2551 }
 0x3a4   : > { %v2559_v5 = vmul.f32 %v6726_v28, %v6707_v46 }
 0x3a5   : > { %2532 = vrot.lane.b32.xlu1 %v2515_v9, %s8326_s28 }
 0x3a9   : > { %2570 = vrot.lane.b32.xlu1 %v2556_v62, %s8418_s24  ;;  %v8421_v62 = vld [vmem:[#allocation15_spill] sm:$0xff] }
 0x3ad   : > { %2576 = vrot.lane.b32.xlu1 %v2559_v5, %s8418_s24 }
 0x43c   : > { %v2009_v0 = vpop.f32.mrb[4].mxu0 }
 0x43d   : > { %v2010_v26 = vadd.f32 %v2009_v0, %v1932_v56  ;;  %v2011_v21 = vpop.f32.mrb[5].mxu0 }
 0x43e   : > { %v2012_v16 = vadd.f32 %v2011_v21, %v1932_v56  ;;  %v5156_v56 = vld [vmem:[%s8176_s2 + $0x20] sm:$0xff]  ;;  %v8424_v21 = vld [vmem:[#allocation10_spill] sm:$0xff] }
 0x43f   : > { %v2014_v61 = vmul.f32 0.2, %v2010_v26 }
 0x440   : > { %v2015_v10 = vmul.f32 0.2, %v2012_v16 }
 0x441   : > { %v6738_v18 = vmax.f32 %v2010_v26, %v2014_v61 }
 0x442   : > { %v6736_v13 = vmax.f32 %v2012_v16, %v2015_v10 }
 0x444   : > { %5160 = vmatprep.subr.msk.mxu0 %vm425_vm0, %v6736_v13 }
 0x445   : > { %5161 = vmatpush1.msk.msra.mxu0 %vm425_vm0, %v6738_v18 }
 0x446   : > { %5162 = vmatmul.mubr.msk.f32.vlgmr.msra.gmra.mrb[6].mxu0 %vm418_vm2, %v5158_v29  ;;  %5164 = vmatprep.subr.msk.mxu0 %vm425_vm0, %v6743_v11 }
 0x447   : > { %5165 = vmatpush1.msk.msra.mxu0 %vm425_vm0, %v6747_v20  ;;  %2106 = vmatprep.mubr.f32.mxu0 %v6181_v38 }
 0x44a   : > { %5163 = vmatmul.mubr.msk.f32.gmra.mrb[8].mxu0 %vm418_vm2, %v5159_v35  ;;  %v8426_v35 = vld [vmem:[#allocation7_spill] sm:$0xff] }
 0x44b   : > { %2189 = vmatprep.mubr.f32.mxu0 %v6181_v38 }
 0x44e   : > { %5166 = vmatmul.mubr.msk.f32.vlgmr.msra.gmra.mrb[6].mxu0 %vm418_vm2, %v5156_v56 }
 0x44f   : > { %2195 = vmatprep.mubr.f32.mxu0 %v6181_v38 }
 0x452   : > { %5167 = vmatmul.mubr.msk.f32.gmra.mrb[8].mxu0 %vm418_vm2, %v5157_v49 }
 0x453   : > { %3425 = vmatprep.mubr.f32.mxu0 %v6181_v38 }
 0x521   : > { %v2191_v30 = vpop.f32.mrb[6].mxu0 }
 0x522   : > { %v6773_v2 = vadd.f32 %v6661_v25, %v2191_v30  ;;  %v2193_v44 = vpop.f32.mrb[7].mxu0 }
 0x523   : > { %v6776_v37 = vadd.f32 %v6661_v25, %v2193_v44 }
 0x524   : > { %v2305_v63 = vmul.f32 %v6667_v27, %v6773_v2  ;;  %v2255_v50 = vmul.f32 %v6632_v31, %v6773_v2  ;;  %v2554_v25 = vmul.f32 %v2548_v42, %v6773_v2  ;;  %v2349_v32 = vmul.f32 %v6682_v40, %v6773_v2 }
 0x525   : > { %v2197_v3 = vpop.f32.mrb[8].mxu0  ;;  %v2306_v53 = vmul.f32 %v6667_v27, %v6776_v37  ;;  %v8419_v27 = vld [vmem:[#allocation14_spill] sm:$0xff]  ;;  %v2256_v12 = vmul.f32 %v6632_v31, %v6776_v37  ;;  %v2350_v9 = vmul.f32 %v6682_v40, %v6776_v37  ;;  %v2399_v5 = vmul.f32 %v6689_v60, %v6773_v2 }
 0x526   : > { %v6785_v38 = vadd.f32 %v6665_v17, %v2197_v3  ;;  %v2199_v41 = vpop.f32.mrb[9].mxu0  ;;  %2318 = vrot.lane.b32.xlu0 %v2305_v63, %s8363_s13  ;;  %v2261_v4 = vmul.f32 %v2255_v50, %v8419_v27  ;;  %v2355_v31 = vmul.f32 %v2349_v32, %v8421_v62  ;;  %v2454_v26 = vmul.f32 %v6653_v34, %v6773_v2  ;;  %v8427_v63 = vld [vmem:[#allocation17_spill] sm:$0xff] }
 0x527   : > { %v6789_v22 = vadd.f32 %v6665_v17, %v2199_v41  ;;  %2320 = vrot.lane.b32.xlu1 %v2306_v53, %s8363_s13  ;;  %v2555_v17 = vmul.f32 %v2548_v42, %v6776_v37  ;;  %v2262_v47 = vmul.f32 %v2256_v12, %v8420_v14  ;;  %v2356_v0 = vmul.f32 %v2350_v9, %v8422_v45 }
 0x528   : > { %2238 = vst [vmem:[#allocation2 + $0x28] sm:$0xf] %v6785_v38  ;;  %v2400_v42 = vmul.f32 %v6689_v60, %v6776_v37  ;;  %v2405_v40 = vmul.f32 %v2399_v5, %v8423_v24  ;;  %v2460_v10 = vmul.f32 %v2454_v26, %v8425_v57  ;;  %v2504_v60 = vmul.f32 %v6713_v19, %v6773_v2 }
 0x529   : > { %2239 = vst [vmem:[#allocation2 + $0x30] sm:$0xf] %v6789_v22  ;;  %v2455_v49 = vmul.f32 %v6653_v34, %v6776_v37  ;;  %v2505_v53 = vmul.f32 %v6713_v19, %v6776_v37  ;;  %v8428_v34 = vld [vmem:[#allocation18_spill] sm:$0xff]  ;;  %v8429_v19 = vld [vmem:[#allocation20_spill] sm:$0xff]  ;;  %v2234_v1 = vmul.f32 %v6663_v7, %v6785_v38  ;;  %v2235_v52 = vmul.f32 %v6663_v7, %v6789_v22 }
 0x52a   : > { %2566 = vrot.lane.b32.xlu0 %v2554_v25, %s8418_s24  ;;  %v2406_v16 = vmul.f32 %v2400_v42, %v8424_v21  ;;  %v2510_v56 = vmul.f32 %v2504_v60, %v8426_v35 }
 0x52b   : > { %2274 = vrot.lane.b32.xlu1 %v2261_v4, %s8361_s29  ;;  %v2461_v3 = vmul.f32 %v2455_v49, %v8427_v63  ;;  %v2511_v25 = vmul.f32 %v2505_v53, %v8428_v34  ;;  %v2599_v4 = vmul.f32 %v6659_v39, %v6776_v37  ;;  %v8431_v49 = vld [vmem:[#allocation19_spill] sm:$0xff]  ;;  %v8432_v53 = vld [vmem:[#allocation9_spill] sm:$0xff] }
 0x52d   : > { %v2605_v32 = vmul.f32 %v2599_v4, %v8429_v19  ;;  %v5191_v4 = vld [vmem:[%s8179_s5 + $0x30] sm:$0xff] }
 0x52e   : > { %2568 = vrot.lane.b32.xlu0 %v2555_v17, %s8418_s24 }
 0x52f   : > { %2276 = vrot.lane.b32.xlu1 %v2262_v47, %s8361_s29  ;;  %v2443_v61 = vld [vmem:[#allocation2 + $0x28] sm:$0xf] }
 0x530   : > { %v2557_v55 = vmul.f32 %v6726_v28, %v2443_v61  ;;  %v2245_v29 = vld [vmem:[#allocation2 + $0x30] sm:$0xf]  ;;  %v2457_v44 = vmul.f32 %v6704_v54, %v2443_v61  ;;  %v2507_v41 = vmul.f32 %v6657_v51, %v2443_v61  ;;  %v2244_v9 = vld [vmem:[#allocation2 + $0x28] sm:$0xf] }
 0x531   : > { %v2309_v30 = vmul.f32 %v6677_v59, %v2245_v29  ;;  %v2259_v17 = vmul.f32 %v6669_v48, %v2245_v29  ;;  %v2308_v5 = vmul.f32 %v6677_v59, %v2244_v9  ;;  %v2444_v42 = vld [vmem:[#allocation2 + $0x30] sm:$0xf] }
 0x532   : > { %2368 = vrot.lane.b32.xlu0 %v2355_v31, %s8332_s26  ;;  %v2463_v50 = vmul.f32 %v2457_v44, %v8425_v57  ;;  %v2513_v12 = vmul.f32 %v2507_v41, %v8426_v35  ;;  %v2353_v31 = vmul.f32 %v6646_v33, %v2245_v29  ;;  %v2558_v26 = vmul.f32 %v6726_v28, %v2444_v42 }
 0x533   : > { %2370 = vrot.lane.b32.xlu1 %v2356_v0, %s8332_s26  ;;  %v2265_v47 = vmul.f32 %v2259_v17, %v8420_v14  ;;  %v2508_v41 = vmul.f32 %v6657_v51, %v2444_v42  ;;  %v2598_v51 = vmul.f32 %v6659_v39, %v6773_v2 }
 0x534   : > { %v2359_v0 = vmul.f32 %v2353_v31, %v8422_v45  ;;  %v5192_v31 = vld [vmem:[%s8179_s5 + $0x38] sm:$0xf] }
 0x536   : > { %2418 = vrot.lane.b32.xlu0 %v2405_v40, %s8330_s12  ;;  %v2403_v40 = vmul.f32 %v6697_v36, %v2245_v29  ;;  %v2352_v29 = vmul.f32 %v6646_v33, %v2244_v9 }
 0x537   : > { %2420 = vrot.lane.b32.xlu1 %v2406_v16, %s8330_s12  ;;  %v2258_v16 = vmul.f32 %v6669_v48, %v2244_v9 }
 0x538   : > { %v2409_v60 = vmul.f32 %v2403_v40, %v8424_v21  ;;  %v2358_v48 = vmul.f32 %v2352_v29, %v8421_v62  ;;  %v8435_v40 = vmov 5  }
 0x539   : > { %v2264_v59 = vmul.f32 %v2258_v16, %v8419_v27  ;;  %v8436_v16 = vmov 7  }
 0x53a   : > { %2472 = vrot.lane.b32.xlu0 %v2460_v10, %s8328_s25  ;;  %v2600_v10 = vmul.f32 %v6659_v39, %v6695_v43  ;;  %v2402_v43 = vmul.f32 %v6697_v36, %v2244_v9  ;;  %v8434_v39 = vmov 3  }
 0x53b   : > { %2572 = vrot.lane.b32.xlu1 %v2557_v55, %s8418_s24  ;;  %v2596_v55 = vpop.permute.xlu1 %2595 }
 0x53c   : > { %v2606_v28 = vmul.f32 %v2600_v10, %v8431_v49  ;;  %v2601_v44 = vmul.f32 %v2596_v55, %v2443_v61  ;;  %v2408_v33 = vmul.f32 %v2402_v43, %v8423_v24  ;;  %v5190_v61 = vld [vmem:[%s8178_s4 + $0x38] sm:$0xf] }
 0x53e   : > { %2522 = vrot.lane.b32.xlu0 %v2510_v56, %s8326_s28  ;;  %v2603_v56 = vmul.f32 %v2596_v55, %v6707_v46  ;;  %v2458_v46 = vmul.f32 %v6704_v54, %v2444_v42  ;;  %v2514_v54 = vmul.f32 %v2508_v41, %v8428_v34 }
 0x53f   : > { %2326 = vrot.lane.b32.xlu1 %v2309_v30, %s8363_s13 }
 0x540   : > { %v2609_v30 = vmul.f32 %v2603_v56, %v8431_v49  ;;  %v2464_v36 = vmul.f32 %v2458_v46, %v8427_v63  ;;  %v5189_v56 = vld [vmem:[%s8178_s4 + $0x30] sm:$0xff]  ;;  %v8440_v46 = vmov 4  }
 0x542   : > { %2474 = vrot.lane.b32.xlu0 %v2461_v3, %s8328_s25  ;;  %v6876_v3 = vpop.permute.xlu1 %2224 }
 0x543   : > { %2478 = vrot.lane.b32.xlu1 %v2463_v50, %s8328_s25  ;;  %v2607_v50 = vmul.f32 %v2601_v44, %v8432_v53  ;;  %v2233_v14 = vmul.f32 %v6876_v3, %v6776_v37 }
 0x546   : > { %2524 = vrot.lane.b32.xlu0 %v2511_v25, %s8326_s28  ;;  %v6889_v25 = vpop.permute.xlu1 %2278 }
 0x547   : > { %2528 = vrot.lane.b32.xlu1 %v2513_v12, %s8326_s28  ;;  %v2602_v12 = vmul.f32 %v2596_v55, %v2444_v42  ;;  %v2273_v55 = vpop.permute.xlu0 %2272 }
 0x54a   : > { %2618 = vrot.lane.b32.xlu0 %v2605_v32, %s8430_s15  ;;  %v6897_v17 = vpop.permute.xlu1 %2322  ;;  %v2608_v32 = vmul.f32 %v2602_v12, %v8429_v19 }
 0x54b   : > { %2282 = vrot.lane.b32.xlu1 %v2265_v47, %s8361_s29  ;;  %v2604_v47 = vmul.f32 %v2598_v51, %v8432_v53  ;;  %v6927_v29 = vpop.permute.xlu0 %2316 }
 0x54e   : > { %2324 = vrot.lane.b32.xlu0 %v2308_v5, %s8363_s13  ;;  %v6905_v9 = vpop.permute.xlu1 %2372  ;;  %v8433_v5 = vmov 2  }
 0x54f   : > { %2376 = vrot.lane.b32.xlu1 %v2359_v0, %s8332_s26 }
 0x552   : > { %2574 = vrot.lane.b32.xlu0 %v2558_v26, %s8418_s24  ;;  %v6912_v0 = vpop.permute.xlu1 %2422 }
 0x553   : > { %2426 = vrot.lane.b32.xlu1 %v2409_v60, %s8330_s12  ;;  %v8437_v60 = vmov 6  }
 0x556   : > { %2280 = vrot.lane.b32.xlu0 %v2264_v59, %s8361_s29  ;;  %v6915_v42 = vpop.permute.xlu1 %2476  ;;  %v8438_v59 = vmov 8  }
 0x557   : > { %2620 = vrot.lane.b32.xlu1 %v2606_v28, %s8430_s15 }
 0x55a   : > { %2374 = vrot.lane.b32.xlu0 %v2358_v48, %s8332_s26  ;;  %v6919_v26 = vpop.permute.xlu1 %2482  ;;  %v8439_v48 = vmov 0   ;;  %s8490_s26 = smov 15  }
 0x55b   : > { %2626 = vrot.lane.b32.xlu1 %v2609_v30, %s8430_s15  ;;  %v6938_v30 = vpop.permute.xlu0 %2366 }
 0x55e   : > { %2424 = vrot.lane.b32.xlu0 %v2408_v33, %s8330_s12  ;;  %v6923_v10 = vpop.permute.xlu1 %2526  ;;  %s8492_s12 = smov 1  }
 0x55f   : > { %2622 = vrot.lane.b32.xlu1 %v2607_v50, %s8430_s15  ;;  %v6943_v33 = vpop.permute.xlu0 %2416 }
 0x562   : > { %2480 = vrot.lane.b32.xlu0 %v2464_v36, %s8328_s25  ;;  %v6932_v28 = vpop.permute.xlu1 %2532  ;;  %s8494_s25 = smov 127  }
 0x563   : > { %2915 = vperm.xlu1 %5399, %v5190_v61  }
 0x566   : > { %2530 = vrot.lane.b32.xlu0 %v2514_v54, %s8326_s28  ;;  %v6936_v43 = vpop.permute.xlu1 %2570  ;;  %s8496_s28 = smov 113  }
 0x567   : > { %2950 = vperm.xlu1 %5399, %v5191_v4  }
 0x56a   : > { %2624 = vrot.lane.b32.xlu0 %v2608_v32, %s8430_s15  ;;  %v6941_v44 = vpop.permute.xlu1 %2576 }
 0x56b   : > { %5400 = vset.pattern.permute.xlu1 %v8413_v15 }
 0x56c   : > { %3000 = vperm.xlu1 %5400, %v5191_v4  }
 0x56e   : > { %2616 = vrot.lane.b32.xlu0 %v2604_v47, %s8430_s15 }
 0x570   : > { %5401 = vset.pattern.permute.xlu1 %v8433_v5 }
 0x571   : > { %3044 = vperm.xlu1 %5401, %v5191_v4  }
 0x572   : > { %3004 = vperm.xlu0 %5398, %v5192_v31  }
 0x575   : > { %3048 = vperm.xlu1 %5401, %v5192_v31  }
 0x576   : > { %5402 = vset.pattern.permute.xlu0 %v8434_v39 }
 0x577   : > { %3094 = vperm.xlu0 %5402, %v5191_v4  }
 0x579   : > { %5403 = vset.pattern.permute.xlu1 %v8434_v39 }
 0x57a   : > { %3098 = vperm.xlu1 %5403, %v5192_v31  }
 0x57b   : > { %5405 = vset.pattern.permute.xlu0 %v8435_v40 }
 0x57c   : > { %3154 = vperm.xlu0 %5405, %v5192_v31  }
 0x57e   : > { %5404 = vset.pattern.permute.xlu1 %v8435_v40 }
 0x57f   : > { %3150 = vperm.xlu1 %5404, %v5191_v4  }
 0x580   : > { %5407 = vset.pattern.permute.xlu0 %v8436_v16 }
 0x581   : > { %3250 = vperm.xlu0 %5407, %v5191_v4  }
 0x583   : > { %5406 = vset.pattern.permute.xlu1 %v8437_v60 }
 0x584   : > { %3200 = vperm.xlu1 %5406, %v5191_v4  }
 0x585   : > { %5410 = vset.pattern.permute.xlu0 %v8438_v59 }
 0x586   : > { %3298 = vperm.xlu0 %5410, %v5192_v31  }
 0x588   : > { %3204 = vperm.xlu1 %5406, %v5192_v31  }
 0x58a   : > { %5411 = vset.pattern.permute.xlu0 %v8439_v48 }
 0x58b   : > { %2910 = vperm.xlu0 %5411, %v5189_v56  }
 0x58c   : > { %5408 = vset.pattern.permute.xlu1 %v8436_v16 }
 0x58d   : > { %3254 = vperm.xlu1 %5408, %v5192_v31  }
 0x58f   : > { %2954 = vperm.xlu0 %5411, %v5192_v31  }
 0x591   : > { %5409 = vset.pattern.permute.xlu1 %v8438_v59 }
 0x592   : > { %3294 = vperm.xlu1 %5409, %v5191_v4  }
 0x596   : > { %5412 = vset.pattern.permute.xlu1 %v8440_v46 }
 0x597   : > { %2927 = vperm.xlu1 %5412, %v5191_v4  }
 0x598   : > { %v2319_v50 = vpop.permute.xlu0 %2318 }
 0x599   : > { %v2321_v36 = vpop.permute.xlu1 %2320 }
 0x59a   : > { %v2329_v60 = vsel %vm8320_vm11, %v2319_v50, %v2321_v36 }
 0x59b   : > { %2932 = vperm.xlu1 %5412, %v5192_v31  }
 0x59c   : > { %v6946_v61 = vpop.permute.xlu0 %2566 }
 0x59d   : > { %v2275_v41 = vpop.permute.xlu1 %2274 }
 0x59e   : > { %v2284_v37 = vsel %vm8324_vm10, %v2273_v55, %v2275_v41 }
 0x59f   : > { %5413 = vset.pattern.permute.xlu1 %v8439_v48 }
 0x5a0   : > { %v6949_v54 = vpop.permute.xlu0 %2568 }
 0x5a1   : > { %v2277_v12 = vpop.permute.xlu1 %2276 }
 0x5a2   : > { %v2285_v45 = vsel %vm8324_vm10, %v2275_v41, %v2277_v12 }
 0x5a3   : > { %v2293_v48 = vadd.f32 %v2285_v45, %v2233_v14 }
 0x5a4   : > { %v2369_v32 = vpop.permute.xlu0 %2368 }
 0x5a5   : > { %v2371_v51 = vpop.permute.xlu1 %2370  ;;  %v2337_v40 = vadd.f32 %v2329_v60, %v2293_v48 }
 0x5a8   : > { %v2419_v47 = vpop.permute.xlu0 %2418 }
 0x5a9   : > { %v2421_v56 = vpop.permute.xlu1 %2420 }
 0x5ac   : > { %v2473_v53 = vpop.permute.xlu0 %2472 }
 0x5ad   : > { %v6951_v49 = vpop.permute.xlu1 %2572 }
 0x5b0   : > { %v6953_v19 = vpop.permute.xlu0 %2522 }
 0x5b1   : > { %v2327_v4 = vpop.permute.xlu1 %2326 }
 0x5b4   : > { %v2475_v34 = vpop.permute.xlu0 %2474 }
 0x5b5   : > { %v2479_v31 = vpop.permute.xlu1 %2478  ;;  %v2484_v41 = vsel %vm8323_vm7, %v2473_v53, %v2475_v34 }
 0x5b8   : > { %v2525_v63 = vpop.permute.xlu0 %2524 }
 0x5b9   : > { %v2529_v35 = vpop.permute.xlu1 %2528 }
 0x5bc   : > { %v6955_v57 = vpop.permute.xlu0 %2618 }
 0x5bd   : > { %v2283_v24 = vpop.permute.xlu1 %2282 }
 0x5c0   : > { %v2325_v62 = vpop.permute.xlu0 %2324 }
 0x5c1   : > { %v2377_v27 = vpop.permute.xlu1 %2376  ;;  %v2330_v38 = vsel %vm8320_vm11, %v6897_v17, %v2325_v62  ;;  %v2331_v7 = vsel %vm8320_vm11, %v2325_v62, %v2327_v4  ;;  %v2378_v17 = vsel %vm8322_vm9, %v6938_v30, %v2369_v32  ;;  %v2485_v62 = vsel %vm8323_vm7, %v2475_v34, %v6915_v42 }
 0x5c4   : > { %v6957_v21 = vpop.permute.xlu0 %2574 }
 0x5c5   : > { %v2427_v46 = vpop.permute.xlu1 %2426 }
 0x5c8   : > { %v2281_v23 = vpop.permute.xlu0 %2280 }
 0x5c9   : > { %v2286_v6 = vsel %vm8324_vm10, %v6889_v25, %v2281_v23  ;;  %v2287_v58 = vsel %vm8324_vm10, %v2281_v23, %v2283_v24  ;;  %v2232_v25 = vmul.f32 %v6876_v3, %v6773_v2  ;;  %v2379_v23 = vsel %vm8322_vm9, %v2369_v32, %v2371_v51  ;;  %v2621_v3 = vpop.permute.xlu1 %2620 }
 0x5ca   : > { %v2294_v59 = vadd.f32 %v2286_v6, %v2234_v1  ;;  %v2295_v16 = vadd.f32 %v2287_v58, %v2235_v52  ;;  %v2429_v58 = vsel %vm8321_vm8, %v2419_v47, %v2421_v56  ;;  %v2328_v2 = vsel %vm8320_vm11, %v6927_v29, %v2319_v50 }
 0x5cb   : > { %v2292_v22 = vadd.f32 %v2284_v37, %v2232_v25  ;;  %v2387_v24 = vadd.f32 %v2379_v23, %v2337_v40  ;;  %v2428_v40 = vsel %vm8321_vm8, %v6943_v33, %v2419_v47  ;;  %vm8441_vm11 = vcmask 924672  }
 0x5cc   : > { %v2375_v12 = vpop.permute.xlu0 %2374  ;;  %v2338_v14 = vadd.f32 %v2330_v38, %v2294_v59  ;;  %v2339_v1 = vadd.f32 %v2331_v7, %v2295_v16  ;;  %v2535_v29 = vsel %vm8441_vm11, %v2525_v63, %v6923_v10  ;;  %v2629_v23 = vsel %vm8447_vm4, %v6955_v57, %v2621_v3 }
 0x5cd   : > { %v2380_v6 = vsel %vm8322_vm9, %v6905_v9, %v2375_v12  ;;  %v2381_v45 = vsel %vm8322_vm9, %v2375_v12, %v2377_v27  ;;  %v2336_v55 = vadd.f32 %v2328_v2, %v2292_v22  ;;  %v2437_v9 = vadd.f32 %v2429_v58, %v2387_v24  ;;  %v2627_v56 = vpop.permute.xlu1 %2626 }
 0x5ce   : > { %v2388_v59 = vadd.f32 %v2380_v6, %v2338_v14  ;;  %v2389_v27 = vadd.f32 %v2381_v45, %v2339_v1 }
 0x5cf   : > { %v2386_v50 = vadd.f32 %v2378_v17, %v2336_v55 }
 0x5d0   : > { %v2425_v52 = vpop.permute.xlu0 %2424 }
 0x5d1   : > { %v2430_v16 = vsel %vm8321_vm8, %v6912_v0, %v2425_v52  ;;  %v2431_v60 = vsel %vm8321_vm8, %v2425_v52, %v2427_v46  ;;  %v2493_v0 = vadd.f32 %v2485_v62, %v2437_v9  ;;  %v2436_v32 = vadd.f32 %v2428_v40, %v2386_v50  ;;  %vm8442_vm8 = vmmov %vm8441_vm11  ;;  %v2623_v14 = vpop.permute.xlu1 %2622  ;;  %v8451_v62 = vld [vmem:[#allocation21_spill] sm:$0xff] }
 0x5d2   : > { %v2438_v36 = vadd.f32 %v2430_v16, %v2388_v59  ;;  %v2439_v46 = vadd.f32 %v2431_v60, %v2389_v27  ;;  %v2534_v10 = vsel %vm8442_vm8, %v6953_v19, %v2525_v63  ;;  %vm8443_vm11 = vmmov %vm8442_vm8  ;;  %v5179_v60 = vld [vmem:[%s8177_s3 + $0x30] sm:$0xff]  ;;  %v8453_v27 = vld [vmem:[#allocation23_spill] sm:$0xff] }
 0x5d3   : > { %v2543_v51 = vadd.f32 %v2535_v29, %v2493_v0  ;;  %vm8444_vm9 = vmmov %vm8442_vm8  ;;  %v5178_v29 = vld [vmem:[%s8176_s2 + $0x38] sm:$0xf] }
 0x5d4   : > { %v2481_v48 = vpop.permute.xlu0 %2480 }
 0x5d5   : > { %v2486_v30 = vsel %vm8323_vm7, %v2479_v31, %v2481_v48  ;;  %v2487_v42 = vsel %vm8323_vm7, %v2481_v48, %v6919_v26  ;;  %v2492_v31 = vadd.f32 %v2484_v41, %v2436_v32  ;;  %vm8445_vm7 = vcmask 916480   ;;  %v2946_v32 = vld [vmem:[#allocation2 + $0x60] sm:$0xf] }
 0x5d6   : > { %v2494_v4 = vadd.f32 %v2486_v30, %v2438_v36  ;;  %v2495_v12 = vadd.f32 %v2487_v42, %v2439_v46  ;;  %v2579_v34 = vsel %vm8445_vm7, %v6949_v54, %v6936_v43  ;;  %vm8446_vm10 = vmmov %vm8445_vm7  ;;  %v8454_v42 = vld [vmem:[#allocation24_spill] sm:$0xff] }
 0x5d7   : > { %v2581_v53 = vsel %vm8446_vm10, %v6957_v21, %v6941_v44  ;;  %v2542_v63 = vadd.f32 %v2534_v10, %v2492_v31  ;;  %v2587_v19 = vadd.f32 %v2579_v34, %v2543_v51  ;;  %vm8448_vm8 = vmmov %vm8445_vm7  ;;  %v2578_v44 = vsel %vm8445_vm7, %v6946_v61, %v6949_v54  ;;  %v5172_v61 = vld [vmem:[%s8180_s6 + $0x10] sm:$0x3f]  ;;  %v7032_v54 = vld [vmem:[#allocation2] sm:$0xff] }
 0x5d8   : > { %v2531_v33 = vpop.permute.xlu0 %2530  ;;  %vm8450_vm10 = vmmov %vm8447_vm4 }
 0x5d9   : > { %v2536_v47 = vsel %vm8443_vm11, %v2529_v35, %v2531_v33  ;;  %v2537_v26 = vsel %vm8444_vm9, %v2531_v33, %v6932_v28  ;;  %v2580_v28 = vsel %vm8448_vm8, %v6951_v49, %v6957_v21  ;;  %vm8449_vm9 = vmmov %vm8447_vm4  ;;  %v2637_v22 = vadd.f32 %v2629_v23, %v2587_v19  ;;  %v7113_v23 = vld [vmem:[#allocation2 + $0x78] sm:$0xf] }
 0x5da   : > { %v2544_v37 = vadd.f32 %v2536_v47, %v2494_v4  ;;  %v2545_v25 = vadd.f32 %v2537_v26, %v2495_v12  ;;  %v2586_v6 = vadd.f32 %v2578_v44, %v2542_v63  ;;  %vm8480_vm11 = vcmask 244736  }
 0x5db   : > { %vm8481_vm8 = vmmov %vm8480_vm11 }
 0x5dc   : > { %v2625_v35 = vpop.permute.xlu0 %2624  ;;  %v2589_v38 = vadd.f32 %v2581_v53, %v2545_v25  ;;  %v2588_v43 = vadd.f32 %v2580_v28, %v2544_v37  ;;  %v7105_v37 = vld [vmem:[#allocation2 + $0x58] sm:$0xff]  ;;  %vm8483_vm7 = vmmov %vm8481_vm8 }
 0x5dd   : > { %v2631_v7 = vsel %vm8449_vm9, %v2625_v35, %v2627_v56  ;;  %v2630_v52 = vsel %vm8450_vm10, %v2623_v14, %v2625_v35  ;;  %v8455_v35 = vld [vmem:[#allocation28_spill] sm:$0xff]  ;;  %vm8482_vm9 = vmmov %vm8481_vm8  ;;  %vm8484_vm10 = vcmask 769024  }
 0x5de   : > { %v2639_v1 = vadd.f32 %v2631_v7, %v2589_v38  ;;  %v2638_v24 = vadd.f32 %v2630_v52, %v2588_v43  ;;  %v8457_v43 = vld [vmem:[#allocation29_spill] sm:$0xff] }
 0x5e0   : > { %v5264_v58 = vpack.c.bf16 %v2639_v1, %v2637_v22  ;;  %v2617_v45 = vpop.permute.xlu0 %2616 }
 0x5e1   : > { %v2628_v2 = vsel %vm8447_vm4, %v2617_v45, %v6955_v57  ;;  %vm8485_vm4 = vmmov %vm8484_vm10 }
 0x5e2   : > { %v2636_v21 = vadd.f32 %v2628_v2, %v2586_v6  ;;  %v7021_v49 = vpop.permute.xlu1 %2915  ;;  %5266 = vmatprep.subr.msk.bf16.mxu1 %vm6163_vm15, %v5264_v58 }
 0x5e4   : > { %v5267_v3 = vpack.c.bf16 %v2638_v24, %v2636_v21 }
 0x5e6   : > { %v7025_v17 = vpop.permute.xlu1 %2950  ;;  %5269 = vmatpush1.bf16.msk.msra.mxu1 %vm6163_vm15, %v5267_v3 }
 0x5e7   : > { %v2957_v57 = vmul.f32 %v7032_v54, %v7025_v17  ;;  %5181 = vmatprep.subr.msk.mxu1 %vm425_vm0, %v6736_v13 }
 0x5e9   : > { %5176 = vmatmul.mubr.msk.f32.vlgmr.msra.gmra.mrb[10].mxu1 %vm1134_vm1, %v5172_v61  ;;  %v2963_v16 = vmul.f32 %v2957_v57, %v8451_v62 }
 0x5ea   : > { %5182 = vmatpush1.msk.msra.mxu1 %vm425_vm0, %v6738_v18  ;;  %2809 = vmatprep.mubr.f32.mxu1 %v7032_v54  ;;  %v5180_v18 = vld [vmem:[%s8177_s3 + $0x38] sm:$0xf] }
 0x5eb   : > { %2975 = vrot.lane.b32.xlu0 %v2963_v16, %s8359_s19  ;;  %5185 = vmatprep.subr.msk.mxu1 %vm425_vm0, %v6743_v11  ;;  %v7049_v55 = vpop.permute.xlu1 %3000 }
 0x5ec   : > { %v3007_v13 = vmul.f32 %v7032_v54, %v7049_v55 }
 0x5ed   : > { %5183 = vmatmul.mubr.msk.f32.vlgmr.msra.gmra.mrb[12].mxu1 %vm418_vm2, %v5179_v60 }
 0x5ee   : > { %5186 = vmatpush1.msk.msra.mxu1 %vm425_vm0, %v6747_v20  ;;  %2815 = vmatprep.mubr.f32.mxu1 %v7032_v54  ;;  %v5177_v20 = vld [vmem:[%s8176_s2 + $0x30] sm:$0xff] }
 0x5ef   : > { %3019 = vrot.lane.b32.xlu0 %v3007_v13, %s8452_s27 }
 0x5f0   : > { %v7061_v9 = vpop.permute.xlu1 %3044 }
 0x5f1   : > { %v3051_v11 = vmul.f32 %v7032_v54, %v7061_v9  ;;  %v7065_v59 = vpop.permute.xlu0 %3004  ;;  %5184 = vmatmul.mubr.msk.f32.gmra.mrb[14].mxu1 %vm418_vm2, %v5180_v18 }
 0x5f2   : > { %2892 = vmatprep.mubr.f32.mxu1 %v7032_v54  ;;  %v3010_v10 = vmul.f32 %v7065_v59, %v2946_v32 }
 0x5f3   : > { %v3057_v48 = vmul.f32 %v3051_v11, %v8453_v27 }
 0x5f4   : > { %v7091_v51 = vpop.permute.xlu1 %3048 }
 0x5f5   : > { %3069 = vrot.lane.b32.xlu0 %v3057_v48, %s8336_s16  ;;  %5187 = vmatmul.mubr.msk.f32.vlgmr.msra.gmra.mrb[12].mxu1 %vm418_vm2, %v5177_v20  ;;  %v3054_v47 = vmul.f32 %v7091_v51, %v2946_v32 }
 0x5f6   : > { %v7075_v40 = vpop.permute.xlu0 %3094  ;;  %2898 = vmatprep.mubr.f32.mxu1 %v7032_v54 }
 0x5f7   : > { %v3101_v30 = vmul.f32 %v7032_v54, %v7075_v40  ;;  %v3060_v31 = vmul.f32 %v3054_v47, %v8453_v27 }
 0x5f9   : > { %5188 = vmatmul.mubr.msk.f32.gmra.mrb[14].mxu1 %vm418_vm2, %v5178_v29  ;;  %v3107_v50 = vmul.f32 %v3101_v30, %v8454_v42  ;;  %v7098_v33 = vpop.permute.xlu1 %3098 }
 0x5fa   : > { %4140 = vmatprep.mubr.f32.mxu1 %v7032_v54  ;;  %v3104_v26 = vmul.f32 %v7098_v33, %v2946_v32 }
 0x5fb   : > { %3119 = vrot.lane.b32.xlu0 %v3107_v50, %s8334_s22  ;;  %v7087_v0 = vpop.permute.xlu0 %3154 }
 0x5fc   : > { %v3110_v53 = vmul.f32 %v3104_v26, %v8454_v42  ;;  %v3162_v19 = vmul.f32 %v7087_v0, %v7113_v23  ;;  %v8463_v26 = vld [vmem:[#allocation26_spill] sm:$0xff] }
 0x5fe   : > { %v7107_v25 = vpop.permute.xlu1 %3150  ;;  %v3168_v7 = vmul.f32 %v3162_v19, %v8455_v35 }
 0x5ff   : > { %v3159_v34 = vmul.f32 %v7107_v25, %v7105_v37 }
 0x600   : > { %v3251_v36 = vpop.permute.xlu0 %3250 }
 0x601   : > { %v3165_v38 = vmul.f32 %v3159_v34, %v8455_v35  ;;  %v3259_v52 = vmul.f32 %v3251_v36, %v7105_v37 }
 0x603   : > { %v7116_v63 = vpop.permute.xlu1 %3200 }
 0x604   : > { %v3209_v28 = vmul.f32 %v7116_v63, %v7105_v37 }
 0x605   : > { %v7089_v46 = vpop.permute.xlu0 %3298 }
 0x606   : > { %v3215_v1 = vmul.f32 %v3209_v28, %v8457_v43 }
 0x607   : > { %v7125_v22 = vpop.permute.xlu1 %3204 }
 0x608   : > { %v3212_v14 = vmul.f32 %v7125_v22, %v7113_v23 }
 0x60a   : > { %v2911_v41 = vpop.permute.xlu0 %2910  ;;  %v3218_v44 = vmul.f32 %v3212_v14, %v8457_v43 }
 0x60c   : > { %v7135_v58 = vpop.permute.xlu1 %3254 }
 0x60d   : > { %v3262_v6 = vmul.f32 %v7135_v58, %v7113_v23 }
 0x60e   : > { %v7093_v56 = vpop.permute.xlu0 %2954 }
 0x60f   : > { %v2960_v4 = vmul.f32 %v7093_v56, %v2946_v32 }
 0x611   : > { %v2966_v12 = vmul.f32 %v2960_v4, %v8451_v62 }
 0x613   : > { %2981 = vrot.lane.b32.xlu1 %v2966_v12, %s8359_s19  ;;  %v8462_v12 = vld [vmem:[#allocation32_spill] sm:$0xff] }
 0x617   : > { %3025 = vrot.lane.b32.xlu1 %v3010_v10, %s8452_s27 }
 0x61b   : > { %3075 = vrot.lane.b32.xlu1 %v3060_v31, %s8336_s16 }
 0x61f   : > { %3125 = vrot.lane.b32.xlu1 %v3110_v53, %s8334_s22 }
 0x623   : > { %3179 = vrot.lane.b32.xlu1 %v3165_v38, %s8456_s23 }
 0x627   : > { %3185 = vrot.lane.b32.xlu1 %v3168_v7, %s8456_s23 }
 0x62b   : > { %3229 = vrot.lane.b32.xlu1 %v3215_v1, %s8458_s21 }
 0x62f   : > { %3235 = vrot.lane.b32.xlu1 %v3218_v44, %s8458_s21 }
 0x633   : > { %3273 = vrot.lane.b32.xlu1 %v3259_v52, %s8459_s20 }
 0x637   : > { %3279 = vrot.lane.b32.xlu1 %v3262_v6, %s8459_s20 }
 0x6bc   : > { %v7141_v45 = vpop.f32.mrb[10].mxu1 }
 0x6bd   : > { %v7143_v2 = vpop.f32.mrb[11].mxu1 }
 0x6c8   : > { %v2894_v24 = vpop.f32.mrb[12].mxu1 }
 0x6c9   : > { %v7145_v21 = vadd.f32 %v2911_v41, %v2894_v24  ;;  %v2896_v3 = vpop.f32.mrb[13].mxu1 }
 0x6ca   : > { %v7147_v61 = vadd.f32 %v2911_v41, %v2896_v3  ;;  %v8461_v41 = vld [vmem:[#allocation25_spill] sm:$0xff]  ;;  %v8467_v3 = vld [vmem:[#allocation30_spill] sm:$0xff] }
 0x6cb   : > { %v3008_v57 = vmul.f32 %v7049_v55, %v7145_v21  ;;  %v3257_v48 = vmul.f32 %v3251_v36, %v7145_v21  ;;  %v2958_v50 = vmul.f32 %v7025_v17, %v7145_v21  ;;  %v3052_v47 = vmul.f32 %v7061_v9, %v7145_v21 }
 0x6cc   : > { %v2900_v16 = vpop.f32.mrb[14].mxu1  ;;  %v3009_v60 = vmul.f32 %v7049_v55, %v7147_v61  ;;  %v2959_v13 = vmul.f32 %v7025_v17, %v7147_v61  ;;  %v8460_v55 = vld [vmem:[#allocation22_spill] sm:$0xff]  ;;  %v3053_v30 = vmul.f32 %v7061_v9, %v7147_v61  ;;  %v3103_v4 = vmul.f32 %v7075_v40, %v7147_v61  ;;  %v8464_v17 = vld [vmem:[#allocation33_spill] sm:$0xff] }
 0x6cd   : > { %v7156_v18 = vadd.f32 %v7021_v49, %v2900_v16  ;;  %v2902_v11 = vpop.f32.mrb[15].mxu1  ;;  %3021 = vrot.lane.b32.xlu0 %v3008_v57, %s8452_s27  ;;  %v2964_v10 = vmul.f32 %v2958_v50, %v8462_v12  ;;  %v3058_v34 = vmul.f32 %v3052_v47, %v8464_v17  ;;  %v3102_v53 = vmul.f32 %v7075_v40, %v7145_v21  ;;  %v8465_v9 = vld [vmem:[#allocation34_spill] sm:$0xff]  ;;  %v8466_v40 = vld [vmem:[#allocation27_spill] sm:$0xff]  ;;  %v8469_v50 = vld [vmem:[#allocation36_spill] sm:$0xff] }
 0x6ce   : > { %v7160_v20 = vadd.f32 %v7021_v49, %v2902_v11  ;;  %3023 = vrot.lane.b32.xlu1 %v3009_v60, %s8452_s27  ;;  %v2965_v29 = vmul.f32 %v2959_v13, %v8460_v55  ;;  %v3258_v49 = vmul.f32 %v3251_v36, %v7147_v61  ;;  %v3059_v32 = vmul.f32 %v3053_v30, %v8461_v41  ;;  %v8468_v11 = vld [vmem:[#allocation35_spill] sm:$0xff] }
 0x6cf   : > { %2941 = vst [vmem:[#allocation2 + $0x68] sm:$0xf] %v7156_v18  ;;  %v3109_v31 = vmul.f32 %v3103_v4, %v8463_v26  ;;  %v3108_v28 = vmul.f32 %v3102_v53, %v8465_v9  ;;  %v3157_v7 = vmul.f32 %v7107_v25, %v7145_v21  ;;  %v3207_v52 = vmul.f32 %v7116_v63, %v7145_v21 }
 0x6d0   : > { %2942 = vst [vmem:[#allocation2 + $0x70] sm:$0xf] %v7160_v20  ;;  %v3158_v16 = vmul.f32 %v7107_v25, %v7147_v61  ;;  %v3295_v25 = vpop.permute.xlu1 %3294 }
 0x6d1   : > { %3269 = vrot.lane.b32.xlu0 %v3257_v48, %s8459_s20  ;;  %v3163_v44 = vmul.f32 %v3157_v7, %v8466_v40  ;;  %v3213_v57 = vmul.f32 %v3207_v52, %v8467_v3  ;;  %v3302_v4 = vmul.f32 %v3295_v25, %v7147_v61  ;;  %v8472_v7 = vld [vmem:[#allocation37_spill] sm:$0xff] }
 0x6d2   : > { %2979 = vrot.lane.b32.xlu1 %v2965_v29, %s8359_s19  ;;  %v3164_v48 = vmul.f32 %v3158_v16, %v8468_v11  ;;  %v3208_v29 = vmul.f32 %v7116_v63, %v7147_v61  ;;  %v8470_v63 = vld [vmem:[#allocation38_spill] sm:$0xff] }
 0x6d4   : > { %v7238_v52 = vpop.permute.xlu1 %2927 }
 0x6d5   : > { %3271 = vrot.lane.b32.xlu0 %v3258_v49, %s8459_s20 }
 0x6d6   : > { %3073 = vrot.lane.b32.xlu1 %v3059_v32, %s8336_s16  ;;  %v3146_v36 = vld [vmem:[#allocation2 + $0x68] sm:$0xf]  ;;  %v3214_v32 = vmul.f32 %v3208_v29, %v8469_v50 }
 0x6d7   : > { %v3260_v19 = vmul.f32 %v7135_v58, %v3146_v36  ;;  %v2948_v38 = vld [vmem:[#allocation2 + $0x70] sm:$0xf]  ;;  %v3160_v1 = vmul.f32 %v7087_v0, %v3146_v36  ;;  %v3210_v24 = vmul.f32 %v7125_v22, %v3146_v36 }
 0x6d8   : > { %v3012_v14 = vmul.f32 %v7065_v59, %v2948_v38  ;;  %v2962_v13 = vmul.f32 %v7093_v56, %v2948_v38  ;;  %v3056_v49 = vmul.f32 %v7091_v51, %v2948_v38  ;;  %v3106_v47 = vmul.f32 %v7098_v33, %v2948_v38 }
 0x6d9   : > { %2977 = vrot.lane.b32.xlu0 %v2964_v10, %s8359_s19  ;;  %v3166_v6 = vmul.f32 %v3160_v1, %v8466_v40  ;;  %v3216_v60 = vmul.f32 %v3210_v24, %v8467_v3  ;;  %v3306_v38 = vmul.f32 %v7089_v46, %v7113_v23  ;;  %v3147_v1 = vld [vmem:[#allocation2 + $0x70] sm:$0xf] }
 0x6da   : > { %3123 = vrot.lane.b32.xlu1 %v3109_v31, %s8334_s22  ;;  %v2968_v30 = vmul.f32 %v2962_v13, %v8460_v55  ;;  %v3062_v10 = vmul.f32 %v3056_v49, %v8461_v41  ;;  %v3308_v31 = vmul.f32 %v3302_v4, %v8470_v63  ;;  %v3112_v53 = vmul.f32 %v3106_v47, %v8463_v26  ;;  %v5210_v13 = vld [vmem:[%s8178_s4 + $0x40] sm:$0xff] }
 0x6db   : > { %v3211_v49 = vmul.f32 %v7125_v22, %v3147_v1  ;;  %v3305_v4 = vmul.f32 %v7089_v46, %v3147_v1  ;;  %v3301_v47 = vmul.f32 %v3295_v25, %v7145_v21  ;;  %v2936_v55 = vmul.f32 %v7238_v52, %v7147_v61 }
 0x6dd   : > { %3071 = vrot.lane.b32.xlu0 %v3058_v34, %s8336_s16  ;;  %v3303_v34 = vmul.f32 %v3295_v25, %v7105_v37  ;;  %v3261_v37 = vmul.f32 %v7135_v58, %v3147_v1  ;;  %v7248_v58 = vpop.permute.xlu1 %2932  ;;  %v5194_v25 = vld [vmem:[%s8181_s7 + $0x18] sm:$0x3f] }
 0x6de   : > { %3275 = vrot.lane.b32.xlu1 %v3260_v19, %s8459_s20  ;;  %v2947_v19 = vld [vmem:[#allocation2 + $0x68] sm:$0xf]  ;;  %v2937_v27 = vmul.f32 %v7248_v58, %v7156_v18  ;;  %v2938_v62 = vmul.f32 %v7248_v58, %v7160_v20 }
 0x6df   : > { %v3055_v24 = vmul.f32 %v7091_v51, %v2947_v19 }
 0x6e1   : > { %3121 = vrot.lane.b32.xlu0 %v3108_v28, %s8334_s22  ;;  %v3011_v28 = vmul.f32 %v7065_v59, %v2947_v19  ;;  %v3304_v59 = vmul.f32 %v7089_v46, %v3146_v36  ;;  %v5173_v36 = vld [vmem:[%s8181_s7 + $0x10] sm:$0x3f]  ;;  %v7262_v29 = vpop.permute.xlu1 %2981  ;;  %v5213_v46 = vld [vmem:[%s8179_s5 + $0x48] sm:$0xf] }
 0x6e2   : > { %3029 = vrot.lane.b32.xlu1 %v3012_v14, %s8452_s27  ;;  %v3309_v14 = vmul.f32 %v3303_v34, %v8472_v7 }
 0x6e5   : > { %3175 = vrot.lane.b32.xlu0 %v3163_v44, %s8456_s23  ;;  %v2961_v44 = vmul.f32 %v7093_v56, %v2947_v19  ;;  %v3061_v56 = vmul.f32 %v3055_v24, %v8464_v17 }
 0x6e6   : > { %3181 = vrot.lane.b32.xlu1 %v3166_v6, %s8456_s23  ;;  %v3312_v6 = vmul.f32 %v3306_v38, %v8472_v7 }
 0x6e7   : > { %v2967_v23 = vmul.f32 %v2961_v44, %v8462_v12 }
 0x6e9   : > { %3225 = vrot.lane.b32.xlu0 %v3213_v57, %s8458_s21  ;;  %v8473_v57 = vld [vmem:[#allocation31_spill] sm:$0xff] }
 0x6ea   : > { %3231 = vrot.lane.b32.xlu1 %v3216_v60, %s8458_s21  ;;  %v3310_v16 = vmul.f32 %v3304_v59, %v8473_v57  ;;  %v3105_v60 = vmul.f32 %v7098_v33, %v2947_v19  ;;  %v5212_v33 = vld [vmem:[%s8179_s5 + $0x40] sm:$0xff]  ;;  %v3307_v22 = vmul.f32 %v3301_v47, %v8473_v57  ;;  %v8476_v59 = vmov 7  }
 0x6ec   : > { %v3111_v51 = vmul.f32 %v3105_v60, %v8465_v9  ;;  %v8478_v60 = vmov 4  }
 0x6ed   : > { %3177 = vrot.lane.b32.xlu0 %v3164_v48, %s8456_s23  ;;  %v3161_v48 = vmul.f32 %v7087_v0, %v3147_v1  ;;  %v3217_v0 = vmul.f32 %v3211_v49, %v8469_v50  ;;  %v8479_v49 = vmov 0  }
 0x6ee   : > { %2985 = vrot.lane.b32.xlu1 %v2968_v30, %s8359_s19 }
 0x6ef   : > { %v3167_v30 = vmul.f32 %v3161_v48, %v8468_v11 }
 0x6f1   : > { %3227 = vrot.lane.b32.xlu0 %v3214_v32, %s8458_s21  ;;  %v7271_v32 = vpop.permute.xlu1 %3025 }
 0x6f2   : > { %3079 = vrot.lane.b32.xlu1 %v3062_v10, %s8336_s16  ;;  %v3311_v10 = vmul.f32 %v3305_v4, %v8470_v63 }
 0x6f5   : > { %3321 = vrot.lane.b32.xlu0 %v3308_v31, %s8471_s14  ;;  %v7279_v31 = vpop.permute.xlu1 %3075 }
 0x6f6   : > { %3129 = vrot.lane.b32.xlu1 %v3112_v53, %s8334_s22  ;;  %v5211_v53 = vld [vmem:[%s8178_s4 + $0x48] sm:$0xf] }
 0x6f9   : > { %3027 = vrot.lane.b32.xlu0 %v3011_v28, %s8452_s27  ;;  %v7288_v34 = vpop.permute.xlu1 %3125  ;;  %v8474_v28 = vmov 5  }
 0x6fa   : > { %3323 = vrot.lane.b32.xlu1 %v3309_v14, %s8471_s14  ;;  %v8475_v14 = vmov 6  }
 0x6fd   : > { %3277 = vrot.lane.b32.xlu0 %v3261_v37, %s8459_s20  ;;  %v7296_v19 = vpop.permute.xlu1 %3179  ;;  %v2976_v37 = vpop.permute.xlu0 %2975 }
 0x6fe   : > { %3329 = vrot.lane.b32.xlu1 %v3312_v6, %s8471_s14 }
 0x701   : > { %2983 = vrot.lane.b32.xlu0 %v2967_v23, %s8359_s19  ;;  %v7300_v38 = vpop.permute.xlu1 %3185  ;;  %v7307_v44 = vpop.permute.xlu0 %3019  ;;  %s8552_s19 = smov 30  }
 0x702   : > { %3325 = vrot.lane.b32.xlu1 %v3310_v16, %s8471_s14  ;;  %v8477_v16 = vmov 8  }
 0x705   : > { %3077 = vrot.lane.b32.xlu0 %v3061_v56, %s8336_s16  ;;  %v7304_v1 = vpop.permute.xlu1 %3229  ;;  %v7315_v24 = vpop.permute.xlu0 %3069 }
 0x706   : > { %2646 = vperm.xlu1 %5413, %v5173_v36  }
 0x709   : > { %3127 = vrot.lane.b32.xlu0 %v3111_v51, %s8334_s22  ;;  %v7309_v6 = vpop.permute.xlu1 %3235  ;;  %v7321_v36 = vpop.permute.xlu0 %3119  ;;  %s8554_s22 = smov 2  }
 0x70a   : > { %3625 = vperm.xlu1 %5413, %v5210_v13  }
 0x70d   : > { %3183 = vrot.lane.b32.xlu0 %v3167_v30, %s8456_s23  ;;  %v7313_v23 = vpop.permute.xlu1 %3273 }
 0x70e   : > { %3665 = vperm.xlu1 %5413, %v5212_v33  }
 0x711   : > { %3233 = vrot.lane.b32.xlu0 %v3217_v0, %s8458_s21  ;;  %v7319_v56 = vpop.permute.xlu1 %3279 }
 0x712   : > { %5414 = vset.pattern.permute.xlu1 %v8413_v15 }
 0x713   : > { %3715 = vperm.xlu1 %5414, %v5212_v33  }
 0x715   : > { %3327 = vrot.lane.b32.xlu0 %v3311_v10, %s8471_s14 }
 0x717   : > { %5415 = vset.pattern.permute.xlu1 %v8433_v5 }
 0x718   : > { %3759 = vperm.xlu1 %5415, %v5212_v33  }
 0x719   : > { %3319 = vrot.lane.b32.xlu0 %v3307_v22, %s8471_s14 }
 0x71c   : > { %3763 = vperm.xlu1 %5415, %v5213_v46  }
 0x71d   : > { %3349 = vperm.xlu0 %5411, %v5194_v25  }
 0x720   : > { %5417 = vset.pattern.permute.xlu1 %v8434_v39 }
 0x721   : > { %3630 = vperm.xlu0 %5411, %v5211_v53   ;;  %3813 = vperm.xlu1 %5417, %v5213_v46  }
 0x725   : > { %3669 = vperm.xlu0 %5411, %v5213_v46   ;;  %5418 = vset.pattern.permute.xlu1 %v8474_v28 }
 0x726   : > { %3865 = vperm.xlu1 %5418, %v5212_v33  }
 0x729   : > { %5416 = vset.pattern.permute.xlu0 %v8434_v39 }
 0x72a   : > { %3809 = vperm.xlu0 %5416, %v5212_v33   ;;  %5420 = vset.pattern.permute.xlu1 %v8475_v14 }
 0x72b   : > { %3915 = vperm.xlu1 %5420, %v5212_v33  }
 0x72e   : > { %5419 = vset.pattern.permute.xlu0 %v8474_v28 }
 0x72f   : > { %3869 = vperm.xlu0 %5419, %v5213_v46   ;;  %3919 = vperm.xlu1 %5420, %v5213_v46  }
 0x733   : > { %5421 = vset.pattern.permute.xlu0 %v8476_v59  ;;  %5422 = vset.pattern.permute.xlu1 %v8476_v59 }
 0x734   : > { %3965 = vperm.xlu0 %5421, %v5212_v33   ;;  %3969 = vperm.xlu1 %5422, %v5213_v46  }
 0x738   : > { %5424 = vset.pattern.permute.xlu0 %v8477_v16  ;;  %5423 = vset.pattern.permute.xlu1 %v8477_v16 }
 0x739   : > { %4013 = vperm.xlu0 %5424, %v5213_v46   ;;  %4009 = vperm.xlu1 %5423, %v5212_v33  }
 0x73d   : > { %5425 = vset.pattern.permute.xlu0 %v8413_v15  ;;  %5426 = vset.pattern.permute.xlu1 %v8478_v60 }
 0x73e   : > { %3719 = vperm.xlu0 %5425, %v5213_v46   ;;  %3642 = vperm.xlu1 %5426, %v5212_v33  }
 0x73f   : > { %v3022_v51 = vpop.permute.xlu0 %3021 }
 0x740   : > { %v3024_v13 = vpop.permute.xlu1 %3023 }
 0x742   : > { %3647 = vperm.xlu1 %5426, %v5213_v46  }
 0x743   : > { %v7325_v48 = vpop.permute.xlu0 %3269 }
 0x744   : > { %v2980_v30 = vpop.permute.xlu1 %2979 }
 0x746   : > { %5427 = vset.pattern.permute.xlu1 %v8479_v49 }
 0x747   : > { %v7328_v0 = vpop.permute.xlu0 %3271 }
 0x748   : > { %v3074_v4 = vpop.permute.xlu1 %3073 }
 0x74b   : > { %v2978_v10 = vpop.permute.xlu0 %2977 }
 0x74c   : > { %v3124_v47 = vpop.permute.xlu1 %3123  ;;  %v2988_v41 = vsel %vm394_vm3, %v2978_v10, %v2980_v30  ;;  %v2987_v16 = vsel %vm394_vm3, %v2976_v37, %v2978_v10  ;;  %v2935_v30 = vmul.f32 %v7238_v52, %v7145_v21 }
 0x74d   : > { %v2996_v60 = vadd.f32 %v2988_v41, %v2936_v55 }
 0x74e   : > { %v2995_v28 = vadd.f32 %v2987_v16, %v2935_v30 }
 0x74f   : > { %v3072_v22 = vpop.permute.xlu0 %3071 }
 0x750   : > { %v7330_v25 = vpop.permute.xlu1 %3275 }
 0x753   : > { %v3122_v53 = vpop.permute.xlu0 %3121 }
 0x754   : > { %v3030_v57 = vpop.permute.xlu1 %3029 }
 0x757   : > { %v3176_v7 = vpop.permute.xlu0 %3175 }
 0x758   : > { %v3182_v33 = vpop.permute.xlu1 %3181 }
 0x75b   : > { %v7332_v63 = vpop.permute.xlu0 %3225 }
 0x75c   : > { %v7334_v46 = vpop.permute.xlu1 %3231 }
 0x75f   : > { %v3178_v50 = vpop.permute.xlu0 %3177 }
 0x760   : > { %v2986_v11 = vpop.permute.xlu1 %2985 }
 0x763   : > { %v3228_v3 = vpop.permute.xlu0 %3227 }
 0x764   : > { %v3080_v9 = vpop.permute.xlu1 %3079 }
 0x767   : > { %v7336_v40 = vpop.permute.xlu0 %3321 }
 0x768   : > { %v3130_v26 = vpop.permute.xlu1 %3129 }
 0x76b   : > { %v3028_v17 = vpop.permute.xlu0 %3027 }
 0x76c   : > { %v3324_v49 = vpop.permute.xlu1 %3323  ;;  %v3033_v18 = vsel %vm1547_vm6, %v7271_v32, %v3028_v17  ;;  %v3034_v20 = vsel %vm1547_vm6, %v3028_v17, %v3030_v57  ;;  %v3081_v32 = vsel %vm8483_vm7, %v7315_v24, %v3072_v22  ;;  %v3188_v17 = vsel %vm8366_vm14, %v3178_v50, %v7296_v19 }
 0x76f   : > { %v7338_v12 = vpop.permute.xlu0 %3277 }
 0x770   : > { %v3330_v55 = vpop.permute.xlu1 %3329 }
 0x773   : > { %v2984_v43 = vpop.permute.xlu0 %2983 }
 0x774   : > { %v2989_v35 = vsel %vm394_vm3, %v7262_v29, %v2984_v43  ;;  %v2990_v42 = vsel %vm394_vm3, %v2984_v43, %v2986_v11  ;;  %v3032_v29 = vsel %vm1547_vm6, %v3022_v51, %v3024_v13  ;;  %v3082_v11 = vsel %vm8480_vm11, %v3072_v22, %v3074_v4  ;;  %vm8486_vm11 = vmmov %vm8485_vm4 }
 0x775   : > { %v2997_v61 = vadd.f32 %v2989_v35, %v2937_v27  ;;  %v2998_v59 = vadd.f32 %v2990_v42, %v2938_v62  ;;  %v3040_v43 = vadd.f32 %v3032_v29, %v2996_v60  ;;  %v3031_v27 = vsel %vm1547_vm6, %v7307_v44, %v3022_v51 }
 0x776   : > { %v3132_v62 = vsel %vm1687_vm5, %v3122_v53, %v3124_v47  ;;  %v3039_v21 = vadd.f32 %v3031_v27, %v2995_v28  ;;  %v3187_v4 = vsel %vm8366_vm14, %v3176_v7, %v3178_v50  ;;  %v3282_v50 = vsel %vm1854_vm12, %v7328_v0, %v7313_v23 }
 0x777   : > { %v3078_v14 = vpop.permute.xlu0 %3077  ;;  %v3041_v41 = vadd.f32 %v3033_v18, %v2997_v61  ;;  %v3042_v58 = vadd.f32 %v3034_v20, %v2998_v59  ;;  %v3090_v52 = vadd.f32 %v3082_v11, %v3040_v43  ;;  %v3332_v7 = vsel %vm8484_vm10, %v7336_v40, %v3324_v49 }
 0x778   : > { %v3083_v42 = vsel %vm8481_vm8, %v7279_v31, %v3078_v14  ;;  %v3084_v35 = vsel %vm8482_vm9, %v3078_v14, %v3080_v9  ;;  %v3131_v9 = vsel %vm1687_vm5, %v7321_v36, %v3122_v53  ;;  %v3238_v31 = vsel %vm8365_vm13, %v3228_v3, %v7304_v1  ;;  %vm8487_vm8 = vmmov %vm8485_vm4 }
 0x779   : > { %v3140_v59 = vadd.f32 %v3132_v62, %v3090_v52  ;;  %v3091_v16 = vadd.f32 %v3083_v42, %v3041_v41  ;;  %v3092_v60 = vadd.f32 %v3084_v35, %v3042_v58  ;;  %v3089_v14 = vadd.f32 %v3081_v32, %v3039_v21 }
 0x77a   : > { %v3237_v1 = vsel %vm8365_vm13, %v7332_v63, %v3228_v3  ;;  %v3284_v3 = vsel %vm1854_vm12, %v7338_v12, %v7319_v56  ;;  %v3283_v18 = vsel %vm1854_vm12, %v7330_v25, %v7338_v12  ;;  %v3281_v49 = vsel %vm1854_vm12, %v7325_v48, %v7328_v0  ;;  %v8488_v48 = vld [vmem:[#allocation3_spill] sm:$0xff] }
 0x77b   : > { %v3128_v37 = vpop.permute.xlu0 %3127  ;;  %v3196_v24 = vadd.f32 %v3188_v17, %v3140_v59  ;;  %v3139_v10 = vadd.f32 %v3131_v9, %v3089_v14  ;;  %v8489_v59 = vld [vmem:[#allocation6_spill] sm:$0xff]  ;;  %v3661_v9 = vld [vmem:[#allocation2 + $0x20] sm:$0xf]  ;;  %vm8518_vm9 = vcmask 138240  }
 0x77c   : > { %v3133_v57 = vsel %vm1687_vm5, %v7288_v34, %v3128_v37  ;;  %v3134_v44 = vsel %vm1687_vm5, %v3128_v37, %v3130_v26  ;;  %v3326_v34 = vpop.permute.xlu1 %3325  ;;  %vm8519_vm7 = vmmov %vm8518_vm9 }
 0x77d   : > { %v3141_v13 = vadd.f32 %v3133_v57, %v3091_v16  ;;  %v3142_v26 = vadd.f32 %v3134_v44, %v3092_v60  ;;  %v3246_v47 = vadd.f32 %v3238_v31, %v3196_v24  ;;  %vm8520_vm10 = vmmov %vm8519_vm7 }
 0x77f   : > { %v3184_v51 = vpop.permute.xlu0 %3183 }
 0x780   : > { %v3189_v28 = vsel %vm8366_vm14, %v3182_v33, %v3184_v51  ;;  %v3190_v19 = vsel %vm8366_vm14, %v3184_v51, %v7300_v38  ;;  %v3195_v33 = vadd.f32 %v3187_v4, %v3139_v10 }
 0x781   : > { %v3197_v22 = vadd.f32 %v3189_v28, %v3141_v13  ;;  %v3198_v30 = vadd.f32 %v3190_v19, %v3142_v26 }
 0x782   : > { %v3245_v63 = vadd.f32 %v3237_v1, %v3195_v33  ;;  %v7463_v33 = vld [vmem:[#allocation2 + $0x18] sm:$0xff] }
 0x783   : > { %v3234_v36 = vpop.permute.xlu0 %3233 }
 0x784   : > { %v3239_v53 = vsel %vm8365_vm13, %v7334_v46, %v3234_v36  ;;  %v3240_v38 = vsel %vm8365_vm13, %v3234_v36, %v7309_v6  ;;  %v3290_v46 = vadd.f32 %v3282_v50, %v3246_v47  ;;  %v3289_v62 = vadd.f32 %v3281_v49, %v3245_v63 }
 0x785   : > { %v3247_v61 = vadd.f32 %v3239_v53, %v3197_v22  ;;  %v3248_v29 = vadd.f32 %v3240_v38, %v3198_v30  ;;  %v7385_v43 = vpop.permute.xlu1 %2646 }
 0x786   : > { %v3340_v41 = vadd.f32 %v3332_v7, %v3290_v46  ;;  %v7471_v7 = vld [vmem:[#allocation2 + $0x38] sm:$0xf]  ;;  %v8493_v46 = vld [vmem:[#allocation12_spill] sm:$0xff] }
 0x787   : > { %v3328_v11 = vpop.permute.xlu0 %3327  ;;  %v3292_v6 = vadd.f32 %v3284_v3, %v3248_v29  ;;  %v3291_v58 = vadd.f32 %v3283_v18, %v3247_v61 }
 0x788   : > { %v3334_v20 = vsel %vm8485_vm4, %v3328_v11, %v3330_v55  ;;  %v3333_v56 = vsel %vm8486_vm11, %v3326_v34, %v3328_v11  ;;  %v8491_v34 = vld [vmem:[#allocation5_spill] sm:$0xff]  ;;  %vm8521_vm4 = vmmov %vm8519_vm7  ;;  %vm8522_vm11 = vcmask 130048  }
 0x789   : > { %v3342_v23 = vadd.f32 %v3334_v20, %v3292_v6  ;;  %v7399_v37 = vpop.permute.xlu1 %3625  ;;  %v3341_v12 = vadd.f32 %v3333_v56, %v3291_v58  ;;  %v8495_v58 = vld [vmem:[#allocation13_spill] sm:$0xff] }
 0x78b   : > { %v5270_v27 = vpack.c.bf16 %v3342_v23, %v3340_v41  ;;  %v3320_v42 = vpop.permute.xlu0 %3319 }
 0x78c   : > { %v3331_v35 = vsel %vm8487_vm8, %v3320_v42, %v7336_v40  ;;  %v5193_v40 = vld [vmem:[%s8180_s6 + $0x18] sm:$0x3f]  ;;  %v2727_v42 = vadd.f32 %v7143_v2, %v7385_v43  ;;  %vm8523_vm8 = vcmask 121856  }
 0x78d   : > { %v3339_v25 = vadd.f32 %v3331_v35, %v3289_v62  ;;  %v7407_v55 = vpop.permute.xlu1 %3665  ;;  %5272 = vmatprep.subr.msk.bf16.mxu0 %vm6163_vm15, %v5270_v27  ;;  %vm8529_vm13 = vmmov %vm8523_vm8 }
 0x78e   : > { %v3672_v21 = vmul.f32 %v7032_v54, %v7407_v55 }
 0x78f   : > { %v5273_v52 = vpack.c.bf16 %v3341_v12, %v3339_v25  ;;  %v2725_v12 = vadd.f32 %v7141_v45, %v7385_v43  ;;  %v5201_v43 = vld [vmem:[%s8177_s3 + $0x48] sm:$0xf] }
 0x790   : > { %v3678_v0 = vmul.f32 %v3672_v21, %v8488_v48 }
 0x791   : > { %5275 = vmatpush1.bf16.msk.msra.mxu0 %vm6163_vm15, %v5273_v52 }
 0x792   : > { %3690 = vrot.lane.b32.xlu0 %v3678_v0, %s8361_s29  ;;  %v7420_v32 = vpop.permute.xlu1 %3715  ;;  %v2730_v0 = vmul.f32 0.2, %v2727_v42 }
 0x793   : > { %v3722_v17 = vmul.f32 %v7032_v54, %v7420_v32 }
 0x794   : > { %5197 = vmatmul.mubr.msk.f32.vlgmr.msra.gmra.mrb[10].mxu0 %vm1134_vm1, %v5193_v40  ;;  %v7511_v2 = vmax.f32 %v2727_v42, %v2730_v0 }
 0x795   : > { %3518 = vmatprep.mubr.f32.mxu0 %v7032_v54 }
 0x796   : > { %3734 = vrot.lane.b32.xlu0 %v3722_v17, %s8363_s13  ;;  %v2729_v17 = vmul.f32 0.2, %v2725_v12 }
 0x797   : > { %v7427_v57 = vpop.permute.xlu1 %3759 }
 0x798   : > { %v3766_v44 = vmul.f32 %v7032_v54, %v7427_v57  ;;  %v7515_v45 = vmax.f32 %v2725_v12, %v2729_v17 }
 0x79a   : > { %v3772_v16 = vmul.f32 %v3766_v44, %v8489_v59 }
 0x79b   : > { %v7450_v10 = vpop.permute.xlu1 %3763 }
 0x79c   : > { %v3350_v60 = vpop.permute.xlu0 %3349  ;;  %3784 = vrot.lane.b32.xlu0 %v3772_v16, %s8490_s26  ;;  %v3769_v36 = vmul.f32 %v7450_v10, %v3661_v9  ;;  %v5200_v16 = vld [vmem:[%s8177_s3 + $0x40] sm:$0xff] }
 0x79e   : > { %v3775_v38 = vmul.f32 %v3769_v36, %v8489_v59 }
 0x7a0   : > { %v7433_v51 = vpop.permute.xlu0 %3630  ;;  %v7454_v22 = vpop.permute.xlu1 %3813 }
 0x7a1   : > { %v3819_v53 = vmul.f32 %v7454_v22, %v3661_v9 }
 0x7a3   : > { %v3825_v50 = vmul.f32 %v3819_v53, %v8491_v34 }
 0x7a4   : > { %v7435_v31 = vpop.permute.xlu0 %3669 }
 0x7a5   : > { %v3675_v28 = vmul.f32 %v7435_v31, %v3661_v9  ;;  %v7465_v61 = vpop.permute.xlu1 %3865 }
 0x7a6   : > { %v3874_v29 = vmul.f32 %v7465_v61, %v7463_v33 }
 0x7a7   : > { %v3681_v19 = vmul.f32 %v3675_v28, %v8488_v48 }
 0x7a8   : > { %v3880_v11 = vmul.f32 %v3874_v29, %v8493_v46 }
 0x7a9   : > { %v7439_v14 = vpop.permute.xlu0 %3809  ;;  %3696 = vrot.lane.b32.xlu1 %v3681_v19, %s8361_s29  ;;  %s8499_s29 = smov 17  }
 0x7aa   : > { %v3816_v24 = vmul.f32 %v7032_v54, %v7439_v14  ;;  %v7474_v3 = vpop.permute.xlu1 %3915 }
 0x7ab   : > { %v3924_v6 = vmul.f32 %v7474_v3, %v7463_v33 }
 0x7ac   : > { %v3822_v13 = vmul.f32 %v3816_v24, %v8491_v34 }
 0x7ad   : > { %v3930_v23 = vmul.f32 %v3924_v6, %v8495_v58 }
 0x7ae   : > { %3834 = vrot.lane.b32.xlu0 %v3822_v13, %s8492_s12  ;;  %v7446_v26 = vpop.permute.xlu0 %3869  ;;  %v7483_v20 = vpop.permute.xlu1 %3919 }
 0x7af   : > { %v3877_v63 = vmul.f32 %v7446_v26, %v7471_v7  ;;  %v3927_v41 = vmul.f32 %v7483_v20, %v7471_v7 }
 0x7b1   : > { %v3883_v18 = vmul.f32 %v3877_v63, %v8493_v46  ;;  %v3933_v49 = vmul.f32 %v3927_v41, %v8495_v58  ;;  %v8501_v41 = vld [vmem:[#allocation14_spill] sm:$0xff] }
 0x7b3   : > { %v7448_v4 = vpop.permute.xlu0 %3965  ;;  %v7494_v27 = vpop.permute.xlu1 %3969 }
 0x7b4   : > { %v3974_v56 = vmul.f32 %v7448_v4, %v7463_v33  ;;  %v3977_v62 = vmul.f32 %v7494_v27, %v7471_v7 }
 0x7b8   : > { %v7452_v47 = vpop.permute.xlu0 %4013 }
 0x7bd   : > { %v7456_v30 = vpop.permute.xlu0 %3719 }
 0x7be   : > { %v3725_v1 = vmul.f32 %v7456_v30, %v3661_v9  ;;  %v5199_v9 = vld [vmem:[%s8176_s2 + $0x48] sm:$0xf] }
 0x7c0   : > { %3740 = vrot.lane.b32.xlu1 %v3725_v1, %s8363_s13 }
 0x7c4   : > { %3790 = vrot.lane.b32.xlu1 %v3775_v38, %s8490_s26 }
 0x7c8   : > { %3840 = vrot.lane.b32.xlu1 %v3825_v50, %s8492_s12 }
 0x7cc   : > { %3894 = vrot.lane.b32.xlu1 %v3880_v11, %s8494_s25  ;;  %v8500_v11 = vld [vmem:[#allocation8_spill] sm:$0xff] }
 0x7d0   : > { %3900 = vrot.lane.b32.xlu1 %v3883_v18, %s8494_s25 }
 0x7d4   : > { %3944 = vrot.lane.b32.xlu1 %v3930_v23, %s8496_s28 }
 0x7d8   : > { %3950 = vrot.lane.b32.xlu1 %v3933_v49, %s8496_s28  ;;  %v8502_v49 = vld [vmem:[#allocation10_spill] sm:$0xff] }
 0x7dc   : > { %3988 = vrot.lane.b32.xlu1 %v3974_v56, %s8418_s24 }
 0x7e0   : > { %3994 = vrot.lane.b32.xlu1 %v3977_v62, %s8418_s24 }
 0x867   : > { %v3427_v35 = vpop.f32.mrb[10].mxu0 }
 0x868   : > { %v3428_v25 = vadd.f32 %v3427_v35, %v3350_v60  ;;  %v3429_v21 = vpop.f32.mrb[11].mxu0 }
 0x869   : > { %v3430_v52 = vadd.f32 %v3429_v21, %v3350_v60  ;;  %v5198_v60 = vld [vmem:[%s8176_s2 + $0x40] sm:$0xff] }
 0x86a   : > { %v3432_v48 = vmul.f32 0.2, %v3428_v25 }
 0x86b   : > { %v3433_v40 = vmul.f32 0.2, %v3430_v52 }
 0x86c   : > { %v7506_v59 = vmax.f32 %v3428_v25, %v3432_v48 }
 0x86d   : > { %v7504_v44 = vmax.f32 %v3430_v52, %v3433_v40 }
 0x86f   : > { %5202 = vmatprep.subr.msk.mxu0 %vm425_vm0, %v7504_v44 }
 0x870   : > { %5203 = vmatpush1.msk.msra.mxu0 %vm425_vm0, %v7506_v59 }
 0x871   : > { %5204 = vmatmul.mubr.msk.f32.vlgmr.msra.gmra.mrb[12].mxu0 %vm418_vm2, %v5200_v16  ;;  %5206 = vmatprep.subr.msk.mxu0 %vm425_vm0, %v7511_v2 }
 0x872   : > { %5207 = vmatpush1.msk.msra.mxu0 %vm425_vm0, %v7515_v45  ;;  %3524 = vmatprep.mubr.f32.mxu0 %v7032_v54 }
 0x875   : > { %5205 = vmatmul.mubr.msk.f32.gmra.mrb[14].mxu0 %vm418_vm2, %v5201_v43  ;;  %v8506_v43 = vld [vmem:[#allocation7_spill] sm:$0xff] }
 0x876   : > { %3607 = vmatprep.mubr.f32.mxu0 %v7032_v54 }
 0x879   : > { %5208 = vmatmul.mubr.msk.f32.vlgmr.msra.gmra.mrb[12].mxu0 %vm418_vm2, %v5198_v60 }
 0x87a   : > { %3613 = vmatprep.mubr.f32.mxu0 %v7032_v54 }
 0x87d   : > { %5209 = vmatmul.mubr.msk.f32.gmra.mrb[14].mxu0 %vm418_vm2, %v5199_v9 }
 0x87e   : > { %4843 = vmatprep.mubr.f32.mxu0 %v7032_v54 }
 0x94c   : > { %v3609_v28 = vpop.f32.mrb[12].mxu0 }
 0x94d   : > { %v7541_v19 = vadd.f32 %v7399_v37, %v3609_v28  ;;  %v3611_v24 = vpop.f32.mrb[13].mxu0 }
 0x94e   : > { %v7544_v34 = vadd.f32 %v7399_v37, %v3611_v24 }
 0x94f   : > { %v3723_v13 = vmul.f32 %v7420_v32, %v7541_v19  ;;  %v3972_v37 = vmul.f32 %v7448_v4, %v7541_v19  ;;  %v3673_v46 = vmul.f32 %v7407_v55, %v7541_v19  ;;  %v3767_v23 = vmul.f32 %v7427_v57, %v7541_v19 }
 0x950   : > { %v3615_v36 = vpop.f32.mrb[14].mxu0  ;;  %v3724_v1 = vmul.f32 %v7420_v32, %v7544_v34  ;;  %v3674_v53 = vmul.f32 %v7407_v55, %v7544_v34  ;;  %v8498_v32 = vld [vmem:[#allocation4_spill] sm:$0xff]  ;;  %v3768_v63 = vmul.f32 %v7427_v57, %v7544_v34  ;;  %v3818_v18 = vmul.f32 %v7439_v14, %v7544_v34  ;;  %v8503_v55 = vld [vmem:[#allocation15_spill] sm:$0xff] }
 0x951   : > { %v7553_v54 = vadd.f32 %v7433_v51, %v3615_v36  ;;  %v3617_v38 = vpop.f32.mrb[15].mxu0  ;;  %3736 = vrot.lane.b32.xlu0 %v3723_v13, %s8497_s0  ;;  %v3679_v58 = vmul.f32 %v3673_v46, %v8501_v41  ;;  %v3773_v62 = vmul.f32 %v3767_v23, %v8503_v55  ;;  %v3817_v42 = vmul.f32 %v7439_v14, %v7541_v19  ;;  %v8504_v57 = vld [vmem:[#allocation16_spill] sm:$0xff]  ;;  %v8505_v14 = vld [vmem:[#allocation11_spill] sm:$0xff]  ;;  %v8507_v13 = vld [vmem:[#allocation17_spill] sm:$0xff] }
 0x952   : > { %v7557_v29 = vadd.f32 %v7433_v51, %v3617_v38  ;;  %3738 = vrot.lane.b32.xlu1 %v3724_v1, %s8497_s0  ;;  %v3680_v50 = vmul.f32 %v3674_v53, %v8498_v32  ;;  %v3973_v51 = vmul.f32 %v7448_v4, %v7544_v34  ;;  %v3774_v6 = vmul.f32 %v3768_v63, %v8500_v11 }
 0x953   : > { %3656 = vst [vmem:[#allocation2 + $0x28] sm:$0xf] %v7553_v54  ;;  %v3824_v56 = vmul.f32 %v3818_v18, %v8502_v49  ;;  %v3823_v25 = vmul.f32 %v3817_v42, %v8504_v57  ;;  %v3872_v21 = vmul.f32 %v7465_v61, %v7541_v19  ;;  %v3922_v40 = vmul.f32 %v7474_v3, %v7541_v19 }
 0x954   : > { %3657 = vst [vmem:[#allocation2 + $0x30] sm:$0xf] %v7557_v29  ;;  %v3873_v9 = vmul.f32 %v7465_v61, %v7544_v34  ;;  %v3923_v1 = vmul.f32 %v7474_v3, %v7544_v34  ;;  %v4010_v61 = vpop.permute.xlu1 %4009  ;;  %v8509_v3 = vld [vmem:[#allocation20_spill] sm:$0xff] }
 0x955   : > { %3984 = vrot.lane.b32.xlu0 %v3972_v37, %s8418_s24  ;;  %v3878_v0 = vmul.f32 %v3872_v21, %v8505_v14  ;;  %v3928_v60 = vmul.f32 %v3922_v40, %v8506_v43  ;;  %v8508_v37 = vld [vmem:[#allocation18_spill] sm:$0xff]  ;;  %v4017_v63 = vmul.f32 %v4010_v61, %v7544_v34  ;;  %v8511_v21 = vld [vmem:[#allocation9_spill] sm:$0xff] }
 0x956   : > { %3694 = vrot.lane.b32.xlu1 %v3680_v50, %s8499_s29  ;;  %v3879_v36 = vmul.f32 %v3873_v9, %v8507_v13  ;;  %v3929_v50 = vmul.f32 %v3923_v1, %v8508_v37 }
 0x959   : > { %3986 = vrot.lane.b32.xlu0 %v3973_v51, %s8418_s24 }
 0x95a   : > { %3788 = vrot.lane.b32.xlu1 %v3774_v6, %s8490_s26  ;;  %v3861_v4 = vld [vmem:[#allocation2 + $0x28] sm:$0xf]  ;;  %v4018_v6 = vmul.f32 %v4010_v61, %v7463_v33 }
 0x95b   : > { %v3975_v35 = vmul.f32 %v7494_v27, %v3861_v4  ;;  %v3663_v12 = vld [vmem:[#allocation2 + $0x30] sm:$0xf]  ;;  %v3875_v48 = vmul.f32 %v7446_v26, %v3861_v4  ;;  %v3925_v16 = vmul.f32 %v7483_v20, %v3861_v4 }
 0x95c   : > { %v3727_v52 = vmul.f32 %v7456_v30, %v3663_v12  ;;  %v3677_v24 = vmul.f32 %v7435_v31, %v3663_v12  ;;  %v3771_v38 = vmul.f32 %v7450_v10, %v3663_v12  ;;  %v3821_v46 = vmul.f32 %v7454_v22, %v3663_v12  ;;  %v3862_v42 = vld [vmem:[#allocation2 + $0x30] sm:$0xf] }
 0x95d   : > { %3692 = vrot.lane.b32.xlu0 %v3679_v58, %s8499_s29  ;;  %v3881_v17 = vmul.f32 %v3875_v48, %v8505_v14  ;;  %v3931_v28 = vmul.f32 %v3925_v16, %v8506_v43  ;;  %v3662_v58 = vld [vmem:[#allocation2 + $0x28] sm:$0xf]  ;;  %v3976_v33 = vmul.f32 %v7494_v27, %v3862_v42  ;;  %v4019_v12 = vmul.f32 %v7452_v47, %v3861_v4  ;;  %v5232_v27 = vld [vmem:[%s8178_s4 + $0x58] sm:$0xf] }
 0x95e   : > { %3838 = vrot.lane.b32.xlu1 %v3824_v56, %s8492_s12  ;;  %v3683_v53 = vmul.f32 %v3677_v24, %v8498_v32  ;;  %v3777_v51 = vmul.f32 %v3771_v38, %v8500_v11  ;;  %v4023_v32 = vmul.f32 %v4017_v63, %v8509_v3  ;;  %v3827_v18 = vmul.f32 %v3821_v46, %v8502_v49  ;;  %v8510_v56 = vld [vmem:[#allocation19_spill] sm:$0xff]  ;;  %v5231_v38 = vld [vmem:[%s8178_s4 + $0x50] sm:$0xff] }
 0x95f   : > { %v3726_v23 = vmul.f32 %v7456_v30, %v3662_v58  ;;  %v4021_v11 = vmul.f32 %v7452_v47, %v7471_v7  ;;  %v3676_v49 = vmul.f32 %v7435_v31, %v3662_v58  ;;  %v7640_v30 = vpop.permute.xlu1 %3642  ;;  %v3820_v4 = vmul.f32 %v7454_v22, %v3662_v58 }
 0x960   : > { %v3876_v14 = vmul.f32 %v7446_v26, %v3862_v42  ;;  %v4020_v26 = vmul.f32 %v7452_v47, %v3862_v42  ;;  %v4016_v16 = vmul.f32 %v4010_v61, %v7541_v19  ;;  %v8514_v24 = vmov 7  }
 0x961   : > { %3786 = vrot.lane.b32.xlu0 %v3773_v62, %s8490_s26  ;;  %v4024_v62 = vmul.f32 %v4018_v6, %v8510_v56  ;;  %v3682_v7 = vmul.f32 %v3676_v49, %v8501_v41  ;;  %v5233_v41 = vld [vmem:[%s8179_s5 + $0x50] sm:$0xff]  ;;  %v8516_v61 = vmov 0   ;;  %v8517_v63 = vmov 4  }
 0x962   : > { %3990 = vrot.lane.b32.xlu1 %v3975_v35, %s8418_s24  ;;  %v4027_v35 = vmul.f32 %v4021_v11, %v8510_v56  ;;  %v3882_v22 = vmul.f32 %v3876_v14, %v8507_v13  ;;  %v4022_v43 = vmul.f32 %v4016_v16, %v8511_v21 }
 0x963   : > { %v7653_v48 = vpop.permute.xlu1 %3647 }
 0x964   : > { %v3652_v16 = vmul.f32 %v7653_v48, %v7553_v54 }
 0x965   : > { %3836 = vrot.lane.b32.xlu0 %v3823_v25, %s8492_s12  ;;  %v3770_v25 = vmul.f32 %v7450_v10, %v3662_v58  ;;  %v3826_v10 = vmul.f32 %v3820_v4, %v8504_v57 }
 0x966   : > { %3744 = vrot.lane.b32.xlu1 %v3727_v52, %s8497_s0  ;;  %v4025_v52 = vmul.f32 %v4019_v12, %v8511_v21 }
 0x967   : > { %v3776_v31 = vmul.f32 %v3770_v25, %v8503_v55  ;;  %v7662_v55 = vpop.permute.xlu1 %3696 }
 0x969   : > { %3890 = vrot.lane.b32.xlu0 %v3878_v0, %s8494_s25  ;;  %v3926_v0 = vmul.f32 %v7483_v20, %v3862_v42 }
 0x96a   : > { %3896 = vrot.lane.b32.xlu1 %v3881_v17, %s8494_s25  ;;  %v4026_v17 = vmul.f32 %v4020_v26, %v8509_v3 }
 0x96b   : > { %v7667_v40 = vpop.permute.xlu1 %3740  ;;  %v3932_v57 = vmul.f32 %v3926_v0, %v8508_v37  ;;  %v3651_v0 = vmul.f32 %v7640_v30, %v7544_v34 }
 0x96d   : > { %3940 = vrot.lane.b32.xlu0 %v3928_v60, %s8496_s28  ;;  %v8512_v60 = vmov 5  }
 0x96e   : > { %3946 = vrot.lane.b32.xlu1 %v3931_v28, %s8496_s28  ;;  %v8513_v28 = vmov 6  }
 0x96f   : > { %v7676_v20 = vpop.permute.xlu1 %3790 }
 0x971   : > { %3892 = vrot.lane.b32.xlu0 %v3879_v36, %s8494_s25  ;;  %v3691_v36 = vpop.permute.xlu0 %3690 }
 0x972   : > { %3700 = vrot.lane.b32.xlu1 %v3683_v53, %s8499_s29 }
 0x973   : > { %v7684_v47 = vpop.permute.xlu1 %3840 }
 0x975   : > { %3942 = vrot.lane.b32.xlu0 %v3929_v50, %s8496_s28  ;;  %v7700_v1 = vpop.permute.xlu0 %3734 }
 0x976   : > { %3794 = vrot.lane.b32.xlu1 %v3777_v51, %s8490_s26 }
 0x979   : > { %4036 = vrot.lane.b32.xlu0 %v4023_v32, %s8430_s15  ;;  %v7711_v50 = vpop.permute.xlu0 %3784 }
 0x97a   : > { %3844 = vrot.lane.b32.xlu1 %v3827_v18, %s8492_s12 }
 0x97d   : > { %3742 = vrot.lane.b32.xlu0 %v3726_v23, %s8497_s0  ;;  %v7716_v46 = vpop.permute.xlu0 %3834  ;;  %s8586_s0 = sshll.u32 %s8588_s18, 5 }
 0x97e   : > { %4038 = vrot.lane.b32.xlu1 %v4024_v62, %s8430_s15 }
 0x981   : > { %3992 = vrot.lane.b32.xlu0 %v3976_v33, %s8418_s24 }
 0x982   : > { %4044 = vrot.lane.b32.xlu1 %v4027_v35, %s8430_s15 }
 0x985   : > { %3698 = vrot.lane.b32.xlu0 %v3682_v7, %s8499_s29 }
 0x986   : > { %4040 = vrot.lane.b32.xlu1 %v4025_v52, %s8430_s15 }
 0x989   : > { %3792 = vrot.lane.b32.xlu0 %v3776_v31, %s8490_s26 }
 0x98a   : > { %4333 = vperm.xlu1 %5427, %v5232_v27  }
 0x98d   : > { %3842 = vrot.lane.b32.xlu0 %v3826_v10, %s8492_s12 }
 0x98e   : > { %4368 = vperm.xlu1 %5427, %v5233_v41  }
 0x991   : > { %3898 = vrot.lane.b32.xlu0 %v3882_v22, %s8494_s25 }
 0x992   : > { %5428 = vset.pattern.permute.xlu1 %v8413_v15  ;;  %v5234_v15 = vld [vmem:[%s8179_s5 + $0x58] sm:$0xf] }
 0x993   : > { %4418 = vperm.xlu1 %5428, %v5233_v41  }
 0x995   : > { %3948 = vrot.lane.b32.xlu0 %v3932_v57, %s8496_s28  ;;  %s8550_s28 = smov 34  }
 0x997   : > { %5429 = vset.pattern.permute.xlu1 %v8433_v5  ;;  %v7687_v5 = vpop.permute.xlu1 %3894 }
 0x998   : > { %4462 = vperm.xlu1 %5429, %v5233_v41  }
 0x999   : > { %4042 = vrot.lane.b32.xlu0 %v4026_v17, %s8430_s15 }
 0x99b   : > { %v7691_v9 = vpop.permute.xlu1 %3900 }
 0x99c   : > { %4466 = vperm.xlu1 %5429, %v5234_v15  }
 0x99d   : > { %4034 = vrot.lane.b32.xlu0 %v4022_v43, %s8430_s15 }
 0x99f   : > { %v7696_v13 = vpop.permute.xlu1 %3944 }
 0x9a0   : > { %5431 = vset.pattern.permute.xlu1 %v8434_v39 }
 0x9a1   : > { %4422 = vperm.xlu0 %5425, %v5234_v15   ;;  %4516 = vperm.xlu1 %5431, %v5234_v15  }
 0x9a3   : > { %v7702_v53 = vpop.permute.xlu1 %3950 }
 0x9a5   : > { %5430 = vset.pattern.permute.xlu0 %v8434_v39  ;;  %5432 = vset.pattern.permute.xlu1 %v8512_v60  ;;  %v8515_v39 = vmov 8  }
 0x9a6   : > { %4512 = vperm.xlu0 %5430, %v5233_v41   ;;  %4568 = vperm.xlu1 %5432, %v5233_v41  }
 0x9a7   : > { %v7709_v37 = vpop.permute.xlu1 %3988 }
 0x9aa   : > { %5433 = vset.pattern.permute.xlu0 %v8512_v60  ;;  %5434 = vset.pattern.permute.xlu1 %v8513_v28 }
 0x9ab   : > { %4572 = vperm.xlu0 %5433, %v5234_v15   ;;  %4618 = vperm.xlu1 %5434, %v5233_v41   ;;  %v7714_v51 = vpop.permute.xlu1 %3994 }
 0x9af   : > { %5435 = vset.pattern.permute.xlu0 %v8514_v24  ;;  %4622 = vperm.xlu1 %5434, %v5234_v15  }
 0x9b0   : > { %4668 = vperm.xlu0 %5435, %v5233_v41  }
 0x9b3   : > { %5436 = vset.pattern.permute.xlu1 %v8514_v24  ;;  %v3650_v24 = vmul.f32 %v7640_v30, %v7541_v19 }
 0x9b4   : > { %5438 = vset.pattern.permute.xlu0 %v8515_v39  ;;  %4672 = vperm.xlu1 %5436, %v5234_v15  }
 0x9b5   : > { %4716 = vperm.xlu0 %5438, %v5234_v15  }
 0x9b8   : > { %5437 = vset.pattern.permute.xlu1 %v8515_v39 }
 0x9b9   : > { %5439 = vset.pattern.permute.xlu0 %v8516_v61  ;;  %4712 = vperm.xlu1 %5437, %v5233_v41  }
 0x9ba   : > { %4328 = vperm.xlu0 %5439, %v5231_v38  }
 0x9bd   : > { %5440 = vset.pattern.permute.xlu1 %v8517_v63 }
 0x9be   : > { %4372 = vperm.xlu0 %5439, %v5234_v15   ;;  %4345 = vperm.xlu1 %5440, %v5233_v41  }
 0x9c2   : > { %4350 = vperm.xlu1 %5440, %v5234_v15   ;;  %v3653_v15 = vmul.f32 %v7653_v48, %v7557_v29 }
 0x9c3   : > { %v3737_v3 = vpop.permute.xlu0 %3736 }
 0x9c4   : > { %v3739_v32 = vpop.permute.xlu1 %3738 }
 0x9c6   : > { %5441 = vset.pattern.permute.xlu1 %v8516_v61 }
 0x9c7   : > { %v7719_v6 = vpop.permute.xlu0 %3984 }
 0x9c8   : > { %v3695_v18 = vpop.permute.xlu1 %3694 }
 0x9cb   : > { %v7721_v58 = vpop.permute.xlu0 %3986 }
 0x9cc   : > { %v3789_v23 = vpop.permute.xlu1 %3788 }
 0x9cf   : > { %v3693_v11 = vpop.permute.xlu0 %3692 }
 0x9d0   : > { %v3839_v56 = vpop.permute.xlu1 %3838  ;;  %v3703_v22 = vsel %vm8518_vm9, %v3693_v11, %v3695_v18  ;;  %v3702_v28 = vsel %vm8521_vm4, %v3691_v36, %v3693_v11  ;;  %vm8524_vm9 = vmmov %vm8522_vm11  ;;  %vm8527_vm4 = vcmask 7168  }
 0x9d1   : > { %v3711_v43 = vadd.f32 %v3703_v22, %v3651_v0  ;;  %v3710_v61 = vadd.f32 %v3702_v28, %v3650_v24  ;;  %vm8532_vm14 = vmmov %vm8527_vm4 }
 0x9d3   : > { %v3787_v62 = vpop.permute.xlu0 %3786 }
 0x9d4   : > { %v7723_v42 = vpop.permute.xlu1 %3990  ;;  %v3797_v18 = vsel %vm8523_vm8, %v3787_v62, %v3789_v23 }
 0x9d7   : > { %v3837_v33 = vpop.permute.xlu0 %3836 }
 0x9d8   : > { %v3745_v49 = vpop.permute.xlu1 %3744  ;;  %v3847_v30 = vsel %vm8527_vm4, %v3837_v33, %v3839_v56 }
 0x9db   : > { %v3891_v35 = vpop.permute.xlu0 %3890 }
 0x9dc   : > { %v3897_v12 = vpop.permute.xlu1 %3896 }
 0x9df   : > { %v7725_v7 = vpop.permute.xlu0 %3940 }
 0x9e0   : > { %v7727_v25 = vpop.permute.xlu1 %3946 }
 0x9e3   : > { %v3893_v21 = vpop.permute.xlu0 %3892 }
 0x9e4   : > { %v3701_v52 = vpop.permute.xlu1 %3700 }
 0x9e7   : > { %v3943_v31 = vpop.permute.xlu0 %3942 }
 0x9e8   : > { %v3795_v4 = vpop.permute.xlu1 %3794 }
 0x9eb   : > { %v7729_v27 = vpop.permute.xlu0 %4036 }
 0x9ec   : > { %v3845_v41 = vpop.permute.xlu1 %3844 }
 0x9ef   : > { %v3743_v10 = vpop.permute.xlu0 %3742 }
 0x9f0   : > { %v4039_v60 = vpop.permute.xlu1 %4038  ;;  %v3748_v54 = vsel %vm8524_vm9, %v7667_v40, %v3743_v10  ;;  %v3796_v40 = vsel %vm8523_vm8, %v7711_v50, %v3787_v62 }
 0x9f3   : > { %v7731_v14 = vpop.permute.xlu0 %3992 }
 0x9f4   : > { %v4045_v48 = vpop.permute.xlu1 %4044 }
 0x9f7   : > { %v3699_v57 = vpop.permute.xlu0 %3698 }
 0x9f8   : > { %v3704_v26 = vsel %vm8519_vm7, %v7662_v55, %v3699_v57  ;;  %v3705_v17 = vsel %vm8520_vm10, %v3699_v57, %v3701_v52  ;;  %v3747_v55 = vsel %vm8522_vm11, %v3737_v3, %v3739_v32  ;;  %vm8525_vm7 = vmmov %vm8524_vm9  ;;  %vm8530_vm9 = vcmask 1039360  }
 0x9f9   : > { %v3712_v34 = vadd.f32 %v3704_v26, %v3652_v16  ;;  %v3713_v39 = vadd.f32 %v3705_v17, %v3653_v15  ;;  %v3755_v63 = vadd.f32 %v3747_v55, %v3711_v43  ;;  %v3749_v29 = vsel %vm8525_vm7, %v3743_v10, %v3745_v49  ;;  %vm8526_vm10 = vmmov %vm8525_vm7 }
 0x9fa   : > { %v3746_v19 = vsel %vm8526_vm10, %v7700_v1, %v3737_v3  ;;  %vm8528_vm11 = vmmov %vm8523_vm8  ;;  %v3903_v49 = vsel %vm8530_vm9, %v3893_v21, %v7687_v5 }
 0x9fb   : > { %v3793_v38 = vpop.permute.xlu0 %3792  ;;  %v3756_v52 = vadd.f32 %v3748_v54, %v3712_v34  ;;  %v3757_v36 = vadd.f32 %v3749_v29, %v3713_v39  ;;  %v3754_v23 = vadd.f32 %v3746_v19, %v3710_v61  ;;  %v3805_v0 = vadd.f32 %v3797_v18, %v3755_v63  ;;  %vm8531_vm7 = vmmov %vm8527_vm4 }
 0x9fc   : > { %v3798_v32 = vsel %vm8528_vm11, %v7676_v20, %v3793_v38  ;;  %v3799_v22 = vsel %vm8529_vm13, %v3793_v38, %v3795_v4  ;;  %vm8533_vm10 = vmmov %vm8527_vm4  ;;  %vm8534_vm13 = vcmask 924672  }
 0x9fd   : > { %v3855_v3 = vadd.f32 %v3847_v30, %v3805_v0  ;;  %v3806_v56 = vadd.f32 %v3798_v32, %v3756_v52  ;;  %v3807_v57 = vadd.f32 %v3799_v22, %v3757_v36  ;;  %v3846_v20 = vsel %vm8533_vm10, %v7716_v46, %v3837_v33  ;;  %vm8535_vm4 = vmmov %vm8530_vm9  ;;  %v7798_v36 = vld [vmem:[#allocation2] sm:$0xff] }
 0x9fe   : > { %v3953_v4 = vsel %vm8534_vm13, %v3943_v31, %v7696_v13  ;;  %vm8536_vm11 = vmmov %vm8535_vm4  ;;  %v3804_v62 = vadd.f32 %v3796_v40, %v3754_v23  ;;  %vm8541_vm10 = vcmask 916480  }
 0x9ff   : > { %v3843_v11 = vpop.permute.xlu0 %3842  ;;  %v3911_v17 = vadd.f32 %v3903_v49, %v3855_v3  ;;  %vm8538_vm8 = vmmov %vm8534_vm13  ;;  %vm8542_vm13 = vcmask 908288  }
 0xa00   : > { %v3848_v10 = vsel %vm8531_vm7, %v7684_v47, %v3843_v11  ;;  %v3849_v1 = vsel %vm8532_vm14, %v3843_v11, %v3845_v41  ;;  %v4041_v47 = vpop.permute.xlu1 %4040  ;;  %vm8537_vm14 = vmmov %vm8535_vm4  ;;  %v3854_v43 = vadd.f32 %v3846_v20, %v3804_v62  ;;  %v3952_v13 = vsel %vm8538_vm8, %v7725_v7, %v3943_v31 }
 0xa01   : > { %v3856_v16 = vadd.f32 %v3848_v10, %v3806_v56  ;;  %v3857_v41 = vadd.f32 %v3849_v1, %v3807_v57  ;;  %v3902_v15 = vsel %vm8537_vm14, %v3891_v35, %v3893_v21  ;;  %v3961_v28 = vadd.f32 %v3953_v4, %v3911_v17  ;;  %vm8539_vm9 = vmmov %vm8538_vm8  ;;  %v5221_v10 = vld [vmem:[%s8177_s3 + $0x50] sm:$0xff]  ;;  %v8551_v1 = vld [vmem:[#allocation23_spill] sm:$0xff] }
 0xa02   : > { %vm8540_vm7 = vmmov %vm8538_vm8  ;;  %v3997_v35 = vsel %vm8541_vm10, %v7721_v58, %v7709_v37  ;;  %v4047_v21 = vsel %vm8542_vm13, %v7729_v27, %v4039_v60  ;;  %v4364_v17 = vld [vmem:[#allocation2 + $0x60] sm:$0xf] }
 0xa03   : > { %v3899_v26 = vpop.permute.xlu0 %3898  ;;  %v4005_v31 = vadd.f32 %v3997_v35, %v3961_v28  ;;  %vm8545_vm14 = vmmov %vm8542_vm13  ;;  %v8555_v35 = vld [vmem:[#allocation28_spill] sm:$0xff] }
 0xa04   : > { %v3904_v50 = vsel %vm8535_vm4, %v3897_v12, %v3899_v26  ;;  %v3905_v5 = vsel %vm8536_vm11, %v3899_v26, %v7691_v9  ;;  %v3910_v12 = vadd.f32 %v3902_v15, %v3854_v43  ;;  %vm8543_vm4 = vmmov %vm8541_vm10  ;;  %v8553_v26 = vld [vmem:[#allocation24_spill] sm:$0xff]  ;;  %vm8570_vm10 = vcmask 244736  }
 0xa05   : > { %v3912_v24 = vadd.f32 %v3904_v50, %v3856_v16  ;;  %v3913_v34 = vadd.f32 %v3905_v5, %v3857_v41  ;;  %v3999_v7 = vsel %vm8543_vm4, %v7731_v14, %v7714_v51  ;;  %vm8544_vm11 = vmmov %vm8543_vm4  ;;  %v4055_v54 = vadd.f32 %v4047_v21, %v4005_v31 }
 0xa06   : > { %v3998_v63 = vsel %vm8544_vm11, %v7723_v42, %v7731_v14  ;;  %vm8546_vm8 = vmmov %vm8543_vm4  ;;  %vm8572_vm4 = vcmask 1031168  }
 0xa07   : > { %v3949_v46 = vpop.permute.xlu0 %3948  ;;  %v3996_v60 = vsel %vm8546_vm8, %v7719_v6, %v7721_v58  ;;  %vm8573_vm11 = vmmov %vm8572_vm4 }
 0xa08   : > { %v3954_v33 = vsel %vm8539_vm9, %v7727_v25, %v3949_v46  ;;  %v3955_v9 = vsel %vm8540_vm7, %v3949_v46, %v7702_v53  ;;  %v3960_v25 = vadd.f32 %v3952_v13, %v3910_v12  ;;  %vm8547_vm9 = vmmov %vm8542_vm13  ;;  %v7879_v13 = vld [vmem:[#allocation2 + $0x58] sm:$0xff] }
 0xa09   : > { %v3962_v39 = vadd.f32 %v3954_v33, %v3912_v24  ;;  %v3963_v38 = vadd.f32 %v3955_v9, %v3913_v34  ;;  %v7778_v55 = vpop.permute.xlu1 %4333  ;;  %vm8549_vm7 = vmmov %vm8547_vm9 }
 0xa0a   : > { %v4004_v42 = vadd.f32 %v3996_v60, %v3960_v25  ;;  %vm8571_vm13 = vmmov %vm8570_vm10 }
 0xa0b   : > { %v4043_v61 = vpop.permute.xlu0 %4042  ;;  %v4007_v53 = vadd.f32 %v3999_v7, %v3963_v38  ;;  %v4006_v29 = vadd.f32 %v3998_v63, %v3962_v39  ;;  %v7887_v39 = vld [vmem:[#allocation2 + $0x78] sm:$0xf] }
 0xa0c   : > { %v4049_v18 = vsel %vm8545_vm14, %v4043_v61, %v4045_v48  ;;  %v4048_v51 = vsel %vm8547_vm9, %v4041_v47, %v4043_v61  ;;  %v8548_v48 = vld [vmem:[#allocation21_spill] sm:$0xff]  ;;  %vm8574_vm14 = vcmask 801792  }
 0xa0d   : > { %v4057_v37 = vadd.f32 %v4049_v18, %v4007_v53  ;;  %v7792_v52 = vpop.permute.xlu1 %4368  ;;  %v4056_v22 = vadd.f32 %v4048_v51, %v4006_v29  ;;  %v8556_v53 = vld [vmem:[#allocation29_spill] sm:$0xff]  ;;  %vm8577_vm9 = vmmov %vm8574_vm14 }
 0xa0e   : > { %v4375_v11 = vmul.f32 %v7798_v36, %v7792_v52 }
 0xa0f   : > { %v5276_v19 = vpack.c.bf16 %v4057_v37, %v4055_v54  ;;  %v4035_v14 = vpop.permute.xlu0 %4034 }
 0xa10   : > { %v4381_v30 = vmul.f32 %v4375_v11, %v8548_v48  ;;  %v4046_v32 = vsel %vm8549_vm7, %v4035_v14, %v7729_v27  ;;  %v5214_v27 = vld [vmem:[%s8180_s6 + $0x20] sm:$0x3f]  ;;  %vm8579_vm7 = vmmov %vm8572_vm4 }
 0xa11   : > { %v4054_v23 = vadd.f32 %v4046_v32, %v4004_v42  ;;  %5278 = vmatprep.subr.msk.bf16.mxu1 %vm6163_vm15, %v5276_v19 }
 0xa12   : > { %4393 = vrot.lane.b32.xlu0 %v4381_v30, %s8550_s28  ;;  %v7808_v6 = vpop.permute.xlu1 %4418 }
 0xa13   : > { %v5279_v58 = vpack.c.bf16 %v4056_v22, %v4054_v23  ;;  %v4425_v0 = vmul.f32 %v7798_v36, %v7808_v6 }
 0xa15   : > { %5281 = vmatpush1.bf16.msk.msra.mxu1 %vm6163_vm15, %v5279_v58 }
 0xa16   : > { %5223 = vmatprep.subr.msk.mxu1 %vm425_vm0, %v7504_v44  ;;  %4437 = vrot.lane.b32.xlu0 %v4425_v0, %s8452_s27 }
 0xa17   : > { %v7820_v40 = vpop.permute.xlu1 %4462 }
 0xa18   : > { %v4469_v49 = vmul.f32 %v7798_v36, %v7820_v40  ;;  %5218 = vmatmul.mubr.msk.f32.vlgmr.msra.gmra.mrb[16].mxu1 %vm1134_vm1, %v5214_v27 }
 0xa19   : > { %5224 = vmatpush1.msk.msra.mxu1 %vm425_vm0, %v7506_v59  ;;  %4227 = vmatprep.mubr.f32.mxu1 %v7798_v36  ;;  %v5222_v59 = vld [vmem:[%s8177_s3 + $0x58] sm:$0xf] }
 0xa1a   : > { %v4475_v44 = vmul.f32 %v4469_v49, %v8551_v1  ;;  %5227 = vmatprep.subr.msk.mxu1 %vm425_vm0, %v7511_v2  ;;  %v5219_v2 = vld [vmem:[%s8176_s2 + $0x50] sm:$0xff] }
 0xa1b   : > { %v7865_v47 = vpop.permute.xlu1 %4466 }
 0xa1c   : > { %4487 = vrot.lane.b32.xlu0 %v4475_v44, %s8552_s19  ;;  %5225 = vmatmul.mubr.msk.f32.vlgmr.msra.gmra.mrb[18].mxu1 %vm418_vm2, %v5221_v10  ;;  %v4472_v28 = vmul.f32 %v7865_v47, %v4364_v17 }
 0xa1d   : > { %5228 = vmatpush1.msk.msra.mxu1 %vm425_vm0, %v7515_v45  ;;  %4233 = vmatprep.mubr.f32.mxu1 %v7798_v36  ;;  %v5220_v45 = vld [vmem:[%s8176_s2 + $0x58] sm:$0xf] }
 0xa1e   : > { %v4478_v34 = vmul.f32 %v4472_v28, %v8551_v1 }
 0xa20   : > { %v7842_v3 = vpop.permute.xlu0 %4422  ;;  %5226 = vmatmul.mubr.msk.f32.gmra.mrb[20].mxu1 %vm418_vm2, %v5222_v59  ;;  %v7872_v43 = vpop.permute.xlu1 %4516  ;;  %v8558_v59 = vld [vmem:[#allocation25_spill] sm:$0xff] }
 0xa21   : > { %4310 = vmatprep.mubr.f32.mxu1 %v7798_v36  ;;  %v4428_v24 = vmul.f32 %v7842_v3, %v4364_v17  ;;  %v4522_v46 = vmul.f32 %v7872_v43, %v4364_v17 }
 0xa23   : > { %v4528_v9 = vmul.f32 %v4522_v46, %v8553_v26 }
 0xa24   : > { %5229 = vmatmul.mubr.msk.f32.vlgmr.msra.gmra.mrb[18].mxu1 %vm418_vm2, %v5219_v2 }
 0xa25   : > { %v7850_v56 = vpop.permute.xlu0 %4512  ;;  %4316 = vmatprep.mubr.f32.mxu1 %v7798_v36  ;;  %v7881_v33 = vpop.permute.xlu1 %4568 }
 0xa26   : > { %v4519_v57 = vmul.f32 %v7798_v36, %v7850_v56  ;;  %v4577_v12 = vmul.f32 %v7881_v33, %v7879_v13 }
 0xa28   : > { %v4525_v20 = vmul.f32 %v4519_v57, %v8553_v26  ;;  %5230 = vmatmul.mubr.msk.f32.gmra.mrb[20].mxu1 %vm418_vm2, %v5220_v45  ;;  %v4583_v21 = vmul.f32 %v4577_v12, %v8555_v35  ;;  %v8559_v57 = vld [vmem:[#allocation32_spill] sm:$0xff] }
 0xa2a   : > { %4537 = vrot.lane.b32.xlu0 %v4525_v20, %s8554_s22  ;;  %v7861_v4 = vpop.permute.xlu0 %4572  ;;  %v7890_v38 = vpop.permute.xlu1 %4618 }
 0xa2b   : > { %v4580_v7 = vmul.f32 %v7861_v4, %v7887_v39  ;;  %v4627_v31 = vmul.f32 %v7890_v38, %v7879_v13 }
 0xa2d   : > { %v4586_v25 = vmul.f32 %v4580_v7, %v8555_v35  ;;  %v4633_v63 = vmul.f32 %v4627_v31, %v8556_v53  ;;  %v8564_v31 = vld [vmem:[#allocation30_spill] sm:$0xff] }
 0xa2e   : > { %v7899_v61 = vpop.permute.xlu1 %4622 }
 0xa2f   : > { %v4669_v50 = vpop.permute.xlu0 %4668  ;;  %v4630_v18 = vmul.f32 %v7899_v61, %v7887_v39 }
 0xa30   : > { %v4677_v29 = vmul.f32 %v4669_v50, %v7879_v13 }
 0xa31   : > { %v4636_v54 = vmul.f32 %v4630_v18, %v8556_v53 }
 0xa33   : > { %v7909_v37 = vpop.permute.xlu1 %4672 }
 0xa34   : > { %v7863_v5 = vpop.permute.xlu0 %4716  ;;  %v4680_v60 = vmul.f32 %v7909_v37, %v7887_v39 }
 0xa39   : > { %v4329_v62 = vpop.permute.xlu0 %4328 }
 0xa3d   : > { %v7867_v16 = vpop.permute.xlu0 %4372 }
 0xa3e   : > { %v4378_v41 = vmul.f32 %v7867_v16, %v4364_v17 }
 0xa40   : > { %v4384_v15 = vmul.f32 %v4378_v41, %v8548_v48 }
 0xa42   : > { %4399 = vrot.lane.b32.xlu1 %v4384_v15, %s8550_s28 }
 0xa46   : > { %4443 = vrot.lane.b32.xlu1 %v4428_v24, %s8452_s27 }
 0xa4a   : > { %4493 = vrot.lane.b32.xlu1 %v4478_v34, %s8552_s19 }
 0xa4e   : > { %4543 = vrot.lane.b32.xlu1 %v4528_v9, %s8554_s22 }
 0xa52   : > { %4597 = vrot.lane.b32.xlu1 %v4583_v21, %s8456_s23 }
 0xa56   : > { %4603 = vrot.lane.b32.xlu1 %v4586_v25, %s8456_s23 }
 0xa5a   : > { %4647 = vrot.lane.b32.xlu1 %v4633_v63, %s8458_s21 }
 0xa5e   : > { %4653 = vrot.lane.b32.xlu1 %v4636_v54, %s8458_s21 }
 0xa62   : > { %4691 = vrot.lane.b32.xlu1 %v4677_v29, %s8459_s20  ;;  %v8565_v29 = vld [vmem:[#allocation35_spill] sm:$0xff] }
 0xa66   : > { %4697 = vrot.lane.b32.xlu1 %v4680_v60, %s8459_s20 }
 0xaeb   : > { %v7915_v51 = vpop.f32.mrb[16].mxu1 }
 0xaec   : > { %v7917_v11 = vpop.f32.mrb[17].mxu1 }
 0xaf7   : > { %v4312_v19 = vpop.f32.mrb[18].mxu1 }
 0xaf8   : > { %v7919_v42 = vadd.f32 %v4329_v62, %v4312_v19  ;;  %v4314_v14 = vpop.f32.mrb[19].mxu1 }
 0xaf9   : > { %v7921_v48 = vadd.f32 %v4329_v62, %v4314_v14  ;;  %v8560_v62 = vld [vmem:[#allocation26_spill] sm:$0xff] }
 0xafa   : > { %v4426_v30 = vmul.f32 %v7808_v6, %v7919_v42  ;;  %v4675_v49 = vmul.f32 %v4669_v50, %v7919_v42  ;;  %v4376_v44 = vmul.f32 %v7792_v52, %v7919_v42  ;;  %v4470_v20 = vmul.f32 %v7820_v40, %v7919_v42 }
 0xafb   : > { %v4318_v32 = vpop.f32.mrb[20].mxu1  ;;  %v4427_v22 = vmul.f32 %v7808_v6, %v7921_v48  ;;  %v4377_v23 = vmul.f32 %v7792_v52, %v7921_v48  ;;  %v8557_v6 = vld [vmem:[#allocation22_spill] sm:$0xff]  ;;  %v4471_v1 = vmul.f32 %v7820_v40, %v7921_v48  ;;  %v4521_v45 = vmul.f32 %v7850_v56, %v7921_v48  ;;  %v8561_v52 = vld [vmem:[#allocation33_spill] sm:$0xff] }
 0xafc   : > { %v7930_v58 = vadd.f32 %v7778_v55, %v4318_v32  ;;  %v4320_v0 = vpop.f32.mrb[21].mxu1  ;;  %4439 = vrot.lane.b32.xlu0 %v4426_v30, %s8452_s27  ;;  %v4382_v26 = vmul.f32 %v4376_v44, %v8559_v57  ;;  %v4476_v41 = vmul.f32 %v4470_v20, %v8561_v52  ;;  %v4520_v15 = vmul.f32 %v7850_v56, %v7919_v42  ;;  %v8562_v40 = vld [vmem:[#allocation34_spill] sm:$0xff]  ;;  %v8563_v56 = vld [vmem:[#allocation27_spill] sm:$0xff]  ;;  %v8566_v32 = vld [vmem:[#allocation36_spill] sm:$0xff] }
 0xafd   : > { %v7934_v27 = vadd.f32 %v7778_v55, %v4320_v0  ;;  %4441 = vrot.lane.b32.xlu1 %v4427_v22, %s8452_s27  ;;  %v4383_v10 = vmul.f32 %v4377_v23, %v8557_v6  ;;  %v4676_v55 = vmul.f32 %v4669_v50, %v7921_v48  ;;  %v4477_v2 = vmul.f32 %v4471_v1, %v8558_v59 }
 0xafe   : > { %4359 = vst [vmem:[#allocation2 + $0x68] sm:$0xf] %v7930_v58  ;;  %v4527_v17 = vmul.f32 %v4521_v45, %v8560_v62  ;;  %v4526_v34 = vmul.f32 %v4520_v15, %v8562_v40  ;;  %v4575_v46 = vmul.f32 %v7881_v33, %v7919_v42  ;;  %v4625_v21 = vmul.f32 %v7890_v38, %v7919_v42  ;;  %v8569_v15 = vld [vmem:[#allocation31_spill] sm:$0xff] }
 0xaff   : > { %4360 = vst [vmem:[#allocation2 + $0x70] sm:$0xf] %v7934_v27  ;;  %v4576_v63 = vmul.f32 %v7881_v33, %v7921_v48  ;;  %v4626_v19 = vmul.f32 %v7890_v38, %v7921_v48  ;;  %v4713_v33 = vpop.permute.xlu1 %4712  ;;  %v8567_v38 = vld [vmem:[#allocation38_spill] sm:$0xff] }
 0xb00   : > { %4687 = vrot.lane.b32.xlu0 %v4675_v49, %s8459_s20  ;;  %v4581_v35 = vmul.f32 %v4575_v46, %v8563_v56  ;;  %v4631_v53 = vmul.f32 %v4625_v21, %v8564_v31  ;;  %v4720_v23 = vmul.f32 %v4713_v33, %v7921_v48  ;;  %v5037_v21 = vld [vmem:[%s8184_s10 + $0x8] sm:$0xf] }
 0xb01   : > { %4397 = vrot.lane.b32.xlu1 %v4383_v10, %s8550_s28  ;;  %v4582_v60 = vmul.f32 %v4576_v63, %v8565_v29  ;;  %v4632_v22 = vmul.f32 %v4626_v19, %v8566_v32  ;;  %v4721_v10 = vmul.f32 %v4713_v33, %v7879_v13  ;;  %v4394_v63 = vpop.permute.xlu0 %4393 }
 0xb04   : > { %4689 = vrot.lane.b32.xlu0 %v4676_v55, %s8459_s20 }
 0xb05   : > { %4491 = vrot.lane.b32.xlu1 %v4477_v2, %s8552_s19  ;;  %v4564_v50 = vld [vmem:[#allocation2 + $0x68] sm:$0xf]  ;;  %v8568_v2 = vld [vmem:[#allocation37_spill] sm:$0xff] }
 0xb06   : > { %v4678_v28 = vmul.f32 %v7909_v37, %v4564_v50  ;;  %v4366_v24 = vld [vmem:[#allocation2 + $0x70] sm:$0xf]  ;;  %v4578_v12 = vmul.f32 %v7861_v4, %v4564_v50  ;;  %v4628_v25 = vmul.f32 %v7899_v61, %v4564_v50  ;;  %v4365_v55 = vld [vmem:[#allocation2 + $0x68] sm:$0xf]  ;;  %v4727_v45 = vmul.f32 %v4721_v10, %v8568_v2 }
 0xb07   : > { %v4430_v9 = vmul.f32 %v7842_v3, %v4366_v24  ;;  %v4380_v54 = vmul.f32 %v7867_v16, %v4366_v24  ;;  %v4474_v30 = vmul.f32 %v7865_v47, %v4366_v24  ;;  %v4524_v49 = vmul.f32 %v7872_v43, %v4366_v24 }
 0xb08   : > { %4395 = vrot.lane.b32.xlu0 %v4382_v26, %s8550_s28  ;;  %v4584_v7 = vmul.f32 %v4578_v12, %v8563_v56  ;;  %v4634_v18 = vmul.f32 %v4628_v25, %v8564_v31  ;;  %v4429_v44 = vmul.f32 %v7842_v3, %v4365_v55  ;;  %v4565_v26 = vld [vmem:[#allocation2 + $0x70] sm:$0xf]  ;;  %v4379_v20 = vmul.f32 %v7867_v16, %v4365_v55  ;;  %v5036_v25 = vld [vmem:[%s8184_s10] sm:$0xff] }
 0xb09   : > { %4541 = vrot.lane.b32.xlu1 %v4527_v17, %s8554_s22  ;;  %v4386_v14 = vmul.f32 %v4380_v54, %v8557_v6  ;;  %v4480_v0 = vmul.f32 %v4474_v30, %v8558_v59  ;;  %v4726_v6 = vmul.f32 %v4720_v23, %v8567_v38  ;;  %v4530_v1 = vmul.f32 %v4524_v49, %v8560_v62  ;;  %v8013_v17 = vpop.permute.xlu1 %4345 }
 0xb0a   : > { %v4724_v59 = vmul.f32 %v7863_v5, %v7887_v39  ;;  %v4679_v13 = vmul.f32 %v7909_v37, %v4565_v26  ;;  %v4722_v3 = vmul.f32 %v7863_v5, %v4564_v50  ;;  %v4385_v39 = vmul.f32 %v4379_v20, %v8559_v57  ;;  %v5215_v50 = vld [vmem:[%s8181_s7 + $0x20] sm:$0x3f] }
 0xb0b   : > { %v4523_v24 = vmul.f32 %v7872_v43, %v4365_v55  ;;  %v4579_v57 = vmul.f32 %v7861_v4, %v4565_v26  ;;  %v4723_v12 = vmul.f32 %v7863_v5, %v4565_v26  ;;  %v5236_v5 = vld [vmem:[%s8181_s7 + $0x28] sm:$0x3f] }
 0xb0c   : > { %4489 = vrot.lane.b32.xlu0 %v4476_v41, %s8552_s19  ;;  %v4730_v62 = vmul.f32 %v4724_v59, %v8568_v2  ;;  %v4473_v41 = vmul.f32 %v7865_v47, %v4365_v55 }
 0xb0d   : > { %4693 = vrot.lane.b32.xlu1 %v4678_v28, %s8459_s20  ;;  %v4728_v28 = vmul.f32 %v4722_v3, %v8569_v15  ;;  %v8022_v37 = vpop.permute.xlu1 %4350  ;;  %v4529_v47 = vmul.f32 %v4523_v24, %v8562_v40  ;;  %v4585_v46 = vmul.f32 %v4579_v57, %v8565_v29  ;;  %v4729_v4 = vmul.f32 %v4723_v12, %v8567_v38 }
 0xb0e   : > { %v4479_v16 = vmul.f32 %v4473_v41, %v8561_v52  ;;  %v4629_v52 = vmul.f32 %v7899_v61, %v4565_v26  ;;  %v4719_v40 = vmul.f32 %v4713_v33, %v7919_v42  ;;  %v4353_v38 = vmul.f32 %v8013_v17, %v7919_v42 }
 0xb10   : > { %4539 = vrot.lane.b32.xlu0 %v4526_v34, %s8554_s22  ;;  %v4635_v43 = vmul.f32 %v4629_v52, %v8566_v32  ;;  %v4725_v61 = vmul.f32 %v4719_v40, %v8569_v15 }
 0xb11   : > { %4447 = vrot.lane.b32.xlu1 %v4430_v9, %s8452_s27  ;;  %v8033_v34 = vpop.permute.xlu1 %4399 }
 0xb14   : > { %4593 = vrot.lane.b32.xlu0 %v4581_v35, %s8456_s23 }
 0xb15   : > { %4599 = vrot.lane.b32.xlu1 %v4584_v7, %s8456_s23  ;;  %v8039_v9 = vpop.permute.xlu1 %4443 }
 0xb18   : > { %4643 = vrot.lane.b32.xlu0 %v4631_v53, %s8458_s21 }
 0xb19   : > { %4649 = vrot.lane.b32.xlu1 %v4634_v18, %s8458_s21  ;;  %v8046_v56 = vpop.permute.xlu1 %4493  ;;  %v4438_v18 = vpop.permute.xlu0 %4437 }
 0xb1c   : > { %4595 = vrot.lane.b32.xlu0 %v4582_v60, %s8456_s23 }
 0xb1d   : > { %4403 = vrot.lane.b32.xlu1 %v4386_v14, %s8550_s28  ;;  %v8051_v35 = vpop.permute.xlu1 %4543  ;;  %v4488_v60 = vpop.permute.xlu0 %4487 }
 0xb20   : > { %4645 = vrot.lane.b32.xlu0 %v4632_v22, %s8458_s21 }
 0xb21   : > { %4497 = vrot.lane.b32.xlu1 %v4480_v0, %s8552_s19  ;;  %v4598_v7 = vpop.permute.xlu1 %4597  ;;  %v4538_v14 = vpop.permute.xlu0 %4537 }
 0xb24   : > { %4739 = vrot.lane.b32.xlu0 %v4726_v6, %s8471_s14 }
 0xb25   : > { %4547 = vrot.lane.b32.xlu1 %v4530_v1, %s8554_s22  ;;  %v8062_v31 = vpop.permute.xlu1 %4603 }
 0xb28   : > { %4445 = vrot.lane.b32.xlu0 %v4429_v44, %s8452_s27 }
 0xb29   : > { %4741 = vrot.lane.b32.xlu1 %v4727_v45, %s8471_s14  ;;  %v8064_v53 = vpop.permute.xlu1 %4647 }
 0xb2c   : > { %4695 = vrot.lane.b32.xlu0 %v4679_v13, %s8459_s20  ;;  %v4354_v13 = vmul.f32 %v8013_v17, %v7921_v48 }
 0xb2d   : > { %4747 = vrot.lane.b32.xlu1 %v4730_v62, %s8471_s14  ;;  %v8066_v54 = vpop.permute.xlu1 %4653 }
 0xb30   : > { %4401 = vrot.lane.b32.xlu0 %v4385_v39, %s8550_s28 }
 0xb31   : > { %4743 = vrot.lane.b32.xlu1 %v4728_v28, %s8471_s14  ;;  %v8068_v29 = vpop.permute.xlu1 %4691 }
 0xb34   : > { %4495 = vrot.lane.b32.xlu0 %v4479_v16, %s8552_s19 }
 0xb35   : > { %4064 = vperm.xlu1 %5441, %v5215_v50   ;;  %v8070_v19 = vpop.permute.xlu1 %4697 }
 0xb38   : > { %4545 = vrot.lane.b32.xlu0 %v4529_v47, %s8554_s22 }
 0xb39   : > { %5040 = vperm.xlu1 %5441, %v5036_v25  }
 0xb3c   : > { %4601 = vrot.lane.b32.xlu0 %v4585_v46, %s8456_s23 }
 0xb40   : > { %4651 = vrot.lane.b32.xlu0 %v4635_v43, %s8458_s21  ;;  %s386_s21 = scalar_lea.vmem %s8185_s11, %s8586_s0 }
 0xb44   : > { %4745 = vrot.lane.b32.xlu0 %v4729_v4, %s8471_s14 }
 0xb48   : > { %4737 = vrot.lane.b32.xlu0 %v4725_v61, %s8471_s14 }
 0xb4c   : > { %4767 = vperm.xlu0 %5439, %v5236_v5  }
 0xb50   : > { %5045 = vperm.xlu0 %5439, %v5037_v21  }
 0xb6e   : > { %v4440_v30 = vpop.permute.xlu0 %4439 }
 0xb6f   : > { %v4442_v33 = vpop.permute.xlu1 %4441  ;;  %v4449_v44 = vsel %vm1547_vm6, %v4438_v18, %v4440_v30 }
 0xb70   : > { %v4450_v28 = vsel %vm1547_vm6, %v4440_v30, %v4442_v33 }
 0xb72   : > { %v4688_v32 = vpop.permute.xlu0 %4687 }
 0xb73   : > { %v4398_v22 = vpop.permute.xlu1 %4397 }
 0xb76   : > { %v8072_v23 = vpop.permute.xlu0 %4689 }
 0xb77   : > { %v4699_v0 = vsel %vm1854_vm12, %v4688_v32, %v8072_v23  ;;  %v4492_v49 = vpop.permute.xlu1 %4491 }
 0xb7a   : > { %v4396_v6 = vpop.permute.xlu0 %4395 }
 0xb7b   : > { %v4405_v10 = vsel %vm394_vm3, %v4394_v63, %v4396_v6  ;;  %v4542_v55 = vpop.permute.xlu1 %4541  ;;  %v4406_v26 = vsel %vm394_vm3, %v4396_v6, %v4398_v22 }
 0xb7c   : > { %v4413_v1 = vadd.f32 %v4405_v10, %v4353_v38  ;;  %v4414_v39 = vadd.f32 %v4406_v26, %v4354_v13  ;;  %v4356_v38 = vmul.f32 %v8022_v37, %v7934_v27 }
 0xb7e   : > { %v4457_v59 = vadd.f32 %v4449_v44, %v4413_v1  ;;  %v4490_v2 = vpop.permute.xlu0 %4489  ;;  %v4458_v16 = vadd.f32 %v4450_v28, %v4414_v39 }
 0xb7f   : > { %v4499_v45 = vsel %vm8570_vm10, %v4488_v60, %v4490_v2  ;;  %v8084_v62 = vpop.permute.xlu1 %4693  ;;  %v4500_v24 = vsel %vm8571_vm13, %v4490_v2, %v4492_v49  ;;  %vm8582_vm13 = vcmask 769024  }
 0xb80   : > { %v4507_v20 = vadd.f32 %v4499_v45, %v4457_v59  ;;  %v4508_v46 = vadd.f32 %v4500_v24, %v4458_v16 }
 0xb82   : > { %v4540_v42 = vpop.permute.xlu0 %4539 }
 0xb83   : > { %v4549_v3 = vsel %vm1687_vm5, %v4538_v14, %v4540_v42  ;;  %v4448_v50 = vpop.permute.xlu1 %4447  ;;  %v4550_v57 = vsel %vm1687_vm5, %v4540_v42, %v4542_v55 }
 0xb84   : > { %v4557_v41 = vadd.f32 %v4549_v3, %v4507_v20  ;;  %v4558_v48 = vadd.f32 %v4550_v57, %v4508_v46 }
 0xb86   : > { %v4594_v15 = vpop.permute.xlu0 %4593 }
 0xb87   : > { %v4600_v17 = vpop.permute.xlu1 %4599 }
 0xb8a   : > { %v4644_v47 = vpop.permute.xlu0 %4643 }
 0xb8b   : > { %v4650_v21 = vpop.permute.xlu1 %4649 }
 0xb8e   : > { %v4596_v52 = vpop.permute.xlu0 %4595 }
 0xb8f   : > { %v4605_v43 = vsel %vm8572_vm4, %v4594_v15, %v4596_v52  ;;  %v4606_v12 = vsel %vm8573_vm11, %v4596_v52, %v4598_v7  ;;  %v4404_v60 = vpop.permute.xlu1 %4403  ;;  %v4355_v7 = vmul.f32 %v8022_v37, %v7930_v58 }
 0xb90   : > { %v4614_v4 = vadd.f32 %v4606_v12, %v4558_v48  ;;  %v4613_v40 = vadd.f32 %v4605_v43, %v4557_v41 }
 0xb92   : > { %v4646_v61 = vpop.permute.xlu0 %4645 }
 0xb93   : > { %v4655_v5 = vsel %vm8574_vm14, %v4644_v47, %v4646_v61  ;;  %v4498_v33 = vpop.permute.xlu1 %4497 }
 0xb94   : > { %v4663_v25 = vadd.f32 %v4655_v5, %v4613_v40 }
 0xb96   : > { %v4740_v63 = vpop.permute.xlu0 %4739  ;;  %v4707_v18 = vadd.f32 %v4699_v0, %v4663_v25 }
 0xb97   : > { %v4548_v6 = vpop.permute.xlu1 %4547 }
 0xb9a   : > { %v4446_v14 = vpop.permute.xlu0 %4445 }
 0xb9b   : > { %v4451_v55 = vsel %vm1547_vm6, %v8039_v9, %v4446_v14  ;;  %v4452_v44 = vsel %vm1547_vm6, %v4446_v14, %v4448_v50  ;;  %v4742_v26 = vpop.permute.xlu1 %4741  ;;  %v4656_v9 = vsel %vm8577_vm9, %v4646_v61, %v8064_v53  ;;  %vm8578_vm6 = vmmov %vm8572_vm4  ;;  %v4700_v53 = vsel %vm1854_vm12, %v8072_v23, %v8068_v29 }
 0xb9c   : > { %v4664_v15 = vadd.f32 %v4656_v9, %v4614_v4  ;;  %vm8583_vm4 = vmmov %vm8582_vm13 }
 0xb9d   : > { %vm8584_vm11 = vmmov %vm8583_vm4 }
 0xb9e   : > { %v4696_v30 = vpop.permute.xlu0 %4695  ;;  %vm8585_vm14 = vmmov %vm8583_vm4 }
 0xb9f   : > { %v4748_v28 = vpop.permute.xlu1 %4747  ;;  %v4702_v48 = vsel %vm1854_vm12, %v4696_v30, %v8070_v19  ;;  %v4701_v12 = vsel %vm1854_vm12, %v8084_v62, %v4696_v30  ;;  %v5235_v62 = vld [vmem:[%s8180_s6 + $0x28] sm:$0x3f] }
 0xba2   : > { %v4402_v32 = vpop.permute.xlu0 %4401 }
 0xba3   : > { %v4407_v22 = vsel %vm394_vm3, %v8033_v34, %v4402_v32  ;;  %v4408_v49 = vsel %vm394_vm3, %v4402_v32, %v4404_v60  ;;  %vm8575_vm3 = vmmov %vm8570_vm10  ;;  %v4744_v40 = vpop.permute.xlu1 %4743 }
 0xba4   : > { %v4415_v10 = vadd.f32 %v4407_v22, %v4355_v7  ;;  %v4416_v1 = vadd.f32 %v4408_v49, %v4356_v38  ;;  %vm8576_vm8 = vmmov %vm8575_vm3 }
 0xba5   : > { %vm8580_vm10 = vmmov %vm8577_vm9 }
 0xba6   : > { %v4496_v0 = vpop.permute.xlu0 %4495  ;;  %v4459_v59 = vadd.f32 %v4451_v55, %v4415_v10  ;;  %v4460_v2 = vadd.f32 %v4452_v44, %v4416_v1  ;;  %v4856_v55 = vld [vmem:[%s8183_s9] sm:$0xff] }
 0xba7   : > { %v4501_v45 = vsel %vm8575_vm3, %v8046_v56, %v4496_v0  ;;  %v4502_v58 = vsel %vm8576_vm8, %v4496_v0, %v4498_v33 }
 0xba8   : > { %v4509_v13 = vadd.f32 %v4501_v45, %v4459_v59  ;;  %v4510_v20 = vadd.f32 %v4502_v58, %v4460_v2  ;;  %v4854_v59 = vld [vmem:[%s8182_s8] sm:$0xff]  ;;  %v4855_v2 = vld [vmem:[%s8182_s8 + $0x8] sm:$0xf] }
 0xbaa   : > { %v4546_v34 = vpop.permute.xlu0 %4545 }
 0xbab   : > { %v4551_v27 = vsel %vm1687_vm5, %v8051_v35, %v4546_v34  ;;  %v4552_v37 = vsel %vm1687_vm5, %v4546_v34, %v4548_v6  ;;  %vm8581_vm5 = vmmov %vm8577_vm9 }
 0xbac   : > { %v4559_v56 = vadd.f32 %v4551_v27, %v4509_v13  ;;  %v4560_v41 = vadd.f32 %v4552_v37, %v4510_v20  ;;  %v5445_v37 = vld [vmem:[%s5586_s30] sm:$0xff]  ;;  %v5446_v20 = vld [vmem:[%s5586_s30 + $0x8] sm:$0xff] }
 0xbae   : > { %v4602_v42 = vpop.permute.xlu0 %4601 }
 0xbaf   : > { %v4607_v3 = vsel %vm8578_vm6, %v4600_v17, %v4602_v42  ;;  %v4608_v39 = vsel %vm8579_vm7, %v4602_v42, %v8062_v31  ;;  %v4750_v31 = vsel %vm8582_vm13, %v4740_v63, %v4742_v26  ;;  %v4708_v17 = vadd.f32 %v4700_v53, %v4664_v15 }
 0xbb0   : > { %v4615_v16 = vadd.f32 %v4607_v3, %v4559_v56  ;;  %v4616_v50 = vadd.f32 %v4608_v39, %v4560_v41  ;;  %v5447_v41 = vld [vmem:[%s5586_s30 + $0x10] sm:$0xf] }
 0xbb2   : > { %v4652_v35 = vpop.permute.xlu0 %4651 }
 0xbb3   : > { %v4657_v24 = vsel %vm8580_vm10, %v4650_v21, %v4652_v35  ;;  %v4658_v47 = vsel %vm8581_vm5, %v4652_v35, %v8066_v54  ;;  %v4758_v54 = vadd.f32 %v4750_v31, %v4708_v17 }
 0xbb4   : > { %v4665_v57 = vadd.f32 %v4657_v24, %v4615_v16  ;;  %v4666_v46 = vadd.f32 %v4658_v47, %v4616_v50  ;;  %v4065_v30 = vpop.permute.xlu1 %4064 }
 0xbb5   : > { %v4143_v32 = vadd.f32 %v7915_v51, %v4065_v30  ;;  %v4857_v51 = vld [vmem:[%s8183_s9 + $0x8] sm:$0xf] }
 0xbb6   : > { %v4746_v52 = vpop.permute.xlu0 %4745  ;;  %v4710_v43 = vadd.f32 %v4702_v48, %v4666_v46  ;;  %v4709_v61 = vadd.f32 %v4701_v12, %v4665_v57 }
 0xbb7   : > { %v4752_v4 = vsel %vm8583_vm4, %v4746_v52, %v4748_v28  ;;  %v4751_v21 = vsel %vm8584_vm11, %v4744_v40, %v4746_v52  ;;  %v4147_v10 = vmul.f32 0.2, %v4143_v32  ;;  %v5448_v28 = vld [vmem:[%s5586_s30 + $0x18] sm:$0xf] }
 0xbb8   : > { %v4760_v5 = vadd.f32 %v4752_v4, %v4710_v43  ;;  %v4759_v60 = vadd.f32 %v4751_v21, %v4709_v61  ;;  %v5041_v34 = vpop.permute.xlu1 %5040 }
 0xbba   : > { %v5282_v29 = vpack.c.bf16 %v4760_v5, %v4758_v54  ;;  %v4738_v23 = vpop.permute.xlu0 %4737 }
 0xbbb   : > { %v4749_v25 = vsel %vm8585_vm14, %v4738_v23, %v4740_v63  ;;  %v4145_v63 = vadd.f32 %v7917_v11, %v4065_v30  ;;  %v4149_v11 = vmax.f32 %v4143_v32, %v4147_v10 }
 0xbbc   : > { %v4757_v19 = vadd.f32 %v4749_v25, %v4707_v18  ;;  %5284 = vmatprep.subr.msk.bf16.mxu0 %vm6163_vm15, %v5282_v29 }
 0xbbd   : > { %v4148_v38 = vmul.f32 0.2, %v4145_v63 }
 0xbbe   : > { %v5285_v14 = vpack.c.bf16 %v4759_v60, %v4757_v19 }
 0xbbf   : > { %v4150_v44 = vmax.f32 %v4145_v63, %v4148_v38 }
 0xbc0   : > { %5287 = vmatpush1.bf16.msk.msra.mxu0 %vm6163_vm15, %v5285_v14 }
 0xbc3   : > { %5239 = vmatmul.mubr.msk.f32.vlgmr.msra.gmra.mrb[16].mxu0 %vm1134_vm1, %v5235_v62 }
 0xbc4   : > { %4934 = vmatprep.mubr.f32.mxu0 %v7798_v36 }
 0xbcb   : > { %v4768_v33 = vpop.permute.xlu0 %4767 }
 0xbcf   : > { %v5046_v13 = vpop.permute.xlu0 %5045 }
 0xc96   : > { %v4845_v18 = vpop.f32.mrb[16].mxu0 }
 0xc97   : > { %v4846_v22 = vadd.f32 %v4845_v18, %v4768_v33  ;;  %v4847_v49 = vpop.f32.mrb[17].mxu0 }
 0xc98   : > { %v4848_v7 = vadd.f32 %v4847_v49, %v4768_v33 }
 0xc99   : > { %v4850_v8 = vmul.f32 0.2, %v4846_v22 }
 0xc9a   : > { %v4851_v6 = vmul.f32 0.2, %v4848_v7 }
 0xc9b   : > { %v4852_v0 = vmax.f32 %v4846_v22, %v4850_v8 }
 0xc9c   : > { %v4853_v1 = vmax.f32 %v4848_v7, %v4851_v6 }
 0xc9e   : > { %5240 = vmatprep.subr.msk.mxu0 %vm425_vm0, %v4853_v1 }
 0xc9f   : > { %5241 = vmatpush1.msk.msra.mxu0 %vm425_vm0, %v4852_v0 }
 0xca0   : > { %5242 = vmatmul.mubr.msk.f32.vlgmr.msra.gmra.mrb[18].mxu0 %vm418_vm2, %v4856_v55  ;;  %5244 = vmatprep.subr.msk.mxu0 %vm425_vm0, %v4150_v44 }
 0xca1   : > { %5245 = vmatpush1.msk.msra.mxu0 %vm425_vm0, %v4149_v11  ;;  %4940 = vmatprep.mubr.f32.mxu0 %v7798_v36 }
 0xca4   : > { %5243 = vmatmul.mubr.msk.f32.gmra.mrb[20].mxu0 %vm418_vm2, %v4857_v51 }
 0xca5   : > { %5023 = vmatprep.mubr.f32.mxu0 %v7798_v36 }
 0xca8   : > { %5246 = vmatmul.mubr.msk.f32.vlgmr.msra.gmra.mrb[18].mxu0 %vm418_vm2, %v4854_v59 }
 0xca9   : > { %5029 = vmatprep.mubr.f32.mxu0 %v7798_v36 }
 0xcac   : > { %5247 = vmatmul.mubr.msk.f32.gmra.mrb[20].mxu0 %vm418_vm2, %v4855_v2 }
 0xd7b   : > { %v5025_v45 = vpop.f32.mrb[18].mxu0 }
 0xd7c   : > { %v5048_v58 = vadd.f32 %v5041_v34, %v5025_v45  ;;  %v5027_v26 = vpop.f32.mrb[19].mxu0 }
 0xd7d   : > { %v5049_v27 = vadd.f32 %v5041_v34, %v5027_v26 }
 0xd7e   : > { %v5052_v36 = vadd.f32 %v5445_v37, %v5048_v58 }
 0xd7f   : > { %v5053_v42 = vadd.f32 %v5446_v20, %v5049_v27  ;;  %v5031_v9 = vpop.f32.mrb[20].mxu0 }
 0xd80   : > { %5056 = vst [vmem:[%s386_s21] sm:$0xff] %v5052_v36  ;;  %v5050_v3 = vadd.f32 %v5046_v13, %v5031_v9  ;;  %v5033_v39 = vpop.f32.mrb[21].mxu0 }
 0xd81   : > { %5057 = vst [vmem:[%s386_s21 + $0x8] sm:$0xff] %v5053_v42  ;;  %v5051_v56 = vadd.f32 %v5046_v13, %v5033_v39 }
 0xd82   : > { %v5054_v15 = vadd.f32 %v5447_v41, %v5050_v3 }
 0xd83   : > { %v5055_v16 = vadd.f32 %v5448_v28, %v5051_v56 }
 0xd84   : > { %5058 = vst [vmem:[%s386_s21 + $0x10] sm:$0xf] %v5054_v15 }
 0xd85   : > { %5059 = vst [vmem:[%s386_s21 + $0x18] sm:$0xf] %v5055_v16 }
 0xd86 PF: > { %s21_s17 = sadd.s32 1, %s5455_s17  }
 0xd87   : > { %p18_p4 = scmp.ge.s32.totalorder %s21_s17, 4  }
 0xd89   :  { %20 = sbr.rel (!%p18_p4) target bundleno = 2 (0x2), region = 125 }

</bundles_post_ra>
